<compile_context>
chip_gen: v6e
topology: v6e:2x2x1
jax: 0.10.0
libtpu: 0.0.40
codegen_flags: <defaults>
</compile_context>

<pallas_src>
import functools

import jax
import jax.numpy as jnp
from jax.experimental import pallas as pl
from jax.experimental.pallas import tpu as pltpu

_LANES = 128
_MAX_TILE_ROWS = 1024  # tunable; must be a multiple of 8


def _round_up(x, m):
    return ((x + m - 1) // m) * m


# ----------------------------------------------------------------------------
# Pallas kernel: sum of squared errors over a lane-dense [rows, 128] view.
#   - VMEM vector accumulator across grid steps (sequential / "arbitrary").
#   - Single cross-lane reduce + scalar SMEM store on the last step.
# ----------------------------------------------------------------------------
def _sse_kernel(p_ref, t_ref, out_ref, acc_ref, *, rows_valid, need_mask):
    i = pl.program_id(0)

    @pl.when(i == 0)
    def _():
        acc_ref[...] = jnp.zeros_like(acc_ref)

    d = p_ref[...].astype(jnp.float32) - t_ref[...].astype(jnp.float32)
    sq = d * d

    if need_mask:
        # Only the final grid step can over-extend past the array rows; those
        # out-of-bounds rows hold unspecified data, so zero them.  This is a
        # trace-time branch: when the grid divides evenly, no mask is built.
        tile_rows = acc_ref.shape[0]
        row_ids = (
            jax.lax.broadcasted_iota(jnp.int32, acc_ref.shape, 0) + i * tile_rows
        )
        sq = jnp.where(row_ids < rows_valid, sq, jnp.float32(0.0))

    acc_ref[...] += sq  # pure VPU; no cross-lane work in the inner loop

    @pl.when(i == pl.num_programs(0) - 1)
    def _():
        out_ref[0] = jnp.sum(acc_ref[...])


def mse_loss_pallas(p, t, *, max_tile_rows=_MAX_TILE_ROWS):
    """Mean squared error between p and t; reduction done in a Pallas kernel."""
    p = jnp.asarray(p)
    t = jnp.asarray(t)
    assert p.size == t.size, (p.shape, t.shape)
    assert max_tile_rows > 0 and max_tile_rows % 8 == 0
    n = p.size  # static Python int
    if n == 0:
        return jnp.float32(0.0)

    # Flatten in native dtype (no f32 upcast here: halves HBM traffic for bf16;
    # the kernel upcasts in-register).
    p_flat = p.reshape(-1)
    t_flat = t.reshape(-1)

    rem = n % _LANES
    if rem:
        # TODO(synk): this pad materializes a copy of the operands; it is only
        # hit when the flattened length is not a multiple of 128 (the padded
        # zeros contribute 0 to the SSE, so no mask is needed for them).
        pad = _LANES - rem
        p_flat = jnp.pad(p_flat, (0, pad))
        t_flat = jnp.pad(t_flat, (0, pad))

    rows = p_flat.size // _LANES
    p2 = p_flat.reshape(rows, _LANES)  # bitcast when no pad was applied
    t2 = t_flat.reshape(rows, _LANES)

    tile_rows = min(max_tile_rows, _round_up(rows, 8))
    if rows < tile_rows:
        # Tiny input: pad rows so the single block matches the array exactly
        # (zero rows contribute nothing; avoids an over-extending block).
        pad_rows = tile_rows - rows
        p2 = jnp.pad(p2, ((0, pad_rows), (0, 0)))
        t2 = jnp.pad(t2, ((0, pad_rows), (0, 0)))
        rows = tile_rows

    grid = (pl.cdiv(rows, tile_rows),)
    need_mask = (rows % tile_rows) != 0

    kernel = functools.partial(_sse_kernel, rows_valid=rows, need_mask=need_mask)

    sse = pl.pallas_call(
        kernel,
        out_shape=jax.ShapeDtypeStruct((1,), jnp.float32),
        grid=grid,
        in_specs=[
            pl.BlockSpec((tile_rows, _LANES), lambda i: (i, 0)),
            pl.BlockSpec((tile_rows, _LANES), lambda i: (i, 0)),
        ],
        out_specs=pl.BlockSpec(memory_space=pltpu.MemorySpace.SMEM),
        scratch_shapes=[pltpu.VMEM((tile_rows, _LANES), jnp.float32)],
        compiler_params=pltpu.CompilerParams(
            # Sequential accumulation into a shared scratch + single SMEM
            # scalar output -> this axis must stay "arbitrary".
            # TODO(synk): for v7x megacore, restructure to per-block partial
            # outputs so the axis can be marked "parallel" across the 2 TCs.
            dimension_semantics=("arbitrary",),
        ),
    )(p2, t2)
    return sse[0] / jnp.float32(n)


# ----------------------------------------------------------------------------
# Loss module (mirrors RegressorLoss / TimeConditionedRegressorLoss semantics)
# ----------------------------------------------------------------------------
class RegressorLossPallas:
    def __init__(self, weights=None):
        # non-trainable scalar weights, as in nn.ParameterDict(requires_grad=False)
        self.weights = dict(weights) if weights is not None else None

    def compute_losses(self, predicted, targets):
        loss, losses = None, {}
        for key in predicted:
            p, t = predicted[key], targets[key]
            loss_key = self.compute_loss(p, t)
            losses[key] = loss_key
            if self.weights is not None and key in self.weights:
                loss_key = loss_key * jnp.float32(self.weights[key])
            loss = loss_key if loss is None else loss + loss_key
        return loss, losses

    def compute_loss(self, p, t):
        raise NotImplementedError


class TimeConditionedRegressorLossPallas(RegressorLossPallas):
    def __init__(self, weights=None, on_clean=False, min_pallas_elems=1 << 18):
        super().__init__(weights)
        self.on_clean = on_clean
        # Below this element count (~1 MiB f32) a pallas_call launch dominates;
        # use plain XLA instead.  Set to 0 to force the Pallas path everywhere.
        self.min_pallas_elems = min_pallas_elems

    def forward(self, regressor, batch, rng):
        targets = {k: batch[k] for k in regressor.model_outputs}

        if self.on_clean:
            clean_batch = dict(batch)  # shallow copy (arrays are immutable)
            ts = jnp.zeros((batch["num_data"], 1), jnp.float32)
            clean_batch["node_positions"] = center_splits(
                clean_batch["node_positions"], clean_batch["graph_index"],
                batch["num_data"])
            # TODO(synk): regressor.update_connectivity (graph rewiring) has no
            # clean Pallas/JAX-static equivalent here; connectivity is implicit
            # in the toy regressor, so this step is a no-op.
            predicted = regressor.forward(clean_batch, ts)
            clean_loss, clean_losses = self.compute_losses(predicted, targets)
            clean_losses = {f"clean_{k}": v for k, v in clean_losses.items()}
        else:
            clean_loss, clean_losses = 0.0, {}

        rng_t, rng_noise = jax.random.split(rng)
        ts = jax.random.randint(
            rng_t, (batch["num_data"], 1), 0, regressor.timesteps + 1
        ).astype(jnp.float32)
        noisy_inputs = regressor.forward_diffusion(batch, ts, rng_noise)
        predicted = regressor.forward(noisy_inputs, ts)
        loss, losses = self.compute_losses(predicted, targets)
        return loss + clean_loss, {**losses, **clean_losses}

    # TODO(synk): RegressorLoss.compute_loss is abstract in the reference
    # module; concrete subclasses use a pointwise regression loss.  MSE is
    # implemented here (Pallas reduction for large tensors).
    def compute_loss(self, p, t):
        if p.size >= self.min_pallas_elems:
            return mse_loss_pallas(p, t)
        diff = jnp.asarray(p, jnp.float32) - jnp.asarray(t, jnp.float32)
        return jnp.mean(diff * diff)


# ----------------------------------------------------------------------------
# Glue: toy deterministic time-conditioned regressor + batch helpers
# ----------------------------------------------------------------------------
def center_splits(positions, graph_index, num_graphs):
    """Subtract the per-graph centroid from node positions (ops.center_splits)."""
    sums = jnp.zeros((num_graphs, positions.shape[1]), positions.dtype)
    sums = sums.at[graph_index].add(positions)
    counts = jnp.zeros((num_graphs, 1), positions.dtype).at[graph_index].add(1.0)
    means = sums / counts
    return positions - means[graph_index]


class ToyTimeConditionedRegressor:
    """Minimal stand-in for TimeConditionedRegressor (deterministic init)."""

    def __init__(self, key, num_features, timesteps=10):
        self.timesteps = timesteps
        self.model_outputs = ("energy", "forces")
        k1, k2 = jax.random.split(key)
        self.w_energy = 0.1 * jax.random.normal(k1, (num_features, 1), jnp.float32)
        self.w_forces = 0.1 * jax.random.normal(k2, (num_features, 3), jnp.float32)

    def forward(self, batch, ts):
        # time conditioning: scale node features by (1 - t/T) per graph
        scale = 1.0 - ts[batch["graph_index"]] / self.timesteps        # (N, 1)
        h = batch["node_features"] * scale
        h = h + 0.01 * batch["node_positions"].sum(-1, keepdims=True)
        forces = h @ self.w_forces                                     # (N, 3)
        per_node_e = h @ self.w_energy                                 # (N, 1)
        energy = jnp.zeros((batch["num_data"], 1), jnp.float32)
        energy = energy.at[batch["graph_index"]].add(per_node_e)       # (B, 1)
        return {"energy": energy, "forces": forces}

    def forward_diffusion(self, batch, ts, rng):
        noisy = dict(batch)
        sigma = ts[batch["graph_index"]] / self.timesteps              # (N, 1)
        noise = jax.random.normal(rng, batch["node_features"].shape, jnp.float32)
        noisy["node_features"] = batch["node_features"] + sigma * noise
        return noisy


# ----------------------------------------------------------------------------
if __name__ == "__main__":
    key = jax.random.PRNGKey(0)
    (k_model, k_feat, k_pos, k_tgt_e, k_tgt_f, k_rng,
     k_chk_a, k_chk_b) = jax.random.split(key, 8)

    # --- 1) standalone kernel validation against a plain-JAX reference -----
    # f32, length not a multiple of 128 -> exercises pad + multi-block + mask.
    x = jax.random.normal(k_chk_a, (300, 1000), jnp.float32)
    y = jax.random.normal(k_chk_b, (300, 1000), jnp.float32)
    got = jax.block_until_ready(mse_loss_pallas(x, y))
    ref = jnp.mean((x - y) ** 2)
    assert jnp.allclose(got, ref, rtol=1e-5, atol=1e-6), (got, ref)

    # bf16, length a multiple of 128 -> zero-copy reshape, no mask, in-kernel upcast.
    xb = x[:256, :512].astype(jnp.bfloat16)
    yb = y[:256, :512].astype(jnp.bfloat16)
    got_b = jax.block_until_ready(mse_loss_pallas(xb, yb))
    ref_b = jnp.mean((xb.astype(jnp.float32) - yb.astype(jnp.float32)) ** 2)
    assert jnp.allclose(got_b, ref_b, rtol=1e-4, atol=1e-6), (got_b, ref_b)

    # --- 2) loss module forward on a small toy batch ------------------------
    num_data = 2            # graphs in the batch
    nodes_per_graph = 8
    num_nodes = num_data * nodes_per_graph
    num_features = 32

    graph_index = jnp.repeat(jnp.arange(num_data), nodes_per_graph)
    batch = {
        "num_data": num_data,
        "graph_index": graph_index,
        "node_features": jax.random.normal(
            k_feat, (num_nodes, num_features), jnp.float32),
        "node_positions": jax.random.normal(k_pos, (num_nodes, 3), jnp.float32),
        # regression targets (attributes read off the batch in the reference)
        "energy": jax.random.normal(k_tgt_e, (num_data, 1), jnp.float32),
        "forces": jax.random.normal(k_tgt_f, (num_nodes, 3), jnp.float32),
    }

    regressor = ToyTimeConditionedRegressor(k_model, num_features, timesteps=10)
    # min_pallas_elems=0 routes even the tiny per-key tensors through the
    # Pallas kernel so the module path exercises it end-to-end here.
    loss_mod = TimeConditionedRegressorLossPallas(
        weights={"energy": 1.0, "forces": 10.0}, on_clean=True,
        min_pallas_elems=0)

    total_loss, losses = loss_mod.forward(regressor, batch, k_rng)
    total_loss = jax.block_until_ready(total_loss)
    losses = jax.tree_util.tree_map(jax.block_until_ready, losses)

    assert bool(jnp.isfinite(total_loss))
    assert set(losses.keys()) == {"energy", "forces", "clean_energy", "clean_forces"}
    print("KERNEL_OK")
</pallas_src>

<mosaic_0001>
module attributes {stable_mosaic.version = 11 : i64} {
  func.func @_sse_kernel(%arg0: i32, %arg1: memref<1024x128xf32, #tpu.memory_space<vmem>>, %arg2: memref<1024x128xf32, #tpu.memory_space<vmem>>, %arg3: memref<1xf32, #tpu.memory_space<smem>>, %arg4: memref<1024x128xf32, #tpu.memory_space<vmem>>) attributes {dimension_semantics = [#tpu.dimension_semantics<arbitrary>], iteration_bounds = array<i64: 3>, scalar_prefetch = 0 : i64, scratch_operands = 1 : i64, tpu.core_type = #tpu.core_type<tc>, window_params = [{transform_indices = @transform_0, window_bounds = array<i64: 1024, 128>}, {transform_indices = @transform_1, window_bounds = array<i64: 1024, 128>}, {transform_indices = @transform_2, window_bounds = array<i64: 1>}]} {
    %c0_i32 = arith.constant 0 : i32
    %0 = arith.cmpi eq, %arg0, %c0_i32 : i32
    %1 = arith.extui %0 : i1 to i32
    %c0_i32_0 = arith.constant 0 : i32
    %2 = arith.cmpi ne, %1, %c0_i32_0 : i32
    scf.if %2 {
      %cst_9 = arith.constant 0.000000e+00 : f32
      %21 = vector.broadcast %cst_9 : f32 to vector<1024x128xf32>
      %c0_10 = arith.constant 0 : index
      %c0_11 = arith.constant 0 : index
      %22 = vector.load %arg4[%c0_10, %c0_11] : memref<1024x128xf32, #tpu.memory_space<vmem>>, vector<1024x128xf32>
      tpu.vector_store %arg4[%c0_10, %c0_11], %21 {strides = array<i32>} : memref<1024x128xf32, #tpu.memory_space<vmem>>, vector<1024x128xf32>,
    } else {
    }
    %c0 = arith.constant 0 : index
    %c0_1 = arith.constant 0 : index
    %3 = vector.load %arg1[%c0, %c0_1] : memref<1024x128xf32, #tpu.memory_space<vmem>>, vector<1024x128xf32>
    %c0_2 = arith.constant 0 : index
    %c0_3 = arith.constant 0 : index
    %4 = vector.load %arg2[%c0_2, %c0_3] : memref<1024x128xf32, #tpu.memory_space<vmem>>, vector<1024x128xf32>
    %5 = arith.subf %3, %4 : vector<1024x128xf32>
    %6 = arith.mulf %5, %5 : vector<1024x128xf32>
    %7 = tpu.iota {dimensions = array<i32: 0>} : vector<1024x128xi32>
    %c1024_i32 = arith.constant 1024 : i32
    %8 = arith.muli %arg0, %c1024_i32 : i32
    %9 = vector.broadcast %8 : i32 to vector<1024x128xi32>
    %10 = arith.addi %7, %9 : vector<1024x128xi32>
    %c2344_i32 = arith.constant 2344 : i32
    %11 = vector.broadcast %c2344_i32 : i32 to vector<1024x128xi32>
    %12 = arith.cmpi slt, %10, %11 : vector<1024x128xi32>
    %cst = arith.constant 0.000000e+00 : f32
    %13 = vector.broadcast %cst : f32 to vector<1024x128xf32>
    %14 = arith.select %12, %6, %13 : vector<1024x128xi1>, vector<1024x128xf32>
    %c0_4 = arith.constant 0 : index
    %c0_5 = arith.constant 0 : index
    %15 = vector.load %arg4[%c0_4, %c0_5] : memref<1024x128xf32, #tpu.memory_space<vmem>>, vector<1024x128xf32>
    %16 = arith.addf %15, %14 : vector<1024x128xf32>
    %c0_6 = arith.constant 0 : index
    %c0_7 = arith.constant 0 : index
    %17 = vector.load %arg4[%c0_6, %c0_7] : memref<1024x128xf32, #tpu.memory_space<vmem>>, vector<1024x128xf32>
    tpu.vector_store %arg4[%c0_6, %c0_7], %16 {strides = array<i32>} : memref<1024x128xf32, #tpu.memory_space<vmem>>, vector<1024x128xf32>,
    %c2_i32 = arith.constant 2 : i32
    %18 = arith.cmpi eq, %arg0, %c2_i32 : i32
    %19 = arith.extui %18 : i1 to i32
    %c0_i32_8 = arith.constant 0 : i32
    %20 = arith.cmpi ne, %19, %c0_i32_8 : i32
    scf.if %20 {
      %c0_9 = arith.constant 0 : index
      %c0_10 = arith.constant 0 : index
      %21 = vector.load %arg4[%c0_9, %c0_10] : memref<1024x128xf32, #tpu.memory_space<vmem>>, vector<1024x128xf32>
      %22 = vector.shape_cast %21 : vector<1024x128xf32> to vector<1x1024x128xf32>
      %cst_11 = arith.constant dense<0.000000e+00> : vector<1xf32>
      %23 = vector.multi_reduction <add>, %22, %cst_11 [1, 2] : vector<1x1024x128xf32> to vector<1xf32>
      %24 = vector.shape_cast %23 : vector<1xf32> to vector<1x1x1xf32>
      %25 = vector.extract %24[0, 0, 0] : f32 from vector<1x1x1xf32>
      %c0_12 = arith.constant 0 : index
      %26 = memref.load %arg3[%c0_12] : memref<1xf32, #tpu.memory_space<smem>>
      memref.store %25, %arg3[%c0_12] : memref<1xf32, #tpu.memory_space<smem>>
    } else {
    }
    return
  }
  func.func @transform_0(%arg0: i32) -> (i32, i32) {
    %c0_i32 = arith.constant 0 : i32
    %c0_i32_0 = arith.constant 0 : i32
    return %arg0, %c0_i32 : i32, i32
  }
  func.func @transform_1(%arg0: i32) -> (i32, i32) {
    %c0_i32 = arith.constant 0 : i32
    %c0_i32_0 = arith.constant 0 : i32
    return %arg0, %c0_i32 : i32, i32
  }
  func.func @transform_2(%arg0: i32) -> i32 {
    %c0_i32 = arith.constant 0 : i32
    %c0_i32_0 = arith.constant 0 : i32
    return %c0_i32 : i32
  }
}

</mosaic_0001>

<bundles_post_ra>
// kernel: tpu_custom_call.1
= control target key start
LH: loop header
LB: loop body
LE: loop exit
PB: predicated region body
PF: predicated region fallthrough
CT: control target
= control target key end

     0   :  { %7 = vsyncpa [#allocation4], 0  ;;  %s3119_s0 = inlined_call_operand.hbm [shape: f32[2344,128], index: 0, kind: input, shape index: {}]   ;;  %s3120_s1 = inlined_call_operand.hbm [shape: f32[2344,128], index: 1, kind: input, shape index: {}]   ;;  %s3121_s2 = inlined_call_operand.hbm [shape: f32[1], index: 2, kind: output, shape index: {}]  }
   0x1   :  { %9 = vsyncpa [#allocation4 + $0x1], 0 }
   0x2   :  { %10 = vsyncpa [#allocation7], 0 }
   0x3   :  { %12 = vsyncpa [#allocation7 + $0x1], 0 }
   0x4   :  { %13 = vsyncpa [#allocation5], 0  ;;  %s2310_s9 = smov 0   ;;  %s2312_s10 = smov 0  }
   0x5   :  { %s2314_s11 = smov 0   ;;  %s2316_s12 = smov 0  }
   0x6 LB: > { %s2329_s13 = sadd.s32 4294967295, %s2285_s12   ;;  %s2332_s14 = sadd.s32 1, %s2285_s12   ;;  %s2285_s12 = sphi %s2316_s12, %s3127_s12   ;;  %s2281_s11 = sphi %s2314_s11, %s3126_s11   ;;  %s2277_s10 = sphi %s2312_s10, %s3125_s10   ;;  %s2273_s9 = sphi %s2310_s9, %s3124_s9  }
   0x7   : > { %s23_s15 = ssub.s32 %s2285_s12, %s2332_s14  ;;  %s26_s16 = sadd.s32 1, %s2281_s11 }
   0x8   : > { %p24_p0 = scmp.eq.s32.totalorder %s23_s15, 0  ;;  %p33_p1 = scmp.ne.s32.totalorder %s2281_s11, %s2277_s10 }
   0x9   : > { %p34_p2 = scmp.eq.s32.totalorder %s2285_s12, 0  ;;  %p39_p3 = scmp.ne.s32.totalorder %s2277_s10, %s2273_s9 }
   0xa   : > { %s2342_s17 = scalar_select %p24_p0, %s2281_s11, %s26_s16  }
   0xb   : > { %p2344_p4 = por %p34_p2, %p33_p1  ;;  %p40_p5 = scmp.eq.s32.totalorder %s2329_s13, 0 }
   0xc   : > { %p2106_p7 = scmp.ge.s32.totalorder %s2285_s12, 3 }
   0xd   : > { %p2349_p6 = por %p40_p5, %p39_p3 }
   0xe   : > { %106 = sbr.rel (%p2106_p7) target bundleno = 83 (0x53), region = 16 }
  0x13   : > { %109 = sbr.rel (!%p2344_p4) target bundleno = 51 (0x33), region = 20  ;;  %s110_s20 = sand.u32 (%p2344_p4), 1, %s2281_s11  }
  0x14   : > { %s2108_s21 = sshll.u32 (%p2344_p4), %s2285_s12, 7  ;;  %s2107_s22 = sshll.u32 (%p2344_p4), %s110_s20, 10 }
  0x15   : > { %s116_s23 = ssub.s32 (%p2344_p4), 293, %s2108_s21  ;;  %s2361_s26 = scalar_lea.sflag (%p2344_p4), [#allocation4], %s110_s20 }
  0x16   : > { %p117_p8 = scmp.lt.s32.totalorder (%p2344_p4), %s116_s23, 128  ;;  %s114_s27 = scalar_lea.vmem (%p2344_p4), [#allocation3], %s2107_s22 }
  0x18   : > { %s3129_s23 = smov (!%p117_p8, %s116_s23), 128 }
  0x19   : > { %s2358_s24 = sshll.u32 %s3129_s23, 7 }
  0x1a   : > { %s121_s25 = ssub.s32 16384, %s2358_s24 }
  0x1b   : > { %122 = vsyncadd %s2361_s26, %s121_s25  ;;  %p2110_p9 = scmp.ne.s32.totalorder %s2358_s24, 0  ;;  %s2131_s28 = sshll.u32 %s2285_s12, 14 }
  0x1c   : > { %s2369_s3 = scalar_lea.hbm %s3119_s0, %s2131_s28  ;;  %s127_s4 = sshll.u32 %s114_s27, 4  ;;  %s2371_s4 = int_to_ptr.vmem [resolvable:$true] %s127_s4 }
  0x1d   : > { %s2181_s5 = scalar_lea.hbm %s2369_s3, %s2358_s24  ;;  %s2185_s8 = scalar_lea.hbm %s3119_s0, 37504 }
  0x1e   : > { %p2182_p10 = scmp.ne.s32.totalorder %s2369_s3, %s2181_s5  ;;  %p2186_p13 = scmp.lt.s32.totalorder %s2369_s3, %s3119_s0 }
  0x1f   : > { %p2187_p0 = scmp.lt.s32.totalorder %s2185_s8, %s2181_s5 }
  0x20   : > { %p2183_p11 = pnand %p2182_p10, %p2110_p9 }
  0x21   : > { %p2188_p1 = por %p2187_p0, %p2186_p13 }
  0x22   : > { %p2184_p12 = pneg %p2183_p11 }
  0x24   : > { %p2189_p2 = pnand %p2188_p1, %p2184_p12 }
  0x26   : > { %2192 = shalt.err (!%p2189_p2)
}
  0x27   : > { %s2193_s16 = scalar_lea.vmem %s2371_s4, %s2358_s24  ;;  %s2287_s20 = smov [#allocation3]  }
  0x28   : > { %p2194_p3 = scmp.ne.s32.totalorder %s2371_s4, %s2193_s16  ;;  %s2197_s21 = sshll.u32 %s2287_s20, 4  ;;  %s2198_s21 = int_to_ptr.vmem [resolvable:$false] %s2197_s21 }
  0x29   : > { %s2199_s22 = scalar_lea.vmem %s2198_s21, 32768  ;;  %p2200_p8 = scmp.lt.s32.totalorder %s2371_s4, %s2198_s21 }
  0x2a   : > { %p2195_p5 = pnand %p2194_p3, %p2110_p9  ;;  %p2201_p10 = scmp.lt.s32.totalorder %s2199_s22, %s2193_s16 }
  0x2c   : > { %p2196_p7 = pneg %p2195_p5  ;;  %p2202_p11 = por %p2201_p10, %p2200_p8 }
  0x2e   : > { %p2203_p13 = pnand %p2202_p11, %p2196_p7 }
  0x30   : > { %2206 = shalt.err (!%p2203_p13)
}
  0x31   : > { %s2288_s23 = smov 128   ;;  %s2289_s25 = smov 8  }
  0x32   : > { %133 = dma.hbm_to_vmem [thread:$0]  (%p2110_p9), %s2369_s3, %s2358_s24, %s2371_s4, %s2361_s26, %s2288_s23, %s2288_s23, %s2289_s25  }
  0x33 PF: > { %136 = sbr.rel (!%p2344_p4) target bundleno = 83 (0x53), region = 24  ;;  %s137_s27 = sand.u32 (%p2344_p4), 1, %s2281_s11  }
  0x34   : > { %s2115_s28 = sshll.u32 (%p2344_p4), %s2285_s12, 7  ;;  %s2114_s29 = sshll.u32 (%p2344_p4), %s137_s27, 10 }
  0x35   : > { %s143_s30 = ssub.s32 (%p2344_p4), 293, %s2115_s28  ;;  %s2404_s7 = scalar_lea.sflag (%p2344_p4), [#allocation7], %s137_s27 }
  0x36   : > { %p144_p12 = scmp.lt.s32.totalorder (%p2344_p4), %s143_s30, 128  ;;  %s141_s24 = scalar_lea.vmem (%p2344_p4), [#allocation6], %s2114_s29 }
  0x38   : > { %s3131_s30 = smov (!%p144_p12, %s143_s30), 128 }
  0x39   : > { %s2401_s5 = sshll.u32 %s3131_s30, 7 }
  0x3a   : > { %s148_s6 = ssub.s32 16384, %s2401_s5 }
  0x3b   : > { %149 = vsyncadd %s2404_s7, %s148_s6  ;;  %p2117_p4 = scmp.ne.s32.totalorder %s2401_s5, 0  ;;  %s2132_s18 = sshll.u32 %s2285_s12, 14 }
  0x3c   : > { %s2412_s4 = scalar_lea.hbm %s3120_s1, %s2132_s18  ;;  %s154_s8 = sshll.u32 %s141_s24, 4  ;;  %s2414_s8 = int_to_ptr.vmem [resolvable:$true] %s154_s8 }
  0x3d   : > { %s2207_s9 = scalar_lea.hbm %s2412_s4, %s2401_s5  ;;  %s2211_s20 = scalar_lea.hbm %s3120_s1, 37504 }
  0x3e   : > { %p2208_p9 = scmp.ne.s32.totalorder %s2412_s4, %s2207_s9  ;;  %p2212_p2 = scmp.lt.s32.totalorder %s2412_s4, %s3120_s1 }
  0x3f   : > { %p2213_p3 = scmp.lt.s32.totalorder %s2211_s20, %s2207_s9 }
  0x40   : > { %p2209_p0 = pnand %p2208_p9, %p2117_p4 }
  0x41   : > { %p2214_p5 = por %p2213_p3, %p2212_p2 }
  0x42   : > { %p2210_p1 = pneg %p2209_p0 }
  0x44   : > { %p2215_p7 = pnand %p2214_p5, %p2210_p1 }
  0x46   : > { %2218 = shalt.err (!%p2215_p7)
}
  0x47   : > { %s2219_s23 = scalar_lea.vmem %s2414_s8, %s2401_s5  ;;  %s2290_s25 = smov [#allocation6]  }
  0x48   : > { %p2220_p8 = scmp.ne.s32.totalorder %s2414_s8, %s2219_s23  ;;  %s2223_s27 = sshll.u32 %s2290_s25, 4  ;;  %s2224_s27 = int_to_ptr.vmem [resolvable:$false] %s2223_s27 }
  0x49   : > { %s2225_s28 = scalar_lea.vmem %s2224_s27, 32768  ;;  %p2226_p13 = scmp.lt.s32.totalorder %s2414_s8, %s2224_s27 }
  0x4a   : > { %p2221_p10 = pnand %p2220_p8, %p2117_p4  ;;  %p2227_p12 = scmp.lt.s32.totalorder %s2225_s28, %s2219_s23 }
  0x4c   : > { %p2222_p11 = pneg %p2221_p10  ;;  %p2228_p9 = por %p2227_p12, %p2226_p13 }
  0x4e   : > { %p2229_p0 = pnand %p2228_p9, %p2222_p11 }
  0x50   : > { %2232 = shalt.err (!%p2229_p0)
}
  0x51   : > { %s2291_s29 = smov 128   ;;  %s2292_s30 = smov 8  }
  0x52   : > { %160 = dma.hbm_to_vmem [thread:$0]  (%p2117_p4), %s2412_s4, %s2401_s5, %s2414_s8, %s2404_s7, %s2291_s29, %s2291_s29, %s2292_s30  }
  0x53 PF: > { %p2121_p1 = scmp.ge.s32.totalorder %s2285_s12, 1  ;;  %p162_p2 = scmp.lt.s32.totalorder %s2285_s12, 4 }
  0x55   : > { %p163_p3 = pnand %p2121_p1, %p162_p2 }
  0x56   : > { %s168_s6 = sand.u32 (!%p163_p3), 1, %s2277_s10  }
  0x57   : > { %166 = sbr.rel (%p163_p3) target bundleno = 862 (0x35e), region = 28  ;;  %s2122_s24 = sshll.u32 (!%p163_p3), %s168_s6, 10 }
  0x58   : > { %s169_s18 = scalar_lea.sflag (!%p163_p3), [#allocation4], %s168_s6  ;;  %s2443_s26 = scalar_lea.vmem (!%p163_p3), [#allocation3], %s2122_s24 }
  0x5c   : > { %2260 = dma.done.wait (%p2349_p6), %s169_s18, 16384  }
  0x5d   : > { %2262 = vsyncadd (%p2349_p6), %s169_s18, 4294950912  ;;  %s178_s5 = scalar_lea.sflag [#allocation7], %s168_s6  ;;  %s2449_s7 = scalar_lea.vmem [#allocation6], %s2122_s24 }
  0x5e   : > { %2264 = dma.done.wait (%p2349_p6), %s178_s5, 16384  }
  0x5f   : > { %2266 = vsyncadd (%p2349_p6), %s178_s5, 4294950912  ;;  %p2124_p4 = scmp.ne.s32.totalorder %s2329_s13, 0 }
  0x61   : > { %215 = sbr.rel (%p2124_p4) target bundleno = 167 (0xa7), region = 40 }
  0x66   : > { %v2293_v0 = vmov 0.0  }
  0x67   : > { %216 = vst [vmem:[#allocation2 + $0x2b0] sm:$0xff] %v2293_v0  ;;  %217 = vst [vmem:[#allocation2 + $0x3b0] sm:$0xff] %v2293_v0 }
  0x68   : > { %218 = vst [vmem:[#allocation2 + $0xd8] sm:$0xff] %v2293_v0  ;;  %219 = vst [vmem:[#allocation2 + $0x18] sm:$0xff] %v2293_v0 }
  0x69   : > { %220 = vst [vmem:[#allocation2 + $0x50] sm:$0xff] %v2293_v0  ;;  %221 = vst [vmem:[#allocation2 + $0x368] sm:$0xff] %v2293_v0 }
  0x6a   : > { %222 = vst [vmem:[#allocation2 + $0x330] sm:$0xff] %v2293_v0  ;;  %223 = vst [vmem:[#allocation2 + $0x48] sm:$0xff] %v2293_v0 }
  0x6b   : > { %224 = vst [vmem:[#allocation2 + $0x380] sm:$0xff] %v2293_v0  ;;  %225 = vst [vmem:[#allocation2 + $0x110] sm:$0xff] %v2293_v0 }
  0x6c   : > { %226 = vst [vmem:[#allocation2 + $0x118] sm:$0xff] %v2293_v0  ;;  %227 = vst [vmem:[#allocation2 + $0x98] sm:$0xff] %v2293_v0 }
  0x6d   : > { %228 = vst [vmem:[#allocation2 + $0x320] sm:$0xff] %v2293_v0  ;;  %229 = vst [vmem:[#allocation2 + $0x150] sm:$0xff] %v2293_v0 }
  0x6e   : > { %230 = vst [vmem:[#allocation2 + $0x108] sm:$0xff] %v2293_v0  ;;  %231 = vst [vmem:[#allocation2 + $0x60] sm:$0xff] %v2293_v0 }
  0x6f   : > { %232 = vst [vmem:[#allocation2 + $0x2e0] sm:$0xff] %v2293_v0  ;;  %233 = vst [vmem:[#allocation2 + $0x388] sm:$0xff] %v2293_v0 }
  0x70   : > { %234 = vst [vmem:[#allocation2 + $0x338] sm:$0xff] %v2293_v0  ;;  %235 = vst [vmem:[#allocation2 + $0x340] sm:$0xff] %v2293_v0 }
  0x71   : > { %236 = vst [vmem:[#allocation2 + $0x80] sm:$0xff] %v2293_v0  ;;  %237 = vst [vmem:[#allocation2 + $0x1a8] sm:$0xff] %v2293_v0 }
  0x72   : > { %238 = vst [vmem:[#allocation2 + $0x1b8] sm:$0xff] %v2293_v0  ;;  %239 = vst [vmem:[#allocation2 + $0x168] sm:$0xff] %v2293_v0 }
  0x73   : > { %240 = vst [vmem:[#allocation2 + $0x3e8] sm:$0xff] %v2293_v0  ;;  %241 = vst [vmem:[#allocation2 + $0x2f8] sm:$0xff] %v2293_v0 }
  0x74   : > { %242 = vst [vmem:[#allocation2 + $0x290] sm:$0xff] %v2293_v0  ;;  %243 = vst [vmem:[#allocation2 + $0x28] sm:$0xff] %v2293_v0 }
  0x75   : > { %244 = vst [vmem:[#allocation2 + $0x138] sm:$0xff] %v2293_v0  ;;  %245 = vst [vmem:[#allocation2 + $0xc0] sm:$0xff] %v2293_v0 }
  0x76   : > { %246 = vst [vmem:[#allocation2 + $0x1c0] sm:$0xff] %v2293_v0  ;;  %247 = vst [vmem:[#allocation2 + $0x280] sm:$0xff] %v2293_v0 }
  0x77   : > { %248 = vst [vmem:[#allocation2 + $0x100] sm:$0xff] %v2293_v0  ;;  %249 = vst [vmem:[#allocation2 + $0x3c0] sm:$0xff] %v2293_v0 }
  0x78   : > { %250 = vst [vmem:[#allocation2 + $0x158] sm:$0xff] %v2293_v0  ;;  %251 = vst [vmem:[#allocation2 + $0x3e0] sm:$0xff] %v2293_v0 }
  0x79   : > { %252 = vst [vmem:[#allocation2 + $0x218] sm:$0xff] %v2293_v0  ;;  %253 = vst [vmem:[#allocation2 + $0x3f8] sm:$0xff] %v2293_v0 }
  0x7a   : > { %254 = vst [vmem:[#allocation2 + $0x8] sm:$0xff] %v2293_v0  ;;  %255 = vst [vmem:[#allocation2 + $0x128] sm:$0xff] %v2293_v0 }
  0x7b   : > { %256 = vst [vmem:[#allocation2 + $0x2a0] sm:$0xff] %v2293_v0  ;;  %257 = vst [vmem:[#allocation2 + $0x3f0] sm:$0xff] %v2293_v0 }
  0x7c   : > { %258 = vst [vmem:[#allocation2 + $0xa0] sm:$0xff] %v2293_v0  ;;  %259 = vst [vmem:[#allocation2 + $0x2c0] sm:$0xff] %v2293_v0 }
  0x7d   : > { %260 = vst [vmem:[#allocation2 + $0xb0] sm:$0xff] %v2293_v0  ;;  %261 = vst [vmem:[#allocation2 + $0x1e0] sm:$0xff] %v2293_v0 }
  0x7e   : > { %262 = vst [vmem:[#allocation2 + $0x1f0] sm:$0xff] %v2293_v0  ;;  %263 = vst [vmem:[#allocation2 + $0x10] sm:$0xff] %v2293_v0 }
  0x7f   : > { %264 = vst [vmem:[#allocation2 + $0x230] sm:$0xff] %v2293_v0  ;;  %265 = vst [vmem:[#allocation2 + $0x240] sm:$0xff] %v2293_v0 }
  0x80   : > { %266 = vst [vmem:[#allocation2 + $0x90] sm:$0xff] %v2293_v0  ;;  %267 = vst [vmem:[#allocation2 + $0x3a0] sm:$0xff] %v2293_v0 }
  0x81   : > { %268 = vst [vmem:[#allocation2 + $0x208] sm:$0xff] %v2293_v0  ;;  %269 = vst [vmem:[#allocation2 + $0xd0] sm:$0xff] %v2293_v0 }
  0x82   : > { %270 = vst [vmem:[#allocation2 + $0x88] sm:$0xff] %v2293_v0  ;;  %271 = vst [vmem:[#allocation2 + $0x2f0] sm:$0xff] %v2293_v0 }
  0x83   : > { %272 = vst [vmem:[#allocation2 + $0x358] sm:$0xff] %v2293_v0  ;;  %273 = vst [vmem:[#allocation2 + $0x268] sm:$0xff] %v2293_v0 }
  0x84   : > { %274 = vst [vmem:[#allocation2 + $0x350] sm:$0xff] %v2293_v0  ;;  %275 = vst [vmem:[#allocation2 + $0x188] sm:$0xff] %v2293_v0 }
  0x85   : > { %276 = vst [vmem:[#allocation2 + $0x1d8] sm:$0xff] %v2293_v0  ;;  %277 = vst [vmem:[#allocation2 + $0x30] sm:$0xff] %v2293_v0 }
  0x86   : > { %278 = vst [vmem:[#allocation2 + $0x140] sm:$0xff] %v2293_v0  ;;  %279 = vst [vmem:[#allocation2 + $0x2a8] sm:$0xff] %v2293_v0 }
  0x87   : > { %280 = vst [vmem:[#allocation2 + $0x130] sm:$0xff] %v2293_v0  ;;  %281 = vst [vmem:[#allocation2 + $0x200] sm:$0xff] %v2293_v0 }
  0x88   : > { %282 = vst [vmem:[#allocation2 + $0x318] sm:$0xff] %v2293_v0  ;;  %283 = vst [vmem:[#allocation2 + $0x220] sm:$0xff] %v2293_v0 }
  0x89   : > { %284 = vst [vmem:[#allocation2 + $0x70] sm:$0xff] %v2293_v0  ;;  %285 = vst [vmem:[#allocation2 + $0x300] sm:$0xff] %v2293_v0 }
  0x8a   : > { %286 = vst [vmem:[#allocation2 + $0xe0] sm:$0xff] %v2293_v0  ;;  %287 = vst [vmem:[#allocation2 + $0x178] sm:$0xff] %v2293_v0 }
  0x8b   : > { %288 = vst [vmem:[#allocation2 + $0x328] sm:$0xff] %v2293_v0  ;;  %289 = vst [vmem:[#allocation2 + $0x260] sm:$0xff] %v2293_v0 }
  0x8c   : > { %290 = vst [vmem:[#allocation2 + $0x3b8] sm:$0xff] %v2293_v0  ;;  %291 = vst [vmem:[#allocation2 + $0x2b8] sm:$0xff] %v2293_v0 }
  0x8d   : > { %292 = vst [vmem:[#allocation2 + $0x248] sm:$0xff] %v2293_v0  ;;  %293 = vst [vmem:[#allocation2 + $0x40] sm:$0xff] %v2293_v0 }
  0x8e   : > { %294 = vst [vmem:[#allocation2 + $0x20] sm:$0xff] %v2293_v0  ;;  %295 = vst [vmem:[#allocation2 + $0xe8] sm:$0xff] %v2293_v0 }
  0x8f   : > { %296 = vst [vmem:[#allocation2 + $0x288] sm:$0xff] %v2293_v0  ;;  %297 = vst [vmem:[#allocation2 + $0x3a8] sm:$0xff] %v2293_v0 }
  0x90   : > { %298 = vst [vmem:[#allocation2 + $0x3c8] sm:$0xff] %v2293_v0  ;;  %299 = vst [vmem:[#allocation2 + $0x160] sm:$0xff] %v2293_v0 }
  0x91   : > { %300 = vst [vmem:[#allocation2 + $0x2c8] sm:$0xff] %v2293_v0  ;;  %301 = vst [vmem:[#allocation2 + $0x210] sm:$0xff] %v2293_v0 }
  0x92   : > { %302 = vst [vmem:[#allocation2 + $0x3d8] sm:$0xff] %v2293_v0  ;;  %303 = vst [vmem:[#allocation2 + $0x1e8] sm:$0xff] %v2293_v0 }
  0x93   : > { %304 = vst [vmem:[#allocation2 + $0x1b0] sm:$0xff] %v2293_v0  ;;  %305 = vst [vmem:[#allocation2 + $0x1c8] sm:$0xff] %v2293_v0 }
  0x94   : > { %306 = vst [vmem:[#allocation2 + $0x2d0] sm:$0xff] %v2293_v0  ;;  %307 = vst [vmem:[#allocation2 + $0x1d0] sm:$0xff] %v2293_v0 }
  0x95   : > { %308 = vst [vmem:[#allocation2 + $0x58] sm:$0xff] %v2293_v0  ;;  %309 = vst [vmem:[#allocation2 + $0x120] sm:$0xff] %v2293_v0 }
  0x96   : > { %310 = vst [vmem:[#allocation2 + $0x198] sm:$0xff] %v2293_v0  ;;  %311 = vst [vmem:[#allocation2 + $0x2e8] sm:$0xff] %v2293_v0 }
  0x97   : > { %312 = vst [vmem:[#allocation2 + $0x1f8] sm:$0xff] %v2293_v0  ;;  %313 = vst [vmem:[#allocation2 + $0x238] sm:$0xff] %v2293_v0 }
  0x98   : > { %314 = vst [vmem:[#allocation2 + $0x398] sm:$0xff] %v2293_v0  ;;  %315 = vst [vmem:[#allocation2 + $0x390] sm:$0xff] %v2293_v0 }
  0x99   : > { %316 = vst [vmem:[#allocation2 + $0x1a0] sm:$0xff] %v2293_v0  ;;  %317 = vst [vmem:[#allocation2 + $0xa8] sm:$0xff] %v2293_v0 }
  0x9a   : > { %318 = vst [vmem:[#allocation2 + $0x258] sm:$0xff] %v2293_v0  ;;  %319 = vst [vmem:[#allocation2 + $0x2d8] sm:$0xff] %v2293_v0 }
  0x9b   : > { %320 = vst [vmem:[#allocation2 + $0xf0] sm:$0xff] %v2293_v0  ;;  %321 = vst [vmem:[#allocation2 + $0x180] sm:$0xff] %v2293_v0 }
  0x9c   : > { %322 = vst [vmem:[#allocation2 + $0x170] sm:$0xff] %v2293_v0  ;;  %323 = vst [vmem:[#allocation2 + $0x3d0] sm:$0xff] %v2293_v0 }
  0x9d   : > { %324 = vst [vmem:[#allocation2 + $0x250] sm:$0xff] %v2293_v0  ;;  %325 = vst [vmem:[#allocation2 + $0x378] sm:$0xff] %v2293_v0 }
  0x9e   : > { %326 = vst [vmem:[#allocation2 + $0xb8] sm:$0xff] %v2293_v0  ;;  %327 = vst [vmem:[#allocation2 + $0x38] sm:$0xff] %v2293_v0 }
  0x9f   : > { %328 = vst [vmem:[#allocation2 + $0x78] sm:$0xff] %v2293_v0  ;;  %329 = vst [vmem:[#allocation2 + $0x308] sm:$0xff] %v2293_v0 }
  0xa0   : > { %330 = vst [vmem:[#allocation2 + $0x370] sm:$0xff] %v2293_v0  ;;  %331 = vst [vmem:[#allocation2 + $0xc8] sm:$0xff] %v2293_v0 }
  0xa1   : > { %332 = vst [vmem:[#allocation2 + $0x278] sm:$0xff] %v2293_v0  ;;  %333 = vst [vmem:[#allocation2 + $0x360] sm:$0xff] %v2293_v0 }
  0xa2   : > { %334 = vst [vmem:[#allocation2 + $0x228] sm:$0xff] %v2293_v0  ;;  %335 = vst [vmem:[#allocation2 + $0x348] sm:$0xff] %v2293_v0 }
  0xa3   : > { %336 = vst [vmem:[#allocation2 + $0x148] sm:$0xff] %v2293_v0  ;;  %337 = vst [vmem:[#allocation2 + $0xf8] sm:$0xff] %v2293_v0 }
  0xa4   : > { %338 = vst [vmem:[#allocation2 + $0x68] sm:$0xff] %v2293_v0  ;;  %339 = vst [vmem:[#allocation2] sm:$0xff] %v2293_v0 }
  0xa5   : > { %340 = vst [vmem:[#allocation2 + $0x298] sm:$0xff] %v2293_v0  ;;  %341 = vst [vmem:[#allocation2 + $0x270] sm:$0xff] %v2293_v0 }
  0xa6   : > { %342 = vst [vmem:[#allocation2 + $0x310] sm:$0xff] %v2293_v0  ;;  %343 = vst [vmem:[#allocation2 + $0x190] sm:$0xff] %v2293_v0 }
  0xa7 PF: > { %v344_v1 = vld [vmem:[%s2443_s26] sm:$0xff]  ;;  %v856_v3 = vlaneseq  ;;  %s2125_s12 = sshll.u32 %s2329_s13, 10  ;;  %v345_v6 = vld [vmem:[%s2443_s26 + $0x8] sm:$0xff]  ;;  %v346_v10 = vld [vmem:[%s2443_s26 + $0x10] sm:$0xff]  ;;  %p2126_p6 = scmp.ne.s32.totalorder %s2329_s13, 2 }
  0xa8   : > { %v472_v2 = vld [vmem:[%s2449_s7] sm:$0xff]  ;;  %v2587_v5 = vstv %s2125_s12  ;;  %v473_v7 = vld [vmem:[%s2449_s7 + $0x8] sm:$0xff]  ;;  %v474_v11 = vld [vmem:[%s2449_s7 + $0x10] sm:$0xff] }
  0xa9   : > { %v600_v4 = vsub.f32 %v344_v1, %v472_v2  ;;  %v2591_v8 = vshrl.u32 %v856_v3, 7  ;;  %v601_v9 = vsub.f32 %v345_v6, %v473_v7  ;;  %v602_v13 = vsub.f32 %v346_v10, %v474_v11  ;;  %v347_v14 = vld [vmem:[%s2443_s26 + $0x18] sm:$0xff]  ;;  %v348_v20 = vld [vmem:[%s2443_s26 + $0x20] sm:$0xff]  ;;  %v1371_v22 = vld [vmem:[#allocation2 + $0x2b0] sm:$0xff] }
  0xaa   : > { %v475_v15 = vld [vmem:[%s2449_s7 + $0x18] sm:$0xff]  ;;  %v476_v21 = vld [vmem:[%s2449_s7 + $0x20] sm:$0xff]  ;;  %v349_v30 = vld [vmem:[%s2443_s26 + $0x28] sm:$0xff] }
  0xab   : > { %v728_v12 = vmul.f32 %v600_v4, %v600_v4  ;;  %v987_v16 = vadd.s32 %v2587_v5, %v2591_v8  ;;  %v729_v17 = vmul.f32 %v601_v9, %v601_v9  ;;  %v858_v18 = vadd.s32 8, %v2591_v8  ;;  %v477_v31 = vld [vmem:[%s2449_s7 + $0x28] sm:$0xff]  ;;  %v1372_v33 = vld [vmem:[#allocation2 + $0x3b0] sm:$0xff]  ;;  %v1373_v34 = vld [vmem:[#allocation2 + $0xd8] sm:$0xff] }
  0xac   : > { %v859_v19 = vadd.s32 16, %v2591_v8  ;;  %v730_v23 = vmul.f32 %v602_v13, %v602_v13  ;;  %v603_v24 = vsub.f32 %v347_v14, %v475_v15  ;;  %v860_v25 = vadd.s32 24, %v2591_v8  ;;  %v1374_v39 = vld [vmem:[#allocation2 + $0x18] sm:$0xff]  ;;  %v1375_v41 = vld [vmem:[#allocation2 + $0x50] sm:$0xff]  ;;  %v352_v52 = vld [vmem:[%s2443_s26 + $0x40] sm:$0xff] }
  0xad   : > { %v604_v26 = vsub.f32 %v348_v20, %v476_v21  ;;  %vm1115_vm0 = vcmp.lt.s32.totalorder %v987_v16, 2344  ;;  %v988_v27 = vadd.s32 %v2587_v5, %v858_v18  ;;  %v861_v29 = vadd.s32 32, %v2591_v8  ;;  %v350_v42 = vld [vmem:[%s2443_s26 + $0x30] sm:$0xff]  ;;  %v351_v47 = vld [vmem:[%s2443_s26 + $0x38] sm:$0xff]  ;;  %v480_v53 = vld [vmem:[%s2449_s7 + $0x40] sm:$0xff] }
  0xae   : > { %v989_v28 = vadd.s32 %v2587_v5, %v859_v19  ;;  %v1243_v32 = vsel %vm1115_vm0, %v728_v12, 0.0  ;;  %v731_v35 = vmul.f32 %v603_v24, %v603_v24  ;;  %v990_v36 = vadd.s32 %v2587_v5, %v860_v25  ;;  %v478_v46 = vld [vmem:[%s2449_s7 + $0x30] sm:$0xff]  ;;  %v479_v48 = vld [vmem:[%s2449_s7 + $0x38] sm:$0xff]  ;;  %v353_v58 = vld [vmem:[%s2443_s26 + $0x48] sm:$0xff] }
  0xaf   : > { %v732_v37 = vmul.f32 %v604_v26, %v604_v26  ;;  %v1499_v38 = vadd.f32 %v1371_v22, %v1243_v32  ;;  %vm1116_vm1 = vcmp.lt.s32.totalorder %v988_v27, 2344  ;;  %v991_v40 = vadd.s32 %v2587_v5, %v861_v29  ;;  %v481_v59 = vld [vmem:[%s2449_s7 + $0x48] sm:$0xff]  ;;  %v1377_v11 = vld [vmem:[#allocation2 + $0x330] sm:$0xff]  ;;  %v1379_v16 = vld [vmem:[#allocation2 + $0x380] sm:$0xff] }
  0xb0   : > { %vm1117_vm2 = vcmp.lt.s32.totalorder %v989_v28, 2344  ;;  %v1244_v43 = vsel %vm1116_vm1, %v729_v17, 0.0  ;;  %vm1118_vm3 = vcmp.lt.s32.totalorder %v990_v36, 2344  ;;  %v605_v45 = vsub.f32 %v349_v30, %v477_v31  ;;  %v1376_v4 = vld [vmem:[#allocation2 + $0x368] sm:$0xff]  ;;  %v354_v20 = vld [vmem:[%s2443_s26 + $0x50] sm:$0xff]  ;;  %v355_v22 = vld [vmem:[%s2443_s26 + $0x58] sm:$0xff] }
  0xb1   : > { %v1245_v44 = vsel %vm1117_vm2, %v730_v23, 0.0  ;;  %1627 = vst [vmem:[#allocation2 + $0x2b0] sm:$0xff] %v1499_v38  ;;  %v1500_v49 = vadd.f32 %v1372_v33, %v1244_v43  ;;  %v1246_v51 = vsel %vm1118_vm3, %v731_v35, 0.0  ;;  %vm1119_vm4 = vcmp.lt.s32.totalorder %v991_v40, 2344  ;;  %v1378_v13 = vld [vmem:[#allocation2 + $0x48] sm:$0xff]  ;;  %v482_v21 = vld [vmem:[%s2449_s7 + $0x50] sm:$0xff] }
  0xb2   : > { %v1501_v50 = vadd.f32 %v1373_v34, %v1245_v44  ;;  %v1502_v54 = vadd.f32 %v1374_v39, %v1246_v51  ;;  %v1247_v55 = vsel %vm1119_vm4, %v732_v37, 0.0  ;;  %v733_v56 = vmul.f32 %v605_v45, %v605_v45  ;;  %v483_v25 = vld [vmem:[%s2449_s7 + $0x58] sm:$0xff]  ;;  %v356_v26 = vld [vmem:[%s2443_s26 + $0x60] sm:$0xff]  ;;  %v1380_v34 = vld [vmem:[#allocation2 + $0x110] sm:$0xff] }
  0xb3   : > { %v862_v57 = vadd.s32 40, %v2591_v8  ;;  %1628 = vst [vmem:[#allocation2 + $0x3b0] sm:$0xff] %v1500_v49  ;;  %v1503_v60 = vadd.f32 %v1375_v41, %v1247_v55  ;;  %v606_v61 = vsub.f32 %v350_v42, %v478_v46  ;;  %v863_v62 = vadd.s32 48, %v2591_v8  ;;  %v484_v27 = vld [vmem:[%s2449_s7 + $0x60] sm:$0xff]  ;;  %v357_v40 = vld [vmem:[%s2443_s26 + $0x68] sm:$0xff]  ;;  %v358_v46 = vld [vmem:[%s2443_s26 + $0x70] sm:$0xff] }
  0xb4   : > { %1629 = vst [vmem:[#allocation2 + $0xd8] sm:$0xff] %v1501_v50  ;;  %v607_v63 = vsub.f32 %v351_v47, %v479_v48  ;;  %1630 = vst [vmem:[#allocation2 + $0x18] sm:$0xff] %v1502_v54  ;;  %v864_v1 = vadd.s32 56, %v2591_v8  ;;  %v608_v2 = vsub.f32 %v352_v52, %v480_v53  ;;  %v865_v3 = vadd.s32 64, %v2591_v8  ;;  %v485_v41 = vld [vmem:[%s2449_s7 + $0x68] sm:$0xff]  ;;  %v486_v47 = vld [vmem:[%s2449_s7 + $0x70] sm:$0xff] }
  0xb5   : > { %v992_v0 = vadd.s32 %v2587_v5, %v862_v57  ;;  %1631 = vst [vmem:[#allocation2 + $0x50] sm:$0xff] %v1503_v60  ;;  %v734_v6 = vmul.f32 %v606_v61, %v606_v61  ;;  %v993_v7 = vadd.s32 %v2587_v5, %v863_v62  ;;  %v609_v10 = vsub.f32 %v353_v58, %v481_v59  ;;  %v1381_v49 = vld [vmem:[#allocation2 + $0x118] sm:$0xff]  ;;  %v1383_v55 = vld [vmem:[#allocation2 + $0x320] sm:$0xff] }
  0xb6   : > { %v735_v9 = vmul.f32 %v607_v63, %v607_v63  ;;  %v994_v12 = vadd.s32 %v2587_v5, %v864_v1  ;;  %v736_v14 = vmul.f32 %v608_v2, %v608_v2  ;;  %v995_v15 = vadd.s32 %v2587_v5, %v865_v3  ;;  %v1382_v53 = vld [vmem:[#allocation2 + $0x98] sm:$0xff]  ;;  %v360_v63 = vld [vmem:[%s2443_s26 + $0x80] sm:$0xff] }
  0xb7   : > { %vm1120_vm5 = vcmp.lt.s32.totalorder %v992_v0, 2344  ;;  %vm1121_vm6 = vcmp.lt.s32.totalorder %v993_v7, 2344  ;;  %v737_v18 = vmul.f32 %v609_v10, %v609_v10  ;;  %v866_v19 = vadd.s32 72, %v2591_v8  ;;  %v359_v61 = vld [vmem:[%s2443_s26 + $0x78] sm:$0xff]  ;;  %v488_v3 = vld [vmem:[%s2449_s7 + $0x80] sm:$0xff] }
  0xb8   : > { %v1248_v17 = vsel %vm1120_vm5, %v733_v56, 0.0  ;;  %v1249_v24 = vsel %vm1121_vm6, %v734_v6, 0.0  ;;  %vm1122_vm7 = vcmp.lt.s32.totalorder %v994_v12, 2344  ;;  %vm1123_vm8 = vcmp.lt.s32.totalorder %v995_v15, 2344  ;;  %v487_v62 = vld [vmem:[%s2449_s7 + $0x78] sm:$0xff]  ;;  %v489_v6 = vld [vmem:[%s2449_s7 + $0x88] sm:$0xff] }
  0xb9   : > { %v1504_v23 = vadd.f32 %v1376_v4, %v1248_v17  ;;  %v1505_v28 = vadd.f32 %v1377_v11, %v1249_v24  ;;  %v1250_v29 = vsel %vm1122_vm7, %v735_v9, 0.0  ;;  %v1251_v30 = vsel %vm1123_vm8, %v736_v14, 0.0  ;;  %v361_v4 = vld [vmem:[%s2443_s26 + $0x88] sm:$0xff]  ;;  %v362_v24 = vld [vmem:[%s2443_s26 + $0x90] sm:$0xff] }
  0xba   : > { %v996_v31 = vadd.s32 %v2587_v5, %v866_v19  ;;  %v1506_v32 = vadd.f32 %v1378_v13, %v1250_v29  ;;  %v1507_v33 = vadd.f32 %v1379_v16, %v1251_v30  ;;  %v610_v35 = vsub.f32 %v354_v20, %v482_v21  ;;  %v1384_v13 = vld [vmem:[#allocation2 + $0x150] sm:$0xff]  ;;  %v1385_v17 = vld [vmem:[#allocation2 + $0x108] sm:$0xff] }
  0xbb   : > { %1632 = vst [vmem:[#allocation2 + $0x368] sm:$0xff] %v1504_v23  ;;  %v867_v36 = vadd.s32 80, %v2591_v8  ;;  %1633 = vst [vmem:[#allocation2 + $0x330] sm:$0xff] %v1505_v28  ;;  %v611_v37 = vsub.f32 %v355_v22, %v483_v25  ;;  %v868_v38 = vadd.s32 88, %v2591_v8  ;;  %v612_v39 = vsub.f32 %v356_v26, %v484_v27  ;;  %v490_v25 = vld [vmem:[%s2449_s7 + $0x90] sm:$0xff]  ;;  %v1386_v28 = vld [vmem:[#allocation2 + $0x60] sm:$0xff] }
  0xbc   : > { %vm1124_vm9 = vcmp.lt.s32.totalorder %v996_v31, 2344  ;;  %1634 = vst [vmem:[#allocation2 + $0x48] sm:$0xff] %v1506_v32  ;;  %1635 = vst [vmem:[#allocation2 + $0x380] sm:$0xff] %v1507_v33  ;;  %v738_v43 = vmul.f32 %v610_v35, %v610_v35  ;;  %v869_v45 = vadd.s32 96, %v2591_v8  ;;  %v613_v56 = vsub.f32 %v357_v40, %v485_v41  ;;  %v363_v31 = vld [vmem:[%s2443_s26 + $0x98] sm:$0xff]  ;;  %v364_v40 = vld [vmem:[%s2443_s26 + $0xa0] sm:$0xff] }
  0xbd   : > { %v1252_v42 = vsel %vm1124_vm9, %v737_v18, 0.0  ;;  %v997_v44 = vadd.s32 %v2587_v5, %v867_v36  ;;  %v739_v50 = vmul.f32 %v611_v37, %v611_v37  ;;  %v998_v51 = vadd.s32 %v2587_v5, %v868_v38  ;;  %v491_v32 = vld [vmem:[%s2449_s7 + $0x98] sm:$0xff]  ;;  %v492_v41 = vld [vmem:[%s2449_s7 + $0xa0] sm:$0xff] }
  0xbe   : > { %v1508_v48 = vadd.f32 %v1380_v34, %v1252_v42  ;;  %v740_v52 = vmul.f32 %v612_v39, %v612_v39  ;;  %v999_v54 = vadd.s32 %v2587_v5, %v869_v45  ;;  %v870_v57 = vadd.s32 104, %v2591_v8  ;;  %v1387_v34 = vld [vmem:[#allocation2 + $0x2e0] sm:$0xff] }
  0xbf   : > { %vm1125_vm10 = vcmp.lt.s32.totalorder %v997_v44, 2344  ;;  %vm1126_vm11 = vcmp.lt.s32.totalorder %v998_v51, 2344  ;;  %v614_v59 = vsub.f32 %v358_v46, %v486_v47  ;;  %v871_v60 = vadd.s32 112, %v2591_v8  ;;  %v365_v46 = vld [vmem:[%s2443_s26 + $0xa8] sm:$0xff] }
  0xc0   : > { %1636 = vst [vmem:[#allocation2 + $0x110] sm:$0xff] %v1508_v48  ;;  %v1253_v58 = vsel %vm1125_vm10, %v738_v43, 0.0  ;;  %v1254_v1 = vsel %vm1126_vm11, %v739_v50, 0.0  ;;  %vm1127_vm12 = vcmp.lt.s32.totalorder %v999_v54, 2344  ;;  %v741_v2 = vmul.f32 %v613_v56, %v613_v56  ;;  %v493_v47 = vld [vmem:[%s2449_s7 + $0xa8] sm:$0xff] }
  0xc1   : > { %v1509_v0 = vadd.f32 %v1381_v49, %v1253_v58  ;;  %v1510_v7 = vadd.f32 %v1382_v53, %v1254_v1  ;;  %v1255_v9 = vsel %vm1127_vm12, %v740_v52, 0.0  ;;  %v1000_v10 = vadd.s32 %v2587_v5, %v870_v57  ;;  %v1388_v49 = vld [vmem:[#allocation2 + $0x388] sm:$0xff]  ;;  %v1389_v53 = vld [vmem:[#allocation2 + $0x338] sm:$0xff] }
  0xc2   : > { %v742_v11 = vmul.f32 %v614_v59, %v614_v59  ;;  %v1511_v12 = vadd.f32 %v1383_v55, %v1255_v9  ;;  %v1001_v14 = vadd.s32 %v2587_v5, %v871_v60  ;;  %v615_v15 = vsub.f32 %v359_v61, %v487_v62  ;;  %v366_v60 = vld [vmem:[%s2443_s26 + $0xb0] sm:$0xff] }
  0xc3   : > { %1637 = vst [vmem:[#allocation2 + $0x118] sm:$0xff] %v1509_v0  ;;  %v872_v16 = vadd.s32 120, %v2591_v8  ;;  %1638 = vst [vmem:[#allocation2 + $0x98] sm:$0xff] %v1510_v7  ;;  %vm1128_vm13 = vcmp.lt.s32.totalorder %v1000_v10, 2344  ;;  %v616_v18 = vsub.f32 %v360_v63, %v488_v3  ;;  %v873_v19 = vadd.s32 128, %v2591_v8  ;;  %v494_v61 = vld [vmem:[%s2449_s7 + $0xb0] sm:$0xff] }
  0xc4   : > { %v617_v20 = vsub.f32 %v361_v4, %v489_v6  ;;  %1639 = vst [vmem:[#allocation2 + $0x320] sm:$0xff] %v1511_v12  ;;  %v1256_v21 = vsel %vm1128_vm13, %v741_v2, 0.0  ;;  %vm1129_vm14 = vcmp.lt.s32.totalorder %v1001_v14, 2344  ;;  %v743_v22 = vmul.f32 %v615_v15, %v615_v15  ;;  %v1390_v0 = vld [vmem:[#allocation2 + $0x340] sm:$0xff]  ;;  %v367_v3 = vld [vmem:[%s2443_s26 + $0xb8] sm:$0xff] }
  0xc5   : > { %v1002_v23 = vadd.s32 %v2587_v5, %v872_v16  ;;  %v1512_v26 = vadd.f32 %v1384_v13, %v1256_v21  ;;  %v1257_v27 = vsel %vm1129_vm14, %v742_v11, 0.0  ;;  %v744_v29 = vmul.f32 %v616_v18, %v616_v18  ;;  %v495_v4 = vld [vmem:[%s2449_s7 + $0xb8] sm:$0xff]  ;;  %v1391_v7 = vld [vmem:[#allocation2 + $0x80] sm:$0xff]  ;;  %v497_v21 = vld [vmem:[%s2449_s7 + $0xc8] sm:$0xff] }
  0xc6   : > { %v1003_v30 = vadd.s32 %v2587_v5, %v873_v19  ;;  %v1513_v33 = vadd.f32 %v1385_v17, %v1257_v27  ;;  %v745_v35 = vmul.f32 %v617_v20, %v617_v20  ;;  %v874_v36 = vadd.s32 136, %v2591_v8  ;;  %v368_v14 = vld [vmem:[%s2443_s26 + $0xc0] sm:$0xff]  ;;  %v369_v20 = vld [vmem:[%s2443_s26 + $0xc8] sm:$0xff]  ;;  %v1393_v27 = vld [vmem:[#allocation2 + $0x1b8] sm:$0xff] }
  0xc7   : > { %vm1130_vm15 = vcmp.lt.s32.totalorder %v1002_v23, 2344  ;;  %1640 = vst [vmem:[#allocation2 + $0x150] sm:$0xff] %v1512_v26  ;;  %v618_v38 = vsub.f32 %v362_v24, %v490_v25  ;;  %v875_v39 = vadd.s32 144, %v2591_v8  ;;  %v619_v45 = vsub.f32 %v363_v31, %v491_v32  ;;  %v496_v15 = vld [vmem:[%s2449_s7 + $0xc0] sm:$0xff]  ;;  %v1392_v23 = vld [vmem:[#allocation2 + $0x1a8] sm:$0xff] }
  0xc8   : > { %v1258_v37 = vsel %vm1130_vm15, %v743_v22, 0.0  ;;  %vm1131_vm0 = vcmp.lt.s32.totalorder %v1003_v30, 2344  ;;  %1641 = vst [vmem:[#allocation2 + $0x108] sm:$0xff] %v1513_v33  ;;  %v1004_v44 = vadd.s32 %v2587_v5, %v874_v36  ;;  %v876_v52 = vadd.s32 152, %v2591_v8 }
  0xc9   : > { %v1514_v42 = vadd.f32 %v1386_v28, %v1258_v37  ;;  %v1259_v43 = vsel %vm1131_vm0, %v744_v29, 0.0  ;;  %v746_v50 = vmul.f32 %v618_v38, %v618_v38  ;;  %v1005_v51 = vadd.s32 %v2587_v5, %v875_v39  ;;  %v1394_v38 = vld [vmem:[#allocation2 + $0x168] sm:$0xff] }
  0xca   : > { %v1515_v48 = vadd.f32 %v1387_v34, %v1259_v43  ;;  %vm1132_vm1 = vcmp.lt.s32.totalorder %v1004_v44, 2344  ;;  %v747_v54 = vmul.f32 %v619_v45, %v619_v45  ;;  %v620_v55 = vsub.f32 %v364_v40, %v492_v41  ;;  %v370_v34 = vld [vmem:[%s2443_s26 + $0xd0] sm:$0xff]  ;;  %v371_v41 = vld [vmem:[%s2443_s26 + $0xd8] sm:$0xff]  ;;  %v1395_v44 = vld [vmem:[#allocation2 + $0x3e8] sm:$0xff] }
  0xcb   : > { %1642 = vst [vmem:[#allocation2 + $0x60] sm:$0xff] %v1514_v42  ;;  %v877_v56 = vadd.s32 160, %v2591_v8  ;;  %v1260_v57 = vsel %vm1132_vm1, %v745_v35, 0.0  ;;  %vm1133_vm2 = vcmp.lt.s32.totalorder %v1005_v51, 2344  ;;  %v1006_v58 = vadd.s32 %v2587_v5, %v876_v52  ;;  %v498_v35 = vld [vmem:[%s2449_s7 + $0xd0] sm:$0xff]  ;;  %v499_v42 = vld [vmem:[%s2449_s7 + $0xd8] sm:$0xff] }
  0xcc   : > { %1643 = vst [vmem:[#allocation2 + $0x2e0] sm:$0xff] %v1515_v48  ;;  %v621_v59 = vsub.f32 %v365_v46, %v493_v47  ;;  %v1516_v62 = vadd.f32 %v1388_v49, %v1260_v57  ;;  %v1261_v63 = vsel %vm1133_vm2, %v746_v50, 0.0  ;;  %v748_v1 = vmul.f32 %v620_v55, %v620_v55  ;;  %v372_v50 = vld [vmem:[%s2443_s26 + $0xe0] sm:$0xff]  ;;  %v501_v57 = vld [vmem:[%s2449_s7 + $0xe8] sm:$0xff] }
  0xcd   : > { %v1007_v2 = vadd.s32 %v2587_v5, %v877_v56  ;;  %v1517_v6 = vadd.f32 %v1389_v53, %v1261_v63  ;;  %vm1134_vm3 = vcmp.lt.s32.totalorder %v1006_v58, 2344  ;;  %v878_v10 = vadd.s32 168, %v2591_v8  ;;  %v500_v51 = vld [vmem:[%s2449_s7 + $0xe0] sm:$0xff]  ;;  %v373_v56 = vld [vmem:[%s2443_s26 + $0xe8] sm:$0xff]  ;;  %v1397_v63 = vld [vmem:[#allocation2 + $0x290] sm:$0xff] }
  0xce   : > { %v749_v9 = vmul.f32 %v621_v59, %v621_v59  ;;  %1644 = vst [vmem:[#allocation2 + $0x388] sm:$0xff] %v1516_v62  ;;  %v1262_v11 = vsel %vm1134_vm3, %v747_v54, 0.0  ;;  %v622_v12 = vsub.f32 %v366_v60, %v494_v61  ;;  %v879_v13 = vadd.s32 176, %v2591_v8  ;;  %v1396_v59 = vld [vmem:[#allocation2 + $0x2f8] sm:$0xff] }
  0xcf   : > { %vm1135_vm4 = vcmp.lt.s32.totalorder %v1007_v2, 2344  ;;  %1645 = vst [vmem:[#allocation2 + $0x338] sm:$0xff] %v1517_v6  ;;  %v1518_v16 = vadd.f32 %v1390_v0, %v1262_v11  ;;  %v1008_v18 = vadd.s32 %v2587_v5, %v878_v10  ;;  %v623_v19 = vsub.f32 %v367_v3, %v495_v4 }
  0xd0   : > { %v1263_v17 = vsel %vm1135_vm4, %v748_v1, 0.0  ;;  %v750_v24 = vmul.f32 %v622_v12, %v622_v12  ;;  %v1009_v25 = vadd.s32 %v2587_v5, %v879_v13  ;;  %v880_v26 = vadd.s32 184, %v2591_v8  ;;  %v1398_v12 = vld [vmem:[#allocation2 + $0x28] sm:$0xff] }
  0xd1   : > { %v1519_v22 = vadd.f32 %v1391_v7, %v1263_v17  ;;  %1646 = vst [vmem:[#allocation2 + $0x340] sm:$0xff] %v1518_v16  ;;  %vm1136_vm5 = vcmp.lt.s32.totalorder %v1008_v18, 2344  ;;  %v751_v28 = vmul.f32 %v623_v19, %v623_v19  ;;  %v624_v29 = vsub.f32 %v368_v14, %v496_v15  ;;  %v374_v7 = vld [vmem:[%s2443_s26 + $0xf0] sm:$0xff]  ;;  %v375_v15 = vld [vmem:[%s2443_s26 + $0xf8] sm:$0xff] }
  0xd2   : > { %v881_v30 = vadd.s32 192, %v2591_v8  ;;  %v1264_v31 = vsel %vm1136_vm5, %v749_v9, 0.0  ;;  %vm1137_vm6 = vcmp.lt.s32.totalorder %v1009_v25, 2344  ;;  %v1010_v32 = vadd.s32 %v2587_v5, %v880_v26  ;;  %v502_v9 = vld [vmem:[%s2449_s7 + $0xf0] sm:$0xff]  ;;  %v503_v16 = vld [vmem:[%s2449_s7 + $0xf8] sm:$0xff]  ;;  %v504_v25 = vld [vmem:[%s2449_s7 + $0x100] sm:$0xff] }
  0xd3   : > { %1647 = vst [vmem:[#allocation2 + $0x80] sm:$0xff] %v1519_v22  ;;  %v625_v33 = vsub.f32 %v369_v20, %v497_v21  ;;  %v1520_v36 = vadd.f32 %v1392_v23, %v1264_v31  ;;  %v1265_v37 = vsel %vm1137_vm6, %v750_v24, 0.0  ;;  %v752_v39 = vmul.f32 %v624_v29, %v624_v29  ;;  %v1399_v18 = vld [vmem:[#allocation2 + $0x138] sm:$0xff]  ;;  %v376_v24 = vld [vmem:[%s2443_s26 + $0x100] sm:$0xff]  ;;  %v505_v31 = vld [vmem:[%s2449_s7 + $0x108] sm:$0xff] }
  0xd4   : > { %v1011_v40 = vadd.s32 %v2587_v5, %v881_v30  ;;  %v1521_v43 = vadd.f32 %v1393_v27, %v1265_v37  ;;  %vm1138_vm7 = vcmp.lt.s32.totalorder %v1010_v32, 2344  ;;  %v882_v46 = vadd.s32 200, %v2591_v8  ;;  %v377_v30 = vld [vmem:[%s2443_s26 + $0x108] sm:$0xff]  ;;  %v1401_v37 = vld [vmem:[#allocation2 + $0x1c0] sm:$0xff] }
  0xd5   : > { %v753_v45 = vmul.f32 %v625_v33, %v625_v33  ;;  %1648 = vst [vmem:[#allocation2 + $0x1a8] sm:$0xff] %v1520_v36  ;;  %v1266_v47 = vsel %vm1138_vm7, %v751_v28, 0.0  ;;  %v626_v48 = vsub.f32 %v370_v34, %v498_v35  ;;  %v883_v49 = vadd.s32 208, %v2591_v8  ;;  %v1400_v33 = vld [vmem:[#allocation2 + $0xc0] sm:$0xff] }
  0xd6   : > { %vm1139_vm8 = vcmp.lt.s32.totalorder %v1011_v40, 2344  ;;  %1649 = vst [vmem:[#allocation2 + $0x1b8] sm:$0xff] %v1521_v43  ;;  %v1522_v52 = vadd.f32 %v1394_v38, %v1266_v47  ;;  %v1012_v54 = vadd.s32 %v2587_v5, %v882_v46  ;;  %v627_v55 = vsub.f32 %v371_v41, %v499_v42 }
  0xd7   : > { %v1267_v53 = vsel %vm1139_vm8, %v752_v39, 0.0  ;;  %v754_v60 = vmul.f32 %v626_v48, %v626_v48  ;;  %v1013_v61 = vadd.s32 %v2587_v5, %v883_v49  ;;  %v884_v62 = vadd.s32 216, %v2591_v8  ;;  %v1402_v48 = vld [vmem:[#allocation2 + $0x280] sm:$0xff] }
  0xd8   : > { %v1523_v58 = vadd.f32 %v1395_v44, %v1267_v53  ;;  %1650 = vst [vmem:[#allocation2 + $0x168] sm:$0xff] %v1522_v52  ;;  %vm1140_vm9 = vcmp.lt.s32.totalorder %v1012_v54, 2344  ;;  %v755_v0 = vmul.f32 %v627_v55, %v627_v55  ;;  %v628_v1 = vsub.f32 %v372_v50, %v500_v51  ;;  %v378_v44 = vld [vmem:[%s2443_s26 + $0x110] sm:$0xff]  ;;  %v379_v51 = vld [vmem:[%s2443_s26 + $0x118] sm:$0xff]  ;;  %v1403_v54 = vld [vmem:[#allocation2 + $0x100] sm:$0xff] }
  0xd9   : > { %v885_v2 = vadd.s32 224, %v2591_v8  ;;  %v1268_v3 = vsel %vm1140_vm9, %v753_v45, 0.0  ;;  %vm1141_vm10 = vcmp.lt.s32.totalorder %v1013_v61, 2344  ;;  %v1014_v4 = vadd.s32 %v2587_v5, %v884_v62  ;;  %v506_v45 = vld [vmem:[%s2449_s7 + $0x110] sm:$0xff]  ;;  %v507_v52 = vld [vmem:[%s2449_s7 + $0x118] sm:$0xff]  ;;  %v508_v61 = vld [vmem:[%s2449_s7 + $0x120] sm:$0xff] }
  0xda   : > { %1651 = vst [vmem:[#allocation2 + $0x3e8] sm:$0xff] %v1523_v58  ;;  %v629_v6 = vsub.f32 %v373_v56, %v501_v57  ;;  %v1524_v10 = vadd.f32 %v1396_v59, %v1268_v3  ;;  %v1269_v11 = vsel %vm1141_vm10, %v754_v60, 0.0  ;;  %v756_v13 = vmul.f32 %v628_v1, %v628_v1  ;;  %v380_v60 = vld [vmem:[%s2443_s26 + $0x120] sm:$0xff]  ;;  %v509_v3 = vld [vmem:[%s2449_s7 + $0x128] sm:$0xff] }
  0xdb   : > { %v1015_v14 = vadd.s32 %v2587_v5, %v885_v2  ;;  %v1525_v17 = vadd.f32 %v1397_v63, %v1269_v11  ;;  %vm1142_vm11 = vcmp.lt.s32.totalorder %v1014_v4, 2344  ;;  %v886_v20 = vadd.s32 232, %v2591_v8  ;;  %v381_v2 = vld [vmem:[%s2443_s26 + $0x128] sm:$0xff]  ;;  %v1405_v11 = vld [vmem:[#allocation2 + $0x158] sm:$0xff] }
  0xdc   : > { %v757_v19 = vmul.f32 %v629_v6, %v629_v6  ;;  %1652 = vst [vmem:[#allocation2 + $0x2f8] sm:$0xff] %v1524_v10  ;;  %v1270_v21 = vsel %vm1142_vm11, %v755_v0, 0.0  ;;  %v630_v22 = vsub.f32 %v374_v7, %v502_v9  ;;  %v887_v23 = vadd.s32 240, %v2591_v8  ;;  %v1404_v6 = vld [vmem:[#allocation2 + $0x3c0] sm:$0xff] }
  0xdd   : > { %vm1143_vm12 = vcmp.lt.s32.totalorder %v1015_v14, 2344  ;;  %1653 = vst [vmem:[#allocation2 + $0x290] sm:$0xff] %v1525_v17  ;;  %v1526_v26 = vadd.f32 %v1398_v12, %v1270_v21  ;;  %v1016_v28 = vadd.s32 %v2587_v5, %v886_v20  ;;  %v631_v29 = vsub.f32 %v375_v15, %v503_v16 }
  0xde   : > { %v1271_v27 = vsel %vm1143_vm12, %v756_v13, 0.0  ;;  %v758_v34 = vmul.f32 %v630_v22, %v630_v22  ;;  %v1017_v35 = vadd.s32 %v2587_v5, %v887_v23  ;;  %v888_v36 = vadd.s32 248, %v2591_v8  ;;  %v1406_v22 = vld [vmem:[#allocation2 + $0x3e0] sm:$0xff] }
  0xdf   : > { %v1527_v32 = vadd.f32 %v1399_v18, %v1271_v27  ;;  %1654 = vst [vmem:[#allocation2 + $0x28] sm:$0xff] %v1526_v26  ;;  %vm1144_vm13 = vcmp.lt.s32.totalorder %v1016_v28, 2344  ;;  %v759_v38 = vmul.f32 %v631_v29, %v631_v29  ;;  %v632_v39 = vsub.f32 %v376_v24, %v504_v25  ;;  %v382_v18 = vld [vmem:[%s2443_s26 + $0x130] sm:$0xff]  ;;  %v383_v25 = vld [vmem:[%s2443_s26 + $0x138] sm:$0xff] }
  0xe0   : > { %v889_v40 = vadd.s32 256, %v2591_v8  ;;  %v1272_v41 = vsel %vm1144_vm13, %v757_v19, 0.0  ;;  %vm1145_vm14 = vcmp.lt.s32.totalorder %v1017_v35, 2344  ;;  %v1018_v42 = vadd.s32 %v2587_v5, %v888_v36  ;;  %v510_v19 = vld [vmem:[%s2449_s7 + $0x130] sm:$0xff]  ;;  %v511_v26 = vld [vmem:[%s2449_s7 + $0x138] sm:$0xff]  ;;  %v512_v35 = vld [vmem:[%s2449_s7 + $0x140] sm:$0xff] }
  0xe1   : > { %1655 = vst [vmem:[#allocation2 + $0x138] sm:$0xff] %v1527_v32  ;;  %v633_v43 = vsub.f32 %v377_v30, %v505_v31  ;;  %v1528_v46 = vadd.f32 %v1400_v33, %v1272_v41  ;;  %v1273_v47 = vsel %vm1145_vm14, %v758_v34, 0.0  ;;  %v760_v49 = vmul.f32 %v632_v39, %v632_v39  ;;  %v1407_v28 = vld [vmem:[#allocation2 + $0x218] sm:$0xff]  ;;  %v384_v34 = vld [vmem:[%s2443_s26 + $0x140] sm:$0xff]  ;;  %v513_v41 = vld [vmem:[%s2449_s7 + $0x148] sm:$0xff] }
  0xe2   : > { %v1019_v50 = vadd.s32 %v2587_v5, %v889_v40  ;;  %v1529_v53 = vadd.f32 %v1401_v37, %v1273_v47  ;;  %vm1146_vm15 = vcmp.lt.s32.totalorder %v1018_v42, 2344  ;;  %v890_v56 = vadd.s32 264, %v2591_v8  ;;  %v385_v40 = vld [vmem:[%s2443_s26 + $0x148] sm:$0xff] }
  0xe3   : > { %v761_v55 = vmul.f32 %v633_v43, %v633_v43  ;;  %1656 = vst [vmem:[#allocation2 + $0xc0] sm:$0xff] %v1528_v46  ;;  %v1274_v57 = vsel %vm1146_vm15, %v759_v38, 0.0  ;;  %v634_v58 = vsub.f32 %v378_v44, %v506_v45  ;;  %v891_v59 = vadd.s32 272, %v2591_v8  ;;  %v1408_v43 = vld [vmem:[#allocation2 + $0x3f8] sm:$0xff]  ;;  %v1409_v47 = vld [vmem:[#allocation2 + $0x8] sm:$0xff] }
  0xe4   : > { %vm1147_vm0 = vcmp.lt.s32.totalorder %v1019_v50, 2344  ;;  %1657 = vst [vmem:[#allocation2 + $0x1c0] sm:$0xff] %v1529_v53  ;;  %v1530_v62 = vadd.f32 %v1402_v48, %v1274_v57  ;;  %v1020_v0 = vadd.s32 %v2587_v5, %v890_v56  ;;  %v635_v1 = vsub.f32 %v379_v51, %v507_v52 }
  0xe5   : > { %v1275_v63 = vsel %vm1147_vm0, %v760_v49, 0.0  ;;  %v762_v7 = vmul.f32 %v634_v58, %v634_v58  ;;  %v1021_v9 = vadd.s32 %v2587_v5, %v891_v59  ;;  %v892_v10 = vadd.s32 280, %v2591_v8  ;;  %v1410_v58 = vld [vmem:[#allocation2 + $0x128] sm:$0xff] }
  0xe6   : > { %v1531_v4 = vadd.f32 %v1403_v54, %v1275_v63  ;;  %1658 = vst [vmem:[#allocation2 + $0x280] sm:$0xff] %v1530_v62  ;;  %vm1148_vm1 = vcmp.lt.s32.totalorder %v1020_v0, 2344  ;;  %v763_v12 = vmul.f32 %v635_v1, %v635_v1  ;;  %v636_v13 = vsub.f32 %v380_v60, %v508_v61  ;;  %v386_v54 = vld [vmem:[%s2443_s26 + $0x150] sm:$0xff]  ;;  %v387_v61 = vld [vmem:[%s2443_s26 + $0x158] sm:$0xff]  ;;  %v1411_v0 = vld [vmem:[#allocation2 + $0x2a0] sm:$0xff] }
  0xe7   : > { %v893_v14 = vadd.s32 288, %v2591_v8  ;;  %v1276_v15 = vsel %vm1148_vm1, %v761_v55, 0.0  ;;  %vm1149_vm2 = vcmp.lt.s32.totalorder %v1021_v9, 2344  ;;  %v1022_v16 = vadd.s32 %v2587_v5, %v892_v10  ;;  %v514_v55 = vld [vmem:[%s2449_s7 + $0x150] sm:$0xff]  ;;  %v515_v62 = vld [vmem:[%s2449_s7 + $0x158] sm:$0xff]  ;;  %v516_v9 = vld [vmem:[%s2449_s7 + $0x160] sm:$0xff] }
  0xe8   : > { %1659 = vst [vmem:[#allocation2 + $0x100] sm:$0xff] %v1531_v4  ;;  %v637_v17 = vsub.f32 %v381_v2, %v509_v3  ;;  %v1532_v20 = vadd.f32 %v1404_v6, %v1276_v15  ;;  %v1277_v21 = vsel %vm1149_vm2, %v762_v7, 0.0  ;;  %v764_v23 = vmul.f32 %v636_v13, %v636_v13  ;;  %v388_v7 = vld [vmem:[%s2443_s26 + $0x160] sm:$0xff]  ;;  %v517_v15 = vld [vmem:[%s2449_s7 + $0x168] sm:$0xff] }
  0xe9   : > { %v1023_v24 = vadd.s32 %v2587_v5, %v893_v14  ;;  %v1533_v27 = vadd.f32 %v1405_v11, %v1277_v21  ;;  %vm1150_vm3 = vcmp.lt.s32.totalorder %v1022_v16, 2344  ;;  %v894_v30 = vadd.s32 296, %v2591_v8  ;;  %v389_v14 = vld [vmem:[%s2443_s26 + $0x168] sm:$0xff]  ;;  %v1413_v21 = vld [vmem:[#allocation2 + $0xa0] sm:$0xff] }
  0xea   : > { %v765_v29 = vmul.f32 %v637_v17, %v637_v17  ;;  %1660 = vst [vmem:[#allocation2 + $0x3c0] sm:$0xff] %v1532_v20  ;;  %v1278_v31 = vsel %vm1150_vm3, %v763_v12, 0.0  ;;  %v638_v32 = vsub.f32 %v382_v18, %v510_v19  ;;  %v895_v33 = vadd.s32 304, %v2591_v8  ;;  %v1412_v17 = vld [vmem:[#allocation2 + $0x3f0] sm:$0xff] }
  0xeb   : > { %vm1151_vm4 = vcmp.lt.s32.totalorder %v1023_v24, 2344  ;;  %1661 = vst [vmem:[#allocation2 + $0x158] sm:$0xff] %v1533_v27  ;;  %v1534_v36 = vadd.f32 %v1406_v22, %v1278_v31  ;;  %v1024_v38 = vadd.s32 %v2587_v5, %v894_v30  ;;  %v639_v39 = vsub.f32 %v383_v25, %v511_v26 }
  0xec   : > { %v1279_v37 = vsel %vm1151_vm4, %v764_v23, 0.0  ;;  %v766_v44 = vmul.f32 %v638_v32, %v638_v32  ;;  %v1025_v45 = vadd.s32 %v2587_v5, %v895_v33  ;;  %v896_v46 = vadd.s32 312, %v2591_v8  ;;  %v1414_v32 = vld [vmem:[#allocation2 + $0x2c0] sm:$0xff] }
  0xed   : > { %v1535_v42 = vadd.f32 %v1407_v28, %v1279_v37  ;;  %1662 = vst [vmem:[#allocation2 + $0x3e0] sm:$0xff] %v1534_v36  ;;  %vm1152_vm5 = vcmp.lt.s32.totalorder %v1024_v38, 2344  ;;  %v767_v48 = vmul.f32 %v639_v39, %v639_v39  ;;  %v640_v49 = vsub.f32 %v384_v34, %v512_v35  ;;  %v390_v28 = vld [vmem:[%s2443_s26 + $0x170] sm:$0xff]  ;;  %v391_v35 = vld [vmem:[%s2443_s26 + $0x178] sm:$0xff] }
  0xee   : > { %v897_v50 = vadd.s32 320, %v2591_v8  ;;  %v1280_v51 = vsel %vm1152_vm5, %v765_v29, 0.0  ;;  %vm1153_vm6 = vcmp.lt.s32.totalorder %v1025_v45, 2344  ;;  %v1026_v52 = vadd.s32 %v2587_v5, %v896_v46  ;;  %v518_v29 = vld [vmem:[%s2449_s7 + $0x170] sm:$0xff]  ;;  %v519_v36 = vld [vmem:[%s2449_s7 + $0x178] sm:$0xff]  ;;  %v520_v45 = vld [vmem:[%s2449_s7 + $0x180] sm:$0xff] }
  0xef   : > { %1663 = vst [vmem:[#allocation2 + $0x218] sm:$0xff] %v1535_v42  ;;  %v641_v53 = vsub.f32 %v385_v40, %v513_v41  ;;  %v1536_v56 = vadd.f32 %v1408_v43, %v1280_v51  ;;  %v1281_v57 = vsel %vm1153_vm6, %v766_v44, 0.0  ;;  %v768_v59 = vmul.f32 %v640_v49, %v640_v49  ;;  %v1415_v38 = vld [vmem:[#allocation2 + $0xb0] sm:$0xff]  ;;  %v392_v44 = vld [vmem:[%s2443_s26 + $0x180] sm:$0xff]  ;;  %v521_v51 = vld [vmem:[%s2449_s7 + $0x188] sm:$0xff] }
  0xf0   : > { %v1027_v60 = vadd.s32 %v2587_v5, %v897_v50  ;;  %v1537_v63 = vadd.f32 %v1409_v47, %v1281_v57  ;;  %vm1154_vm7 = vcmp.lt.s32.totalorder %v1026_v52, 2344  ;;  %v898_v2 = vadd.s32 328, %v2591_v8  ;;  %v393_v50 = vld [vmem:[%s2443_s26 + $0x188] sm:$0xff]  ;;  %v1417_v57 = vld [vmem:[#allocation2 + $0x1f0] sm:$0xff] }
  0xf1   : > { %v769_v1 = vmul.f32 %v641_v53, %v641_v53  ;;  %1664 = vst [vmem:[#allocation2 + $0x3f8] sm:$0xff] %v1536_v56  ;;  %v1282_v3 = vsel %vm1154_vm7, %v767_v48, 0.0  ;;  %v642_v4 = vsub.f32 %v386_v54, %v514_v55  ;;  %v899_v6 = vadd.s32 336, %v2591_v8  ;;  %v1416_v53 = vld [vmem:[#allocation2 + $0x1e0] sm:$0xff] }
  0xf2   : > { %vm1155_vm8 = vcmp.lt.s32.totalorder %v1027_v60, 2344  ;;  %1665 = vst [vmem:[#allocation2 + $0x8] sm:$0xff] %v1537_v63  ;;  %v1538_v10 = vadd.f32 %v1410_v58, %v1282_v3  ;;  %v1028_v12 = vadd.s32 %v2587_v5, %v898_v2  ;;  %v643_v13 = vsub.f32 %v387_v61, %v515_v62 }
  0xf3   : > { %v1283_v11 = vsel %vm1155_vm8, %v768_v59, 0.0  ;;  %v770_v18 = vmul.f32 %v642_v4, %v642_v4  ;;  %v1029_v19 = vadd.s32 %v2587_v5, %v899_v6  ;;  %v900_v20 = vadd.s32 344, %v2591_v8  ;;  %v1418_v4 = vld [vmem:[#allocation2 + $0x10] sm:$0xff] }
  0xf4   : > { %v1539_v16 = vadd.f32 %v1411_v0, %v1283_v11  ;;  %1666 = vst [vmem:[#allocation2 + $0x128] sm:$0xff] %v1538_v10  ;;  %vm1156_vm9 = vcmp.lt.s32.totalorder %v1028_v12, 2344  ;;  %v771_v22 = vmul.f32 %v643_v13, %v643_v13  ;;  %v644_v23 = vsub.f32 %v388_v7, %v516_v9  ;;  %v394_v0 = vld [vmem:[%s2443_s26 + $0x190] sm:$0xff]  ;;  %v395_v9 = vld [vmem:[%s2443_s26 + $0x198] sm:$0xff] }
  0xf5   : > { %v901_v24 = vadd.s32 352, %v2591_v8  ;;  %v1284_v25 = vsel %vm1156_vm9, %v769_v1, 0.0  ;;  %vm1157_vm10 = vcmp.lt.s32.totalorder %v1029_v19, 2344  ;;  %v1030_v26 = vadd.s32 %v2587_v5, %v900_v20  ;;  %v522_v1 = vld [vmem:[%s2449_s7 + $0x190] sm:$0xff]  ;;  %v523_v10 = vld [vmem:[%s2449_s7 + $0x198] sm:$0xff]  ;;  %v524_v19 = vld [vmem:[%s2449_s7 + $0x1a0] sm:$0xff] }
  0xf6   : > { %1667 = vst [vmem:[#allocation2 + $0x2a0] sm:$0xff] %v1539_v16  ;;  %v645_v27 = vsub.f32 %v389_v14, %v517_v15  ;;  %v1540_v30 = vadd.f32 %v1412_v17, %v1284_v25  ;;  %v1285_v31 = vsel %vm1157_vm10, %v770_v18, 0.0  ;;  %v772_v33 = vmul.f32 %v644_v23, %v644_v23  ;;  %v1419_v12 = vld [vmem:[#allocation2 + $0x230] sm:$0xff]  ;;  %v396_v18 = vld [vmem:[%s2443_s26 + $0x1a0] sm:$0xff]  ;;  %v525_v25 = vld [vmem:[%s2449_s7 + $0x1a8] sm:$0xff] }
  0xf7   : > { %v1031_v34 = vadd.s32 %v2587_v5, %v901_v24  ;;  %v1541_v37 = vadd.f32 %v1413_v21, %v1285_v31  ;;  %vm1158_vm11 = vcmp.lt.s32.totalorder %v1030_v26, 2344  ;;  %v902_v40 = vadd.s32 360, %v2591_v8  ;;  %v397_v24 = vld [vmem:[%s2443_s26 + $0x1a8] sm:$0xff]  ;;  %v1421_v31 = vld [vmem:[#allocation2 + $0x90] sm:$0xff] }
  0xf8   : > { %v773_v39 = vmul.f32 %v645_v27, %v645_v27  ;;  %1668 = vst [vmem:[#allocation2 + $0x3f0] sm:$0xff] %v1540_v30  ;;  %v1286_v41 = vsel %vm1158_vm11, %v771_v22, 0.0  ;;  %v646_v42 = vsub.f32 %v390_v28, %v518_v29  ;;  %v903_v43 = vadd.s32 368, %v2591_v8  ;;  %v1420_v27 = vld [vmem:[#allocation2 + $0x240] sm:$0xff] }
  0xf9   : > { %vm1159_vm12 = vcmp.lt.s32.totalorder %v1031_v34, 2344  ;;  %1669 = vst [vmem:[#allocation2 + $0xa0] sm:$0xff] %v1541_v37  ;;  %v1542_v46 = vadd.f32 %v1414_v32, %v1286_v41  ;;  %v1032_v48 = vadd.s32 %v2587_v5, %v902_v40  ;;  %v647_v49 = vsub.f32 %v391_v35, %v519_v36 }
  0xfa   : > { %v1287_v47 = vsel %vm1159_vm12, %v772_v33, 0.0  ;;  %v774_v54 = vmul.f32 %v646_v42, %v646_v42  ;;  %v1033_v55 = vadd.s32 %v2587_v5, %v903_v43  ;;  %v904_v56 = vadd.s32 376, %v2591_v8  ;;  %v1422_v42 = vld [vmem:[#allocation2 + $0x3a0] sm:$0xff] }
  0xfb   : > { %v1543_v52 = vadd.f32 %v1415_v38, %v1287_v47  ;;  %1670 = vst [vmem:[#allocation2 + $0x2c0] sm:$0xff] %v1542_v46  ;;  %vm1160_vm13 = vcmp.lt.s32.totalorder %v1032_v48, 2344  ;;  %v775_v58 = vmul.f32 %v647_v49, %v647_v49  ;;  %v648_v59 = vsub.f32 %v392_v44, %v520_v45  ;;  %v398_v38 = vld [vmem:[%s2443_s26 + $0x1b0] sm:$0xff]  ;;  %v399_v45 = vld [vmem:[%s2443_s26 + $0x1b8] sm:$0xff]  ;;  %v1423_v48 = vld [vmem:[#allocation2 + $0x208] sm:$0xff] }
  0xfc   : > { %v905_v60 = vadd.s32 384, %v2591_v8  ;;  %v1288_v61 = vsel %vm1160_vm13, %v773_v39, 0.0  ;;  %vm1161_vm14 = vcmp.lt.s32.totalorder %v1033_v55, 2344  ;;  %v1034_v62 = vadd.s32 %v2587_v5, %v904_v56  ;;  %v526_v39 = vld [vmem:[%s2449_s7 + $0x1b0] sm:$0xff]  ;;  %v527_v46 = vld [vmem:[%s2449_s7 + $0x1b8] sm:$0xff]  ;;  %v528_v55 = vld [vmem:[%s2449_s7 + $0x1c0] sm:$0xff] }
  0xfd   : > { %1671 = vst [vmem:[#allocation2 + $0xb0] sm:$0xff] %v1543_v52  ;;  %v649_v63 = vsub.f32 %v393_v50, %v521_v51  ;;  %v1544_v2 = vadd.f32 %v1416_v53, %v1288_v61  ;;  %v1289_v3 = vsel %vm1161_vm14, %v774_v54, 0.0  ;;  %v776_v6 = vmul.f32 %v648_v59, %v648_v59  ;;  %v400_v54 = vld [vmem:[%s2443_s26 + $0x1c0] sm:$0xff]  ;;  %v529_v61 = vld [vmem:[%s2449_s7 + $0x1c8] sm:$0xff] }
  0xfe   : > { %v1035_v7 = vadd.s32 %v2587_v5, %v905_v60  ;;  %v1545_v11 = vadd.f32 %v1417_v57, %v1289_v3  ;;  %vm1162_vm15 = vcmp.lt.s32.totalorder %v1034_v62, 2344  ;;  %v906_v14 = vadd.s32 392, %v2591_v8  ;;  %v401_v60 = vld [vmem:[%s2443_s26 + $0x1c8] sm:$0xff] }
  0xff   : > { %v777_v13 = vmul.f32 %v649_v63, %v649_v63  ;;  %1672 = vst [vmem:[#allocation2 + $0x1e0] sm:$0xff] %v1544_v2  ;;  %v1290_v15 = vsel %vm1162_vm15, %v775_v58, 0.0  ;;  %v650_v16 = vsub.f32 %v394_v0, %v522_v1  ;;  %v907_v17 = vadd.s32 400, %v2591_v8  ;;  %v1424_v63 = vld [vmem:[#allocation2 + $0xd0] sm:$0xff]  ;;  %v1425_v3 = vld [vmem:[#allocation2 + $0x88] sm:$0xff] }
 0x100   : > { %vm1163_vm0 = vcmp.lt.s32.totalorder %v1035_v7, 2344  ;;  %1673 = vst [vmem:[#allocation2 + $0x1f0] sm:$0xff] %v1545_v11  ;;  %v1546_v20 = vadd.f32 %v1418_v4, %v1290_v15  ;;  %v1036_v22 = vadd.s32 %v2587_v5, %v906_v14  ;;  %v651_v23 = vsub.f32 %v395_v9, %v523_v10 }
 0x101   : > { %v1291_v21 = vsel %vm1163_vm0, %v776_v6, 0.0  ;;  %v778_v28 = vmul.f32 %v650_v16, %v650_v16  ;;  %v1037_v29 = vadd.s32 %v2587_v5, %v907_v17  ;;  %v908_v30 = vadd.s32 408, %v2591_v8  ;;  %v1426_v16 = vld [vmem:[#allocation2 + $0x2f0] sm:$0xff] }
 0x102   : > { %v1547_v26 = vadd.f32 %v1419_v12, %v1291_v21  ;;  %1674 = vst [vmem:[#allocation2 + $0x10] sm:$0xff] %v1546_v20  ;;  %vm1164_vm1 = vcmp.lt.s32.totalorder %v1036_v22, 2344  ;;  %v779_v32 = vmul.f32 %v651_v23, %v651_v23  ;;  %v652_v33 = vsub.f32 %v396_v18, %v524_v19  ;;  %v402_v12 = vld [vmem:[%s2443_s26 + $0x1d0] sm:$0xff]  ;;  %v403_v19 = vld [vmem:[%s2443_s26 + $0x1d8] sm:$0xff] }
 0x103   : > { %v909_v34 = vadd.s32 416, %v2591_v8  ;;  %v1292_v35 = vsel %vm1164_vm1, %v777_v13, 0.0  ;;  %vm1165_vm2 = vcmp.lt.s32.totalorder %v1037_v29, 2344  ;;  %v1038_v36 = vadd.s32 %v2587_v5, %v908_v30  ;;  %v530_v13 = vld [vmem:[%s2449_s7 + $0x1d0] sm:$0xff]  ;;  %v531_v20 = vld [vmem:[%s2449_s7 + $0x1d8] sm:$0xff]  ;;  %v532_v29 = vld [vmem:[%s2449_s7 + $0x1e0] sm:$0xff] }
 0x104   : > { %1675 = vst [vmem:[#allocation2 + $0x230] sm:$0xff] %v1547_v26  ;;  %v653_v37 = vsub.f32 %v397_v24, %v525_v25  ;;  %v1548_v40 = vadd.f32 %v1420_v27, %v1292_v35  ;;  %v1293_v41 = vsel %vm1165_vm2, %v778_v28, 0.0  ;;  %v780_v43 = vmul.f32 %v652_v33, %v652_v33  ;;  %v1427_v22 = vld [vmem:[#allocation2 + $0x358] sm:$0xff]  ;;  %v404_v28 = vld [vmem:[%s2443_s26 + $0x1e0] sm:$0xff]  ;;  %v533_v35 = vld [vmem:[%s2449_s7 + $0x1e8] sm:$0xff] }
 0x105   : > { %v1039_v44 = vadd.s32 %v2587_v5, %v909_v34  ;;  %v1549_v47 = vadd.f32 %v1421_v31, %v1293_v41  ;;  %vm1166_vm3 = vcmp.lt.s32.totalorder %v1038_v36, 2344  ;;  %v910_v50 = vadd.s32 424, %v2591_v8  ;;  %v405_v34 = vld [vmem:[%s2443_s26 + $0x1e8] sm:$0xff]  ;;  %v1429_v41 = vld [vmem:[#allocation2 + $0x350] sm:$0xff] }
 0x106   : > { %v781_v49 = vmul.f32 %v653_v37, %v653_v37  ;;  %1676 = vst [vmem:[#allocation2 + $0x240] sm:$0xff] %v1548_v40  ;;  %v1294_v51 = vsel %vm1166_vm3, %v779_v32, 0.0  ;;  %v654_v52 = vsub.f32 %v398_v38, %v526_v39  ;;  %v911_v53 = vadd.s32 432, %v2591_v8  ;;  %v1428_v37 = vld [vmem:[#allocation2 + $0x268] sm:$0xff] }
 0x107   : > { %vm1167_vm4 = vcmp.lt.s32.totalorder %v1039_v44, 2344  ;;  %1677 = vst [vmem:[#allocation2 + $0x90] sm:$0xff] %v1549_v47  ;;  %v1550_v56 = vadd.f32 %v1422_v42, %v1294_v51  ;;  %v1040_v58 = vadd.s32 %v2587_v5, %v910_v50  ;;  %v655_v59 = vsub.f32 %v399_v45, %v527_v46 }
 0x108   : > { %v1295_v57 = vsel %vm1167_vm4, %v780_v43, 0.0  ;;  %v782_v0 = vmul.f32 %v654_v52, %v654_v52  ;;  %v1041_v1 = vadd.s32 %v2587_v5, %v911_v53  ;;  %v912_v2 = vadd.s32 440, %v2591_v8  ;;  %v1430_v52 = vld [vmem:[#allocation2 + $0x188] sm:$0xff] }
 0x109   : > { %v1551_v62 = vadd.f32 %v1423_v48, %v1295_v57  ;;  %1678 = vst [vmem:[#allocation2 + $0x3a0] sm:$0xff] %v1550_v56  ;;  %vm1168_vm5 = vcmp.lt.s32.totalorder %v1040_v58, 2344  ;;  %v783_v4 = vmul.f32 %v655_v59, %v655_v59  ;;  %v656_v6 = vsub.f32 %v400_v54, %v528_v55  ;;  %v406_v48 = vld [vmem:[%s2443_s26 + $0x1f0] sm:$0xff]  ;;  %v407_v55 = vld [vmem:[%s2443_s26 + $0x1f8] sm:$0xff] }
 0x10a   : > { %v913_v7 = vadd.s32 448, %v2591_v8  ;;  %v1296_v9 = vsel %vm1168_vm5, %v781_v49, 0.0  ;;  %vm1169_vm6 = vcmp.lt.s32.totalorder %v1041_v1, 2344  ;;  %v1042_v10 = vadd.s32 %v2587_v5, %v912_v2  ;;  %v534_v49 = vld [vmem:[%s2449_s7 + $0x1f0] sm:$0xff]  ;;  %v535_v56 = vld [vmem:[%s2449_s7 + $0x1f8] sm:$0xff]  ;;  %v536_v1 = vld [vmem:[%s2449_s7 + $0x200] sm:$0xff] }
 0x10b   : > { %1679 = vst [vmem:[#allocation2 + $0x208] sm:$0xff] %v1551_v62  ;;  %v657_v11 = vsub.f32 %v401_v60, %v529_v61  ;;  %v1552_v14 = vadd.f32 %v1424_v63, %v1296_v9  ;;  %v1297_v15 = vsel %vm1169_vm6, %v782_v0, 0.0  ;;  %v784_v17 = vmul.f32 %v656_v6, %v656_v6  ;;  %v1431_v58 = vld [vmem:[#allocation2 + $0x1d8] sm:$0xff]  ;;  %v408_v0 = vld [vmem:[%s2443_s26 + $0x200] sm:$0xff]  ;;  %v537_v9 = vld [vmem:[%s2449_s7 + $0x208] sm:$0xff] }
 0x10c   : > { %v1043_v18 = vadd.s32 %v2587_v5, %v913_v7  ;;  %v1553_v21 = vadd.f32 %v1425_v3, %v1297_v15  ;;  %vm1170_vm7 = vcmp.lt.s32.totalorder %v1042_v10, 2344  ;;  %v914_v24 = vadd.s32 456, %v2591_v8  ;;  %v409_v7 = vld [vmem:[%s2443_s26 + $0x208] sm:$0xff]  ;;  %v1433_v15 = vld [vmem:[#allocation2 + $0x140] sm:$0xff] }
 0x10d   : > { %v785_v23 = vmul.f32 %v657_v11, %v657_v11  ;;  %1680 = vst [vmem:[#allocation2 + $0xd0] sm:$0xff] %v1552_v14  ;;  %v1298_v25 = vsel %vm1170_vm7, %v783_v4, 0.0  ;;  %v658_v26 = vsub.f32 %v402_v12, %v530_v13  ;;  %v915_v27 = vadd.s32 464, %v2591_v8  ;;  %v1432_v11 = vld [vmem:[#allocation2 + $0x30] sm:$0xff] }
 0x10e   : > { %vm1171_vm8 = vcmp.lt.s32.totalorder %v1043_v18, 2344  ;;  %1681 = vst [vmem:[#allocation2 + $0x88] sm:$0xff] %v1553_v21  ;;  %v1554_v30 = vadd.f32 %v1426_v16, %v1298_v25  ;;  %v1044_v32 = vadd.s32 %v2587_v5, %v914_v24  ;;  %v659_v33 = vsub.f32 %v403_v19, %v531_v20 }
 0x10f   : > { %v1299_v31 = vsel %vm1171_vm8, %v784_v17, 0.0  ;;  %v786_v38 = vmul.f32 %v658_v26, %v658_v26  ;;  %v1045_v39 = vadd.s32 %v2587_v5, %v915_v27  ;;  %v916_v40 = vadd.s32 472, %v2591_v8  ;;  %v1434_v26 = vld [vmem:[#allocation2 + $0x2a8] sm:$0xff] }
 0x110   : > { %v1555_v36 = vadd.f32 %v1427_v22, %v1299_v31  ;;  %1682 = vst [vmem:[#allocation2 + $0x2f0] sm:$0xff] %v1554_v30  ;;  %vm1172_vm9 = vcmp.lt.s32.totalorder %v1044_v32, 2344  ;;  %v787_v42 = vmul.f32 %v659_v33, %v659_v33  ;;  %v660_v43 = vsub.f32 %v404_v28, %v532_v29  ;;  %v410_v22 = vld [vmem:[%s2443_s26 + $0x210] sm:$0xff]  ;;  %v411_v29 = vld [vmem:[%s2443_s26 + $0x218] sm:$0xff] }
 0x111   : > { %v917_v44 = vadd.s32 480, %v2591_v8  ;;  %v1300_v45 = vsel %vm1172_vm9, %v785_v23, 0.0  ;;  %vm1173_vm10 = vcmp.lt.s32.totalorder %v1045_v39, 2344  ;;  %v1046_v46 = vadd.s32 %v2587_v5, %v916_v40  ;;  %v538_v23 = vld [vmem:[%s2449_s7 + $0x210] sm:$0xff]  ;;  %v539_v30 = vld [vmem:[%s2449_s7 + $0x218] sm:$0xff]  ;;  %v540_v39 = vld [vmem:[%s2449_s7 + $0x220] sm:$0xff] }
 0x112   : > { %1683 = vst [vmem:[#allocation2 + $0x358] sm:$0xff] %v1555_v36  ;;  %v661_v47 = vsub.f32 %v405_v34, %v533_v35  ;;  %v1556_v50 = vadd.f32 %v1428_v37, %v1300_v45  ;;  %v1301_v51 = vsel %vm1173_vm10, %v786_v38, 0.0  ;;  %v788_v53 = vmul.f32 %v660_v43, %v660_v43  ;;  %v1435_v32 = vld [vmem:[#allocation2 + $0x130] sm:$0xff]  ;;  %v412_v38 = vld [vmem:[%s2443_s26 + $0x220] sm:$0xff]  ;;  %v541_v45 = vld [vmem:[%s2449_s7 + $0x228] sm:$0xff] }
 0x113   : > { %v1047_v54 = vadd.s32 %v2587_v5, %v917_v44  ;;  %v1557_v57 = vadd.f32 %v1429_v41, %v1301_v51  ;;  %vm1174_vm11 = vcmp.lt.s32.totalorder %v1046_v46, 2344  ;;  %v918_v60 = vadd.s32 488, %v2591_v8  ;;  %v413_v44 = vld [vmem:[%s2443_s26 + $0x228] sm:$0xff]  ;;  %v1437_v51 = vld [vmem:[#allocation2 + $0x318] sm:$0xff] }
 0x114   : > { %v789_v59 = vmul.f32 %v661_v47, %v661_v47  ;;  %1684 = vst [vmem:[#allocation2 + $0x268] sm:$0xff] %v1556_v50  ;;  %v1302_v61 = vsel %vm1174_vm11, %v787_v42, 0.0  ;;  %v662_v62 = vsub.f32 %v406_v48, %v534_v49  ;;  %v919_v63 = vadd.s32 496, %v2591_v8  ;;  %v1436_v47 = vld [vmem:[#allocation2 + $0x200] sm:$0xff] }
 0x115   : > { %vm1175_vm12 = vcmp.lt.s32.totalorder %v1047_v54, 2344  ;;  %1685 = vst [vmem:[#allocation2 + $0x350] sm:$0xff] %v1557_v57  ;;  %v1558_v2 = vadd.f32 %v1430_v52, %v1302_v61  ;;  %v1048_v4 = vadd.s32 %v2587_v5, %v918_v60  ;;  %v663_v6 = vsub.f32 %v407_v55, %v535_v56 }
 0x116   : > { %v1303_v3 = vsel %vm1175_vm12, %v788_v53, 0.0  ;;  %v790_v12 = vmul.f32 %v662_v62, %v662_v62  ;;  %v1049_v13 = vadd.s32 %v2587_v5, %v919_v63  ;;  %v920_v14 = vadd.s32 504, %v2591_v8  ;;  %v1438_v62 = vld [vmem:[#allocation2 + $0x220] sm:$0xff] }
 0x117   : > { %v1559_v10 = vadd.f32 %v1431_v58, %v1303_v3  ;;  %1686 = vst [vmem:[#allocation2 + $0x188] sm:$0xff] %v1558_v2  ;;  %vm1176_vm13 = vcmp.lt.s32.totalorder %v1048_v4, 2344  ;;  %v791_v16 = vmul.f32 %v663_v6, %v663_v6  ;;  %v664_v17 = vsub.f32 %v408_v0, %v536_v1  ;;  %v414_v58 = vld [vmem:[%s2443_s26 + $0x230] sm:$0xff]  ;;  %v415_v1 = vld [vmem:[%s2443_s26 + $0x238] sm:$0xff] }
 0x118   : > { %v921_v18 = vadd.s32 512, %v2591_v8  ;;  %v1304_v19 = vsel %vm1176_vm13, %v789_v59, 0.0  ;;  %vm1177_vm14 = vcmp.lt.s32.totalorder %v1049_v13, 2344  ;;  %v1050_v20 = vadd.s32 %v2587_v5, %v920_v14  ;;  %v542_v59 = vld [vmem:[%s2449_s7 + $0x230] sm:$0xff]  ;;  %v543_v2 = vld [vmem:[%s2449_s7 + $0x238] sm:$0xff]  ;;  %v544_v13 = vld [vmem:[%s2449_s7 + $0x240] sm:$0xff] }
 0x119   : > { %1687 = vst [vmem:[#allocation2 + $0x1d8] sm:$0xff] %v1559_v10  ;;  %v665_v21 = vsub.f32 %v409_v7, %v537_v9  ;;  %v1560_v24 = vadd.f32 %v1432_v11, %v1304_v19  ;;  %v1305_v25 = vsel %vm1177_vm14, %v790_v12, 0.0  ;;  %v792_v27 = vmul.f32 %v664_v17, %v664_v17  ;;  %v1439_v4 = vld [vmem:[#allocation2 + $0x70] sm:$0xff]  ;;  %v416_v12 = vld [vmem:[%s2443_s26 + $0x240] sm:$0xff]  ;;  %v545_v19 = vld [vmem:[%s2449_s7 + $0x248] sm:$0xff] }
 0x11a   : > { %v1051_v28 = vadd.s32 %v2587_v5, %v921_v18  ;;  %v1561_v31 = vadd.f32 %v1433_v15, %v1305_v25  ;;  %vm1178_vm15 = vcmp.lt.s32.totalorder %v1050_v20, 2344  ;;  %v922_v34 = vadd.s32 520, %v2591_v8  ;;  %v417_v18 = vld [vmem:[%s2443_s26 + $0x248] sm:$0xff]  ;;  %v1441_v25 = vld [vmem:[#allocation2 + $0xe0] sm:$0xff] }
 0x11b   : > { %v793_v33 = vmul.f32 %v665_v21, %v665_v21  ;;  %1688 = vst [vmem:[#allocation2 + $0x30] sm:$0xff] %v1560_v24  ;;  %v1306_v35 = vsel %vm1178_vm15, %v791_v16, 0.0  ;;  %v666_v36 = vsub.f32 %v410_v22, %v538_v23  ;;  %v923_v37 = vadd.s32 528, %v2591_v8  ;;  %v1440_v21 = vld [vmem:[#allocation2 + $0x300] sm:$0xff] }
 0x11c   : > { %vm1179_vm0 = vcmp.lt.s32.totalorder %v1051_v28, 2344  ;;  %1689 = vst [vmem:[#allocation2 + $0x140] sm:$0xff] %v1561_v31  ;;  %v1562_v40 = vadd.f32 %v1434_v26, %v1306_v35  ;;  %v1052_v42 = vadd.s32 %v2587_v5, %v922_v34  ;;  %v667_v43 = vsub.f32 %v411_v29, %v539_v30 }
 0x11d   : > { %v1307_v41 = vsel %vm1179_vm0, %v792_v27, 0.0  ;;  %v794_v48 = vmul.f32 %v666_v36, %v666_v36  ;;  %v1053_v49 = vadd.s32 %v2587_v5, %v923_v37  ;;  %v924_v50 = vadd.s32 536, %v2591_v8  ;;  %v1442_v36 = vld [vmem:[#allocation2 + $0x178] sm:$0xff] }
 0x11e   : > { %v1563_v46 = vadd.f32 %v1435_v32, %v1307_v41  ;;  %1690 = vst [vmem:[#allocation2 + $0x2a8] sm:$0xff] %v1562_v40  ;;  %vm1180_vm1 = vcmp.lt.s32.totalorder %v1052_v42, 2344  ;;  %v795_v52 = vmul.f32 %v667_v43, %v667_v43  ;;  %v668_v53 = vsub.f32 %v412_v38, %v540_v39  ;;  %v418_v32 = vld [vmem:[%s2443_s26 + $0x250] sm:$0xff]  ;;  %v419_v39 = vld [vmem:[%s2443_s26 + $0x258] sm:$0xff]  ;;  %v1443_v42 = vld [vmem:[#allocation2 + $0x328] sm:$0xff] }
 0x11f   : > { %v925_v54 = vadd.s32 544, %v2591_v8  ;;  %v1308_v55 = vsel %vm1180_vm1, %v793_v33, 0.0  ;;  %vm1181_vm2 = vcmp.lt.s32.totalorder %v1053_v49, 2344  ;;  %v1054_v56 = vadd.s32 %v2587_v5, %v924_v50  ;;  %v546_v33 = vld [vmem:[%s2449_s7 + $0x250] sm:$0xff]  ;;  %v547_v40 = vld [vmem:[%s2449_s7 + $0x258] sm:$0xff]  ;;  %v548_v49 = vld [vmem:[%s2449_s7 + $0x260] sm:$0xff] }
 0x120   : > { %1691 = vst [vmem:[#allocation2 + $0x130] sm:$0xff] %v1563_v46  ;;  %v669_v57 = vsub.f32 %v413_v44, %v541_v45  ;;  %v1564_v60 = vadd.f32 %v1436_v47, %v1308_v55  ;;  %v1309_v61 = vsel %vm1181_vm2, %v794_v48, 0.0  ;;  %v796_v63 = vmul.f32 %v668_v53, %v668_v53  ;;  %v420_v48 = vld [vmem:[%s2443_s26 + $0x260] sm:$0xff]  ;;  %v549_v55 = vld [vmem:[%s2449_s7 + $0x268] sm:$0xff] }
 0x121   : > { %v1055_v0 = vadd.s32 %v2587_v5, %v925_v54  ;;  %v1565_v3 = vadd.f32 %v1437_v51, %v1309_v61  ;;  %vm1182_vm3 = vcmp.lt.s32.totalorder %v1054_v56, 2344  ;;  %v926_v7 = vadd.s32 552, %v2591_v8  ;;  %v421_v54 = vld [vmem:[%s2443_s26 + $0x268] sm:$0xff]  ;;  %v1445_v61 = vld [vmem:[#allocation2 + $0x3b8] sm:$0xff] }
 0x122   : > { %v797_v6 = vmul.f32 %v669_v57, %v669_v57  ;;  %1692 = vst [vmem:[#allocation2 + $0x200] sm:$0xff] %v1564_v60  ;;  %v1310_v9 = vsel %vm1182_vm3, %v795_v52, 0.0  ;;  %v670_v10 = vsub.f32 %v414_v58, %v542_v59  ;;  %v927_v11 = vadd.s32 560, %v2591_v8  ;;  %v1444_v57 = vld [vmem:[#allocation2 + $0x260] sm:$0xff] }
 0x123   : > { %vm1183_vm4 = vcmp.lt.s32.totalorder %v1055_v0, 2344  ;;  %1693 = vst [vmem:[#allocation2 + $0x318] sm:$0xff] %v1565_v3  ;;  %v1566_v14 = vadd.f32 %v1438_v62, %v1310_v9  ;;  %v1056_v16 = vadd.s32 %v2587_v5, %v926_v7  ;;  %v671_v17 = vsub.f32 %v415_v1, %v543_v2 }
 0x124   : > { %v1311_v15 = vsel %vm1183_vm4, %v796_v63, 0.0  ;;  %v798_v22 = vmul.f32 %v670_v10, %v670_v10  ;;  %v1057_v23 = vadd.s32 %v2587_v5, %v927_v11  ;;  %v928_v24 = vadd.s32 568, %v2591_v8  ;;  %v1446_v10 = vld [vmem:[#allocation2 + $0x2b8] sm:$0xff] }
 0x125   : > { %v1567_v20 = vadd.f32 %v1439_v4, %v1311_v15  ;;  %1694 = vst [vmem:[#allocation2 + $0x220] sm:$0xff] %v1566_v14  ;;  %vm1184_vm5 = vcmp.lt.s32.totalorder %v1056_v16, 2344  ;;  %v799_v26 = vmul.f32 %v671_v17, %v671_v17  ;;  %v672_v27 = vsub.f32 %v416_v12, %v544_v13  ;;  %v422_v4 = vld [vmem:[%s2443_s26 + $0x270] sm:$0xff]  ;;  %v423_v13 = vld [vmem:[%s2443_s26 + $0x278] sm:$0xff]  ;;  %v1447_v16 = vld [vmem:[#allocation2 + $0x248] sm:$0xff] }
 0x126   : > { %v929_v28 = vadd.s32 576, %v2591_v8  ;;  %v1312_v29 = vsel %vm1184_vm5, %v797_v6, 0.0  ;;  %vm1185_vm6 = vcmp.lt.s32.totalorder %v1057_v23, 2344  ;;  %v1058_v30 = vadd.s32 %v2587_v5, %v928_v24  ;;  %v550_v6 = vld [vmem:[%s2449_s7 + $0x270] sm:$0xff]  ;;  %v551_v14 = vld [vmem:[%s2449_s7 + $0x278] sm:$0xff]  ;;  %v552_v23 = vld [vmem:[%s2449_s7 + $0x280] sm:$0xff] }
 0x127   : > { %1695 = vst [vmem:[#allocation2 + $0x70] sm:$0xff] %v1567_v20  ;;  %v673_v31 = vsub.f32 %v417_v18, %v545_v19  ;;  %v1568_v34 = vadd.f32 %v1440_v21, %v1312_v29  ;;  %v1313_v35 = vsel %vm1185_vm6, %v798_v22, 0.0  ;;  %v800_v37 = vmul.f32 %v672_v27, %v672_v27  ;;  %v424_v22 = vld [vmem:[%s2443_s26 + $0x280] sm:$0xff]  ;;  %v553_v29 = vld [vmem:[%s2449_s7 + $0x288] sm:$0xff] }
 0x128   : > { %v1059_v38 = vadd.s32 %v2587_v5, %v929_v28  ;;  %v1569_v41 = vadd.f32 %v1441_v25, %v1313_v35  ;;  %vm1186_vm7 = vcmp.lt.s32.totalorder %v1058_v30, 2344  ;;  %v930_v44 = vadd.s32 584, %v2591_v8  ;;  %v425_v28 = vld [vmem:[%s2443_s26 + $0x288] sm:$0xff]  ;;  %v1449_v35 = vld [vmem:[#allocation2 + $0x20] sm:$0xff] }
 0x129   : > { %v801_v43 = vmul.f32 %v673_v31, %v673_v31  ;;  %1696 = vst [vmem:[#allocation2 + $0x300] sm:$0xff] %v1568_v34  ;;  %v1314_v45 = vsel %vm1186_vm7, %v799_v26, 0.0  ;;  %v674_v46 = vsub.f32 %v418_v32, %v546_v33  ;;  %v931_v47 = vadd.s32 592, %v2591_v8  ;;  %v1448_v31 = vld [vmem:[#allocation2 + $0x40] sm:$0xff] }
 0x12a   : > { %vm1187_vm8 = vcmp.lt.s32.totalorder %v1059_v38, 2344  ;;  %1697 = vst [vmem:[#allocation2 + $0xe0] sm:$0xff] %v1569_v41  ;;  %v1570_v50 = vadd.f32 %v1442_v36, %v1314_v45  ;;  %v1060_v52 = vadd.s32 %v2587_v5, %v930_v44  ;;  %v675_v53 = vsub.f32 %v419_v39, %v547_v40 }
 0x12b   : > { %v1315_v51 = vsel %vm1187_vm8, %v800_v37, 0.0  ;;  %v802_v58 = vmul.f32 %v674_v46, %v674_v46  ;;  %v1061_v59 = vadd.s32 %v2587_v5, %v931_v47  ;;  %v932_v60 = vadd.s32 600, %v2591_v8  ;;  %v1450_v46 = vld [vmem:[#allocation2 + $0xe8] sm:$0xff] }
 0x12c   : > { %v1571_v56 = vadd.f32 %v1443_v42, %v1315_v51  ;;  %1698 = vst [vmem:[#allocation2 + $0x178] sm:$0xff] %v1570_v50  ;;  %vm1188_vm9 = vcmp.lt.s32.totalorder %v1060_v52, 2344  ;;  %v803_v62 = vmul.f32 %v675_v53, %v675_v53  ;;  %v676_v63 = vsub.f32 %v420_v48, %v548_v49  ;;  %v426_v42 = vld [vmem:[%s2443_s26 + $0x290] sm:$0xff]  ;;  %v427_v49 = vld [vmem:[%s2443_s26 + $0x298] sm:$0xff]  ;;  %v1451_v52 = vld [vmem:[#allocation2 + $0x288] sm:$0xff] }
 0x12d   : > { %v933_v0 = vadd.s32 608, %v2591_v8  ;;  %v1316_v1 = vsel %vm1188_vm9, %v801_v43, 0.0  ;;  %vm1189_vm10 = vcmp.lt.s32.totalorder %v1061_v59, 2344  ;;  %v1062_v2 = vadd.s32 %v2587_v5, %v932_v60  ;;  %v554_v43 = vld [vmem:[%s2449_s7 + $0x290] sm:$0xff]  ;;  %v555_v50 = vld [vmem:[%s2449_s7 + $0x298] sm:$0xff]  ;;  %v556_v59 = vld [vmem:[%s2449_s7 + $0x2a0] sm:$0xff] }
 0x12e   : > { %1699 = vst [vmem:[#allocation2 + $0x328] sm:$0xff] %v1571_v56  ;;  %v677_v3 = vsub.f32 %v421_v54, %v549_v55  ;;  %v1572_v7 = vadd.f32 %v1444_v57, %v1316_v1  ;;  %v1317_v9 = vsel %vm1189_vm10, %v802_v58, 0.0  ;;  %v804_v11 = vmul.f32 %v676_v63, %v676_v63  ;;  %v428_v58 = vld [vmem:[%s2443_s26 + $0x2a0] sm:$0xff]  ;;  %v557_v1 = vld [vmem:[%s2449_s7 + $0x2a8] sm:$0xff] }
 0x12f   : > { %v1063_v12 = vadd.s32 %v2587_v5, %v933_v0  ;;  %v1573_v15 = vadd.f32 %v1445_v61, %v1317_v9  ;;  %vm1190_vm11 = vcmp.lt.s32.totalorder %v1062_v2, 2344  ;;  %v934_v18 = vadd.s32 616, %v2591_v8  ;;  %v429_v0 = vld [vmem:[%s2443_s26 + $0x2a8] sm:$0xff] }
 0x130   : > { %v805_v17 = vmul.f32 %v677_v3, %v677_v3  ;;  %1700 = vst [vmem:[#allocation2 + $0x260] sm:$0xff] %v1572_v7  ;;  %v1318_v19 = vsel %vm1190_vm11, %v803_v62, 0.0  ;;  %v678_v20 = vsub.f32 %v422_v4, %v550_v6  ;;  %v935_v21 = vadd.s32 624, %v2591_v8  ;;  %v1452_v3 = vld [vmem:[#allocation2 + $0x3a8] sm:$0xff] }
 0x131   : > { %vm1191_vm12 = vcmp.lt.s32.totalorder %v1063_v12, 2344  ;;  %1701 = vst [vmem:[#allocation2 + $0x3b8] sm:$0xff] %v1573_v15  ;;  %v1574_v24 = vadd.f32 %v1446_v10, %v1318_v19  ;;  %v1064_v26 = vadd.s32 %v2587_v5, %v934_v18  ;;  %v679_v27 = vsub.f32 %v423_v13, %v551_v14  ;;  %v1453_v9 = vld [vmem:[#allocation2 + $0x3c8] sm:$0xff] }
 0x132   : > { %v1319_v25 = vsel %vm1191_vm12, %v804_v11, 0.0  ;;  %v806_v32 = vmul.f32 %v678_v20, %v678_v20  ;;  %v1065_v33 = vadd.s32 %v2587_v5, %v935_v21  ;;  %v936_v34 = vadd.s32 632, %v2591_v8  ;;  %v1454_v20 = vld [vmem:[#allocation2 + $0x160] sm:$0xff] }
 0x133   : > { %v1575_v30 = vadd.f32 %v1447_v16, %v1319_v25  ;;  %1702 = vst [vmem:[#allocation2 + $0x2b8] sm:$0xff] %v1574_v24  ;;  %vm1192_vm13 = vcmp.lt.s32.totalorder %v1064_v26, 2344  ;;  %v807_v36 = vmul.f32 %v679_v27, %v679_v27  ;;  %v680_v37 = vsub.f32 %v424_v22, %v552_v23  ;;  %v430_v16 = vld [vmem:[%s2443_s26 + $0x2b0] sm:$0xff]  ;;  %v431_v23 = vld [vmem:[%s2443_s26 + $0x2b8] sm:$0xff]  ;;  %v1455_v26 = vld [vmem:[#allocation2 + $0x2c8] sm:$0xff] }
 0x134   : > { %v937_v38 = vadd.s32 640, %v2591_v8  ;;  %v1320_v39 = vsel %vm1192_vm13, %v805_v17, 0.0  ;;  %vm1193_vm14 = vcmp.lt.s32.totalorder %v1065_v33, 2344  ;;  %v1066_v40 = vadd.s32 %v2587_v5, %v936_v34  ;;  %v558_v17 = vld [vmem:[%s2449_s7 + $0x2b0] sm:$0xff]  ;;  %v559_v24 = vld [vmem:[%s2449_s7 + $0x2b8] sm:$0xff]  ;;  %v560_v33 = vld [vmem:[%s2449_s7 + $0x2c0] sm:$0xff] }
 0x135   : > { %1703 = vst [vmem:[#allocation2 + $0x248] sm:$0xff] %v1575_v30  ;;  %v681_v41 = vsub.f32 %v425_v28, %v553_v29  ;;  %v1576_v44 = vadd.f32 %v1448_v31, %v1320_v39  ;;  %v1321_v45 = vsel %vm1193_vm14, %v806_v32, 0.0  ;;  %v808_v47 = vmul.f32 %v680_v37, %v680_v37  ;;  %v432_v32 = vld [vmem:[%s2443_s26 + $0x2c0] sm:$0xff]  ;;  %v561_v39 = vld [vmem:[%s2449_s7 + $0x2c8] sm:$0xff] }
 0x136   : > { %v1067_v48 = vadd.s32 %v2587_v5, %v937_v38  ;;  %v1577_v51 = vadd.f32 %v1449_v35, %v1321_v45  ;;  %vm1194_vm15 = vcmp.lt.s32.totalorder %v1066_v40, 2344  ;;  %v938_v54 = vadd.s32 648, %v2591_v8  ;;  %v433_v38 = vld [vmem:[%s2443_s26 + $0x2c8] sm:$0xff]  ;;  %v1457_v45 = vld [vmem:[#allocation2 + $0x3d8] sm:$0xff] }
 0x137   : > { %v809_v53 = vmul.f32 %v681_v41, %v681_v41  ;;  %1704 = vst [vmem:[#allocation2 + $0x40] sm:$0xff] %v1576_v44  ;;  %v1322_v55 = vsel %vm1194_vm15, %v807_v36, 0.0  ;;  %v682_v56 = vsub.f32 %v426_v42, %v554_v43  ;;  %v939_v57 = vadd.s32 656, %v2591_v8  ;;  %v1456_v41 = vld [vmem:[#allocation2 + $0x210] sm:$0xff] }
 0x138   : > { %vm1195_vm0 = vcmp.lt.s32.totalorder %v1067_v48, 2344  ;;  %1705 = vst [vmem:[#allocation2 + $0x20] sm:$0xff] %v1577_v51  ;;  %v1578_v60 = vadd.f32 %v1450_v46, %v1322_v55  ;;  %v1068_v62 = vadd.s32 %v2587_v5, %v938_v54  ;;  %v683_v63 = vsub.f32 %v427_v49, %v555_v50 }
 0x139   : > { %v1323_v61 = vsel %vm1195_vm0, %v808_v47, 0.0  ;;  %v810_v4 = vmul.f32 %v682_v56, %v682_v56  ;;  %v1069_v6 = vadd.s32 %v2587_v5, %v939_v57  ;;  %v940_v7 = vadd.s32 664, %v2591_v8  ;;  %v1458_v56 = vld [vmem:[#allocation2 + $0x1e8] sm:$0xff] }
 0x13a   : > { %v1579_v2 = vadd.f32 %v1451_v52, %v1323_v61  ;;  %1706 = vst [vmem:[#allocation2 + $0xe8] sm:$0xff] %v1578_v60  ;;  %vm1196_vm1 = vcmp.lt.s32.totalorder %v1068_v62, 2344  ;;  %v811_v10 = vmul.f32 %v683_v63, %v683_v63  ;;  %v684_v11 = vsub.f32 %v428_v58, %v556_v59  ;;  %v434_v52 = vld [vmem:[%s2443_s26 + $0x2d0] sm:$0xff]  ;;  %v435_v59 = vld [vmem:[%s2443_s26 + $0x2d8] sm:$0xff] }
 0x13b   : > { %v941_v12 = vadd.s32 672, %v2591_v8  ;;  %v1324_v13 = vsel %vm1196_vm1, %v809_v53, 0.0  ;;  %vm1197_vm2 = vcmp.lt.s32.totalorder %v1069_v6, 2344  ;;  %v1070_v14 = vadd.s32 %v2587_v5, %v940_v7  ;;  %v562_v53 = vld [vmem:[%s2449_s7 + $0x2d0] sm:$0xff]  ;;  %v563_v60 = vld [vmem:[%s2449_s7 + $0x2d8] sm:$0xff]  ;;  %v564_v6 = vld [vmem:[%s2449_s7 + $0x2e0] sm:$0xff] }
 0x13c   : > { %1707 = vst [vmem:[#allocation2 + $0x288] sm:$0xff] %v1579_v2  ;;  %v685_v15 = vsub.f32 %v429_v0, %v557_v1  ;;  %v1580_v18 = vadd.f32 %v1452_v3, %v1324_v13  ;;  %v1325_v19 = vsel %vm1197_vm2, %v810_v4, 0.0  ;;  %v812_v21 = vmul.f32 %v684_v11, %v684_v11  ;;  %v1459_v62 = vld [vmem:[#allocation2 + $0x1b0] sm:$0xff]  ;;  %v436_v4 = vld [vmem:[%s2443_s26 + $0x2e0] sm:$0xff]  ;;  %v565_v13 = vld [vmem:[%s2449_s7 + $0x2e8] sm:$0xff] }
 0x13d   : > { %v1071_v22 = vadd.s32 %v2587_v5, %v941_v12  ;;  %v1581_v25 = vadd.f32 %v1453_v9, %v1325_v19  ;;  %vm1198_vm3 = vcmp.lt.s32.totalorder %v1070_v14, 2344  ;;  %v942_v28 = vadd.s32 680, %v2591_v8  ;;  %v437_v12 = vld [vmem:[%s2443_s26 + $0x2e8] sm:$0xff]  ;;  %v1461_v19 = vld [vmem:[#allocation2 + $0x2d0] sm:$0xff] }
 0x13e   : > { %v813_v27 = vmul.f32 %v685_v15, %v685_v15  ;;  %1708 = vst [vmem:[#allocation2 + $0x3a8] sm:$0xff] %v1580_v18  ;;  %v1326_v29 = vsel %vm1198_vm3, %v811_v10, 0.0  ;;  %v686_v30 = vsub.f32 %v430_v16, %v558_v17  ;;  %v943_v31 = vadd.s32 688, %v2591_v8  ;;  %v1460_v15 = vld [vmem:[#allocation2 + $0x1c8] sm:$0xff] }
 0x13f   : > { %vm1199_vm4 = vcmp.lt.s32.totalorder %v1071_v22, 2344  ;;  %1709 = vst [vmem:[#allocation2 + $0x3c8] sm:$0xff] %v1581_v25  ;;  %v1582_v34 = vadd.f32 %v1454_v20, %v1326_v29  ;;  %v1072_v36 = vadd.s32 %v2587_v5, %v942_v28  ;;  %v687_v37 = vsub.f32 %v431_v23, %v559_v24 }
 0x140   : > { %v1327_v35 = vsel %vm1199_vm4, %v812_v21, 0.0  ;;  %v814_v42 = vmul.f32 %v686_v30, %v686_v30  ;;  %v1073_v43 = vadd.s32 %v2587_v5, %v943_v31  ;;  %v944_v44 = vadd.s32 696, %v2591_v8  ;;  %v1462_v30 = vld [vmem:[#allocation2 + $0x1d0] sm:$0xff] }
 0x141   : > { %v1583_v40 = vadd.f32 %v1455_v26, %v1327_v35  ;;  %1710 = vst [vmem:[#allocation2 + $0x160] sm:$0xff] %v1582_v34  ;;  %vm1200_vm5 = vcmp.lt.s32.totalorder %v1072_v36, 2344  ;;  %v815_v46 = vmul.f32 %v687_v37, %v687_v37  ;;  %v688_v47 = vsub.f32 %v432_v32, %v560_v33  ;;  %v438_v26 = vld [vmem:[%s2443_s26 + $0x2f0] sm:$0xff]  ;;  %v439_v33 = vld [vmem:[%s2443_s26 + $0x2f8] sm:$0xff] }
 0x142   : > { %v945_v48 = vadd.s32 704, %v2591_v8  ;;  %v1328_v49 = vsel %vm1200_vm5, %v813_v27, 0.0  ;;  %vm1201_vm6 = vcmp.lt.s32.totalorder %v1073_v43, 2344  ;;  %v1074_v50 = vadd.s32 %v2587_v5, %v944_v44  ;;  %v566_v27 = vld [vmem:[%s2449_s7 + $0x2f0] sm:$0xff]  ;;  %v567_v34 = vld [vmem:[%s2449_s7 + $0x2f8] sm:$0xff]  ;;  %v568_v43 = vld [vmem:[%s2449_s7 + $0x300] sm:$0xff] }
 0x143   : > { %1711 = vst [vmem:[#allocation2 + $0x2c8] sm:$0xff] %v1583_v40  ;;  %v689_v51 = vsub.f32 %v433_v38, %v561_v39  ;;  %v1584_v54 = vadd.f32 %v1456_v41, %v1328_v49  ;;  %v1329_v55 = vsel %vm1201_vm6, %v814_v42, 0.0  ;;  %v816_v57 = vmul.f32 %v688_v47, %v688_v47  ;;  %v1463_v36 = vld [vmem:[#allocation2 + $0x58] sm:$0xff]  ;;  %v440_v42 = vld [vmem:[%s2443_s26 + $0x300] sm:$0xff]  ;;  %v569_v49 = vld [vmem:[%s2449_s7 + $0x308] sm:$0xff] }
 0x144   : > { %v1075_v58 = vadd.s32 %v2587_v5, %v945_v48  ;;  %v1585_v61 = vadd.f32 %v1457_v45, %v1329_v55  ;;  %vm1202_vm7 = vcmp.lt.s32.totalorder %v1074_v50, 2344  ;;  %v946_v0 = vadd.s32 712, %v2591_v8  ;;  %v441_v48 = vld [vmem:[%s2443_s26 + $0x308] sm:$0xff]  ;;  %v1465_v55 = vld [vmem:[#allocation2 + $0x198] sm:$0xff] }
 0x145   : > { %v817_v63 = vmul.f32 %v689_v51, %v689_v51  ;;  %1712 = vst [vmem:[#allocation2 + $0x210] sm:$0xff] %v1584_v54  ;;  %v1330_v1 = vsel %vm1202_vm7, %v815_v46, 0.0  ;;  %v690_v2 = vsub.f32 %v434_v52, %v562_v53  ;;  %v947_v3 = vadd.s32 720, %v2591_v8  ;;  %v1464_v51 = vld [vmem:[#allocation2 + $0x120] sm:$0xff] }
 0x146   : > { %vm1203_vm8 = vcmp.lt.s32.totalorder %v1075_v58, 2344  ;;  %1713 = vst [vmem:[#allocation2 + $0x3d8] sm:$0xff] %v1585_v61  ;;  %v1586_v7 = vadd.f32 %v1458_v56, %v1330_v1  ;;  %v1076_v10 = vadd.s32 %v2587_v5, %v946_v0  ;;  %v691_v11 = vsub.f32 %v435_v59, %v563_v60 }
 0x147   : > { %v1331_v9 = vsel %vm1203_vm8, %v816_v57, 0.0  ;;  %v818_v16 = vmul.f32 %v690_v2, %v690_v2  ;;  %v1077_v17 = vadd.s32 %v2587_v5, %v947_v3  ;;  %v948_v18 = vadd.s32 728, %v2591_v8  ;;  %v1466_v2 = vld [vmem:[#allocation2 + $0x2e8] sm:$0xff] }
 0x148   : > { %v1587_v14 = vadd.f32 %v1459_v62, %v1331_v9  ;;  %1714 = vst [vmem:[#allocation2 + $0x1e8] sm:$0xff] %v1586_v7  ;;  %vm1204_vm9 = vcmp.lt.s32.totalorder %v1076_v10, 2344  ;;  %v819_v20 = vmul.f32 %v691_v11, %v691_v11  ;;  %v692_v21 = vsub.f32 %v436_v4, %v564_v6  ;;  %v442_v62 = vld [vmem:[%s2443_s26 + $0x310] sm:$0xff]  ;;  %v443_v6 = vld [vmem:[%s2443_s26 + $0x318] sm:$0xff] }
 0x149   : > { %v949_v22 = vadd.s32 736, %v2591_v8  ;;  %v1332_v23 = vsel %vm1204_vm9, %v817_v63, 0.0  ;;  %vm1205_vm10 = vcmp.lt.s32.totalorder %v1077_v17, 2344  ;;  %v1078_v24 = vadd.s32 %v2587_v5, %v948_v18  ;;  %v570_v63 = vld [vmem:[%s2449_s7 + $0x310] sm:$0xff]  ;;  %v571_v7 = vld [vmem:[%s2449_s7 + $0x318] sm:$0xff]  ;;  %v572_v17 = vld [vmem:[%s2449_s7 + $0x320] sm:$0xff] }
 0x14a   : > { %1715 = vst [vmem:[#allocation2 + $0x1b0] sm:$0xff] %v1587_v14  ;;  %v693_v25 = vsub.f32 %v437_v12, %v565_v13  ;;  %v1588_v28 = vadd.f32 %v1460_v15, %v1332_v23  ;;  %v1333_v29 = vsel %vm1205_vm10, %v818_v16, 0.0  ;;  %v820_v31 = vmul.f32 %v692_v21, %v692_v21  ;;  %v1467_v10 = vld [vmem:[#allocation2 + $0x1f8] sm:$0xff]  ;;  %v444_v16 = vld [vmem:[%s2443_s26 + $0x320] sm:$0xff]  ;;  %v573_v23 = vld [vmem:[%s2449_s7 + $0x328] sm:$0xff] }
 0x14b   : > { %v1079_v32 = vadd.s32 %v2587_v5, %v949_v22  ;;  %v1589_v35 = vadd.f32 %v1461_v19, %v1333_v29  ;;  %vm1206_vm11 = vcmp.lt.s32.totalorder %v1078_v24, 2344  ;;  %v950_v38 = vadd.s32 744, %v2591_v8  ;;  %v445_v22 = vld [vmem:[%s2443_s26 + $0x328] sm:$0xff]  ;;  %v1469_v29 = vld [vmem:[#allocation2 + $0x398] sm:$0xff] }
 0x14c   : > { %v821_v37 = vmul.f32 %v693_v25, %v693_v25  ;;  %1716 = vst [vmem:[#allocation2 + $0x1c8] sm:$0xff] %v1588_v28  ;;  %v1334_v39 = vsel %vm1206_vm11, %v819_v20, 0.0  ;;  %v694_v40 = vsub.f32 %v438_v26, %v566_v27  ;;  %v951_v41 = vadd.s32 752, %v2591_v8  ;;  %v1468_v25 = vld [vmem:[#allocation2 + $0x238] sm:$0xff] }
 0x14d   : > { %vm1207_vm12 = vcmp.lt.s32.totalorder %v1079_v32, 2344  ;;  %1717 = vst [vmem:[#allocation2 + $0x2d0] sm:$0xff] %v1589_v35  ;;  %v1590_v44 = vadd.f32 %v1462_v30, %v1334_v39  ;;  %v1080_v46 = vadd.s32 %v2587_v5, %v950_v38  ;;  %v695_v47 = vsub.f32 %v439_v33, %v567_v34 }
 0x14e   : > { %v1335_v45 = vsel %vm1207_vm12, %v820_v31, 0.0  ;;  %v822_v52 = vmul.f32 %v694_v40, %v694_v40  ;;  %v1081_v53 = vadd.s32 %v2587_v5, %v951_v41  ;;  %v952_v54 = vadd.s32 760, %v2591_v8  ;;  %v1470_v40 = vld [vmem:[#allocation2 + $0x390] sm:$0xff] }
 0x14f   : > { %v1591_v50 = vadd.f32 %v1463_v36, %v1335_v45  ;;  %1718 = vst [vmem:[#allocation2 + $0x1d0] sm:$0xff] %v1590_v44  ;;  %vm1208_vm13 = vcmp.lt.s32.totalorder %v1080_v46, 2344  ;;  %v823_v56 = vmul.f32 %v695_v47, %v695_v47  ;;  %v696_v57 = vsub.f32 %v440_v42, %v568_v43  ;;  %v446_v36 = vld [vmem:[%s2443_s26 + $0x330] sm:$0xff]  ;;  %v447_v43 = vld [vmem:[%s2443_s26 + $0x338] sm:$0xff]  ;;  %v1471_v46 = vld [vmem:[#allocation2 + $0x1a0] sm:$0xff] }
 0x150   : > { %v953_v58 = vadd.s32 768, %v2591_v8  ;;  %v1336_v59 = vsel %vm1208_vm13, %v821_v37, 0.0  ;;  %vm1209_vm14 = vcmp.lt.s32.totalorder %v1081_v53, 2344  ;;  %v1082_v60 = vadd.s32 %v2587_v5, %v952_v54  ;;  %v574_v37 = vld [vmem:[%s2449_s7 + $0x330] sm:$0xff]  ;;  %v575_v44 = vld [vmem:[%s2449_s7 + $0x338] sm:$0xff]  ;;  %v576_v53 = vld [vmem:[%s2449_s7 + $0x340] sm:$0xff] }
 0x151   : > { %1719 = vst [vmem:[#allocation2 + $0x58] sm:$0xff] %v1591_v50  ;;  %v697_v61 = vsub.f32 %v441_v48, %v569_v49  ;;  %v1592_v0 = vadd.f32 %v1464_v51, %v1336_v59  ;;  %v1337_v1 = vsel %vm1209_vm14, %v822_v52, 0.0  ;;  %v824_v3 = vmul.f32 %v696_v57, %v696_v57  ;;  %v448_v52 = vld [vmem:[%s2443_s26 + $0x340] sm:$0xff]  ;;  %v577_v59 = vld [vmem:[%s2449_s7 + $0x348] sm:$0xff] }
 0x152   : > { %v1083_v4 = vadd.s32 %v2587_v5, %v953_v58  ;;  %v1593_v9 = vadd.f32 %v1465_v55, %v1337_v1  ;;  %vm1210_vm15 = vcmp.lt.s32.totalorder %v1082_v60, 2344  ;;  %v954_v12 = vadd.s32 776, %v2591_v8  ;;  %v449_v58 = vld [vmem:[%s2443_s26 + $0x348] sm:$0xff]  ;;  %v1473_v1 = vld [vmem:[#allocation2 + $0x258] sm:$0xff] }
 0x153   : > { %v825_v11 = vmul.f32 %v697_v61, %v697_v61  ;;  %1720 = vst [vmem:[#allocation2 + $0x120] sm:$0xff] %v1592_v0  ;;  %v1338_v13 = vsel %vm1210_vm15, %v823_v56, 0.0  ;;  %v698_v14 = vsub.f32 %v442_v62, %v570_v63  ;;  %v955_v15 = vadd.s32 784, %v2591_v8  ;;  %v1472_v61 = vld [vmem:[#allocation2 + $0xa8] sm:$0xff] }
 0x154   : > { %vm1211_vm0 = vcmp.lt.s32.totalorder %v1083_v4, 2344  ;;  %1721 = vst [vmem:[#allocation2 + $0x198] sm:$0xff] %v1593_v9  ;;  %v1594_v18 = vadd.f32 %v1466_v2, %v1338_v13  ;;  %v1084_v20 = vadd.s32 %v2587_v5, %v954_v12  ;;  %v699_v21 = vsub.f32 %v443_v6, %v571_v7 }
 0x155   : > { %v1339_v19 = vsel %vm1211_vm0, %v824_v3, 0.0  ;;  %v826_v26 = vmul.f32 %v698_v14, %v698_v14  ;;  %v1085_v27 = vadd.s32 %v2587_v5, %v955_v15  ;;  %v956_v28 = vadd.s32 792, %v2591_v8  ;;  %v1474_v14 = vld [vmem:[#allocation2 + $0x2d8] sm:$0xff] }
 0x156   : > { %v1595_v24 = vadd.f32 %v1467_v10, %v1339_v19  ;;  %1722 = vst [vmem:[#allocation2 + $0x2e8] sm:$0xff] %v1594_v18  ;;  %vm1212_vm1 = vcmp.lt.s32.totalorder %v1084_v20, 2344  ;;  %v827_v30 = vmul.f32 %v699_v21, %v699_v21  ;;  %v700_v31 = vsub.f32 %v444_v16, %v572_v17  ;;  %v450_v10 = vld [vmem:[%s2443_s26 + $0x350] sm:$0xff]  ;;  %v451_v17 = vld [vmem:[%s2443_s26 + $0x358] sm:$0xff] }
 0x157   : > { %v957_v32 = vadd.s32 800, %v2591_v8  ;;  %v1340_v33 = vsel %vm1212_vm1, %v825_v11, 0.0  ;;  %vm1213_vm2 = vcmp.lt.s32.totalorder %v1085_v27, 2344  ;;  %v1086_v34 = vadd.s32 %v2587_v5, %v956_v28  ;;  %v578_v11 = vld [vmem:[%s2449_s7 + $0x350] sm:$0xff]  ;;  %v579_v18 = vld [vmem:[%s2449_s7 + $0x358] sm:$0xff]  ;;  %v580_v27 = vld [vmem:[%s2449_s7 + $0x360] sm:$0xff] }
 0x158   : > { %1723 = vst [vmem:[#allocation2 + $0x1f8] sm:$0xff] %v1595_v24  ;;  %v701_v35 = vsub.f32 %v445_v22, %v573_v23  ;;  %v1596_v38 = vadd.f32 %v1468_v25, %v1340_v33  ;;  %v1341_v39 = vsel %vm1213_vm2, %v826_v26, 0.0  ;;  %v828_v41 = vmul.f32 %v700_v31, %v700_v31  ;;  %v1475_v20 = vld [vmem:[#allocation2 + $0xf0] sm:$0xff]  ;;  %v452_v26 = vld [vmem:[%s2443_s26 + $0x360] sm:$0xff]  ;;  %v581_v33 = vld [vmem:[%s2449_s7 + $0x368] sm:$0xff] }
 0x159   : > { %v1087_v42 = vadd.s32 %v2587_v5, %v957_v32  ;;  %v1597_v45 = vadd.f32 %v1469_v29, %v1341_v39  ;;  %vm1214_vm3 = vcmp.lt.s32.totalorder %v1086_v34, 2344  ;;  %v958_v48 = vadd.s32 808, %v2591_v8  ;;  %v453_v32 = vld [vmem:[%s2443_s26 + $0x368] sm:$0xff]  ;;  %v1477_v39 = vld [vmem:[#allocation2 + $0x170] sm:$0xff] }
 0x15a   : > { %v829_v47 = vmul.f32 %v701_v35, %v701_v35  ;;  %1724 = vst [vmem:[#allocation2 + $0x238] sm:$0xff] %v1596_v38  ;;  %v1342_v49 = vsel %vm1214_vm3, %v827_v30, 0.0  ;;  %v702_v50 = vsub.f32 %v446_v36, %v574_v37  ;;  %v959_v51 = vadd.s32 816, %v2591_v8  ;;  %v1476_v35 = vld [vmem:[#allocation2 + $0x180] sm:$0xff] }
 0x15b   : > { %vm1215_vm4 = vcmp.lt.s32.totalorder %v1087_v42, 2344  ;;  %1725 = vst [vmem:[#allocation2 + $0x398] sm:$0xff] %v1597_v45  ;;  %v1598_v54 = vadd.f32 %v1470_v40, %v1342_v49  ;;  %v1088_v56 = vadd.s32 %v2587_v5, %v958_v48  ;;  %v703_v57 = vsub.f32 %v447_v43, %v575_v44 }
 0x15c   : > { %v1343_v55 = vsel %vm1215_vm4, %v828_v41, 0.0  ;;  %v830_v62 = vmul.f32 %v702_v50, %v702_v50  ;;  %v1089_v63 = vadd.s32 %v2587_v5, %v959_v51  ;;  %v960_v0 = vadd.s32 824, %v2591_v8  ;;  %v1478_v50 = vld [vmem:[#allocation2 + $0x3d0] sm:$0xff] }
 0x15d   : > { %v1599_v60 = vadd.f32 %v1471_v46, %v1343_v55  ;;  %1726 = vst [vmem:[#allocation2 + $0x390] sm:$0xff] %v1598_v54  ;;  %vm1216_vm5 = vcmp.lt.s32.totalorder %v1088_v56, 2344  ;;  %v831_v2 = vmul.f32 %v703_v57, %v703_v57  ;;  %v704_v3 = vsub.f32 %v448_v52, %v576_v53  ;;  %v454_v46 = vld [vmem:[%s2443_s26 + $0x370] sm:$0xff]  ;;  %v455_v53 = vld [vmem:[%s2443_s26 + $0x378] sm:$0xff] }
 0x15e   : > { %v961_v4 = vadd.s32 832, %v2591_v8  ;;  %v1344_v6 = vsel %vm1216_vm5, %v829_v47, 0.0  ;;  %vm1217_vm6 = vcmp.lt.s32.totalorder %v1089_v63, 2344  ;;  %v1090_v7 = vadd.s32 %v2587_v5, %v960_v0  ;;  %v582_v47 = vld [vmem:[%s2449_s7 + $0x370] sm:$0xff]  ;;  %v583_v54 = vld [vmem:[%s2449_s7 + $0x378] sm:$0xff]  ;;  %v584_v63 = vld [vmem:[%s2449_s7 + $0x380] sm:$0xff] }
 0x15f   : > { %1727 = vst [vmem:[#allocation2 + $0x1a0] sm:$0xff] %v1599_v60  ;;  %v705_v9 = vsub.f32 %v449_v58, %v577_v59  ;;  %v1600_v12 = vadd.f32 %v1472_v61, %v1344_v6  ;;  %v1345_v13 = vsel %vm1217_vm6, %v830_v62, 0.0  ;;  %v832_v15 = vmul.f32 %v704_v3, %v704_v3  ;;  %v1479_v56 = vld [vmem:[#allocation2 + $0x250] sm:$0xff]  ;;  %v456_v62 = vld [vmem:[%s2443_s26 + $0x380] sm:$0xff]  ;;  %v585_v6 = vld [vmem:[%s2449_s7 + $0x388] sm:$0xff] }
 0x160   : > { %v1091_v16 = vadd.s32 %v2587_v5, %v961_v4  ;;  %v1601_v19 = vadd.f32 %v1473_v1, %v1345_v13  ;;  %vm1218_vm7 = vcmp.lt.s32.totalorder %v1090_v7, 2344  ;;  %v962_v22 = vadd.s32 840, %v2591_v8  ;;  %v457_v4 = vld [vmem:[%s2443_s26 + $0x388] sm:$0xff]  ;;  %v1481_v13 = vld [vmem:[#allocation2 + $0xb8] sm:$0xff] }
 0x161   : > { %v833_v21 = vmul.f32 %v705_v9, %v705_v9  ;;  %1728 = vst [vmem:[#allocation2 + $0xa8] sm:$0xff] %v1600_v12  ;;  %v1346_v23 = vsel %vm1218_vm7, %v831_v2, 0.0  ;;  %v706_v24 = vsub.f32 %v450_v10, %v578_v11  ;;  %v963_v25 = vadd.s32 848, %v2591_v8  ;;  %v1480_v9 = vld [vmem:[#allocation2 + $0x378] sm:$0xff] }
 0x162   : > { %vm1219_vm8 = vcmp.lt.s32.totalorder %v1091_v16, 2344  ;;  %1729 = vst [vmem:[#allocation2 + $0x258] sm:$0xff] %v1601_v19  ;;  %v1602_v28 = vadd.f32 %v1474_v14, %v1346_v23  ;;  %v1092_v30 = vadd.s32 %v2587_v5, %v962_v22  ;;  %v707_v31 = vsub.f32 %v451_v17, %v579_v18 }
 0x163   : > { %v1347_v29 = vsel %vm1219_vm8, %v832_v15, 0.0  ;;  %v834_v36 = vmul.f32 %v706_v24, %v706_v24  ;;  %v1093_v37 = vadd.s32 %v2587_v5, %v963_v25  ;;  %v964_v38 = vadd.s32 856, %v2591_v8  ;;  %v1482_v24 = vld [vmem:[#allocation2 + $0x38] sm:$0xff] }
 0x164   : > { %v1603_v34 = vadd.f32 %v1475_v20, %v1347_v29  ;;  %1730 = vst [vmem:[#allocation2 + $0x2d8] sm:$0xff] %v1602_v28  ;;  %vm1220_vm9 = vcmp.lt.s32.totalorder %v1092_v30, 2344  ;;  %v835_v40 = vmul.f32 %v707_v31, %v707_v31  ;;  %v708_v41 = vsub.f32 %v452_v26, %v580_v27  ;;  %v458_v20 = vld [vmem:[%s2443_s26 + $0x390] sm:$0xff]  ;;  %v459_v27 = vld [vmem:[%s2443_s26 + $0x398] sm:$0xff] }
 0x165   : > { %v965_v42 = vadd.s32 864, %v2591_v8  ;;  %v1348_v43 = vsel %vm1220_vm9, %v833_v21, 0.0  ;;  %vm1221_vm10 = vcmp.lt.s32.totalorder %v1093_v37, 2344  ;;  %v1094_v44 = vadd.s32 %v2587_v5, %v964_v38  ;;  %v586_v21 = vld [vmem:[%s2449_s7 + $0x390] sm:$0xff]  ;;  %v587_v28 = vld [vmem:[%s2449_s7 + $0x398] sm:$0xff]  ;;  %v588_v37 = vld [vmem:[%s2449_s7 + $0x3a0] sm:$0xff] }
 0x166   : > { %1731 = vst [vmem:[#allocation2 + $0xf0] sm:$0xff] %v1603_v34  ;;  %v709_v45 = vsub.f32 %v453_v32, %v581_v33  ;;  %v1604_v48 = vadd.f32 %v1476_v35, %v1348_v43  ;;  %v1349_v49 = vsel %vm1221_vm10, %v834_v36, 0.0  ;;  %v836_v51 = vmul.f32 %v708_v41, %v708_v41  ;;  %v1483_v30 = vld [vmem:[#allocation2 + $0x78] sm:$0xff]  ;;  %v460_v36 = vld [vmem:[%s2443_s26 + $0x3a0] sm:$0xff]  ;;  %v589_v43 = vld [vmem:[%s2449_s7 + $0x3a8] sm:$0xff] }
 0x167   : > { %v1095_v52 = vadd.s32 %v2587_v5, %v965_v42  ;;  %v1605_v55 = vadd.f32 %v1477_v39, %v1349_v49  ;;  %vm1222_vm11 = vcmp.lt.s32.totalorder %v1094_v44, 2344  ;;  %v966_v58 = vadd.s32 872, %v2591_v8  ;;  %v461_v42 = vld [vmem:[%s2443_s26 + $0x3a8] sm:$0xff]  ;;  %v1485_v49 = vld [vmem:[#allocation2 + $0x370] sm:$0xff] }
 0x168   : > { %v837_v57 = vmul.f32 %v709_v45, %v709_v45  ;;  %1732 = vst [vmem:[#allocation2 + $0x180] sm:$0xff] %v1604_v48  ;;  %v1350_v59 = vsel %vm1222_vm11, %v835_v40, 0.0  ;;  %v710_v60 = vsub.f32 %v454_v46, %v582_v47  ;;  %v967_v61 = vadd.s32 880, %v2591_v8  ;;  %v1484_v45 = vld [vmem:[#allocation2 + $0x308] sm:$0xff] }
 0x169   : > { %vm1223_vm12 = vcmp.lt.s32.totalorder %v1095_v52, 2344  ;;  %1733 = vst [vmem:[#allocation2 + $0x170] sm:$0xff] %v1605_v55  ;;  %v1606_v0 = vadd.f32 %v1478_v50, %v1350_v59  ;;  %v1096_v2 = vadd.s32 %v2587_v5, %v966_v58  ;;  %v711_v3 = vsub.f32 %v455_v53, %v583_v54 }
 0x16a   : > { %v1351_v1 = vsel %vm1223_vm12, %v836_v51, 0.0  ;;  %v838_v10 = vmul.f32 %v710_v60, %v710_v60  ;;  %v1097_v11 = vadd.s32 %v2587_v5, %v967_v61  ;;  %v968_v12 = vadd.s32 888, %v2591_v8  ;;  %v1486_v60 = vld [vmem:[#allocation2 + $0xc8] sm:$0xff] }
 0x16b   : > { %v1607_v7 = vadd.f32 %v1479_v56, %v1351_v1  ;;  %1734 = vst [vmem:[#allocation2 + $0x3d0] sm:$0xff] %v1606_v0  ;;  %vm1224_vm13 = vcmp.lt.s32.totalorder %v1096_v2, 2344  ;;  %v839_v14 = vmul.f32 %v711_v3, %v711_v3  ;;  %v712_v15 = vsub.f32 %v456_v62, %v584_v63  ;;  %v462_v56 = vld [vmem:[%s2443_s26 + $0x3b0] sm:$0xff]  ;;  %v463_v63 = vld [vmem:[%s2443_s26 + $0x3b8] sm:$0xff] }
 0x16c   : > { %v969_v16 = vadd.s32 896, %v2591_v8  ;;  %v1352_v17 = vsel %vm1224_vm13, %v837_v57, 0.0  ;;  %vm1225_vm14 = vcmp.lt.s32.totalorder %v1097_v11, 2344  ;;  %v1098_v18 = vadd.s32 %v2587_v5, %v968_v12  ;;  %v590_v57 = vld [vmem:[%s2449_s7 + $0x3b0] sm:$0xff]  ;;  %v591_v0 = vld [vmem:[%s2449_s7 + $0x3b8] sm:$0xff]  ;;  %v592_v11 = vld [vmem:[%s2449_s7 + $0x3c0] sm:$0xff] }
 0x16d   : > { %1735 = vst [vmem:[#allocation2 + $0x250] sm:$0xff] %v1607_v7  ;;  %v713_v19 = vsub.f32 %v457_v4, %v585_v6  ;;  %v1608_v22 = vadd.f32 %v1480_v9, %v1352_v17  ;;  %v1353_v23 = vsel %vm1225_vm14, %v838_v10, 0.0  ;;  %v840_v25 = vmul.f32 %v712_v15, %v712_v15  ;;  %v1487_v2 = vld [vmem:[#allocation2 + $0x278] sm:$0xff]  ;;  %v464_v10 = vld [vmem:[%s2443_s26 + $0x3c0] sm:$0xff]  ;;  %v593_v17 = vld [vmem:[%s2449_s7 + $0x3c8] sm:$0xff] }
 0x16e   : > { %v1099_v26 = vadd.s32 %v2587_v5, %v969_v16  ;;  %v1609_v29 = vadd.f32 %v1481_v13, %v1353_v23  ;;  %vm1226_vm15 = vcmp.lt.s32.totalorder %v1098_v18, 2344  ;;  %v970_v32 = vadd.s32 904, %v2591_v8  ;;  %v465_v16 = vld [vmem:[%s2443_s26 + $0x3c8] sm:$0xff] }
 0x16f   : > { %v841_v31 = vmul.f32 %v713_v19, %v713_v19  ;;  %1736 = vst [vmem:[#allocation2 + $0x378] sm:$0xff] %v1608_v22  ;;  %v1354_v33 = vsel %vm1226_vm15, %v839_v14, 0.0  ;;  %v714_v34 = vsub.f32 %v458_v20, %v586_v21  ;;  %v971_v35 = vadd.s32 912, %v2591_v8  ;;  %v1488_v19 = vld [vmem:[#allocation2 + $0x360] sm:$0xff]  ;;  %v1489_v23 = vld [vmem:[#allocation2 + $0x228] sm:$0xff] }
 0x170   : > { %vm1227_vm0 = vcmp.lt.s32.totalorder %v1099_v26, 2344  ;;  %1737 = vst [vmem:[#allocation2 + $0xb8] sm:$0xff] %v1609_v29  ;;  %v1610_v38 = vadd.f32 %v1482_v24, %v1354_v33  ;;  %v1100_v40 = vadd.s32 %v2587_v5, %v970_v32  ;;  %v715_v41 = vsub.f32 %v459_v27, %v587_v28 }
 0x171   : > { %v1355_v39 = vsel %vm1227_vm0, %v840_v25, 0.0  ;;  %v842_v46 = vmul.f32 %v714_v34, %v714_v34  ;;  %v1101_v47 = vadd.s32 %v2587_v5, %v971_v35  ;;  %v972_v48 = vadd.s32 920, %v2591_v8  ;;  %v1490_v34 = vld [vmem:[#allocation2 + $0x348] sm:$0xff] }
 0x172   : > { %v1611_v44 = vadd.f32 %v1483_v30, %v1355_v39  ;;  %1738 = vst [vmem:[#allocation2 + $0x38] sm:$0xff] %v1610_v38  ;;  %vm1228_vm1 = vcmp.lt.s32.totalorder %v1100_v40, 2344  ;;  %v843_v50 = vmul.f32 %v715_v41, %v715_v41  ;;  %v716_v51 = vsub.f32 %v460_v36, %v588_v37  ;;  %v466_v30 = vld [vmem:[%s2443_s26 + $0x3d0] sm:$0xff]  ;;  %v467_v37 = vld [vmem:[%s2443_s26 + $0x3d8] sm:$0xff]  ;;  %v1491_v40 = vld [vmem:[#allocation2 + $0x148] sm:$0xff] }
 0x173   : > { %v973_v52 = vadd.s32 928, %v2591_v8  ;;  %v1356_v53 = vsel %vm1228_vm1, %v841_v31, 0.0  ;;  %vm1229_vm2 = vcmp.lt.s32.totalorder %v1101_v47, 2344  ;;  %v1102_v54 = vadd.s32 %v2587_v5, %v972_v48  ;;  %v594_v31 = vld [vmem:[%s2449_s7 + $0x3d0] sm:$0xff]  ;;  %v595_v38 = vld [vmem:[%s2449_s7 + $0x3d8] sm:$0xff]  ;;  %v596_v47 = vld [vmem:[%s2449_s7 + $0x3e0] sm:$0xff] }
 0x174   : > { %1739 = vst [vmem:[#allocation2 + $0x78] sm:$0xff] %v1611_v44  ;;  %v717_v55 = vsub.f32 %v461_v42, %v589_v43  ;;  %v1612_v58 = vadd.f32 %v1484_v45, %v1356_v53  ;;  %v1357_v59 = vsel %vm1229_vm2, %v842_v46, 0.0  ;;  %v844_v61 = vmul.f32 %v716_v51, %v716_v51  ;;  %v468_v46 = vld [vmem:[%s2443_s26 + $0x3e0] sm:$0xff]  ;;  %v597_v53 = vld [vmem:[%s2449_s7 + $0x3e8] sm:$0xff] }
 0x175   : > { %v1103_v62 = vadd.s32 %v2587_v5, %v973_v52  ;;  %v1613_v1 = vadd.f32 %v1485_v49, %v1357_v59  ;;  %vm1230_vm3 = vcmp.lt.s32.totalorder %v1102_v54, 2344  ;;  %v974_v4 = vadd.s32 936, %v2591_v8  ;;  %v469_v52 = vld [vmem:[%s2443_s26 + $0x3e8] sm:$0xff] }
 0x176   : > { %v845_v3 = vmul.f32 %v717_v55, %v717_v55  ;;  %1740 = vst [vmem:[#allocation2 + $0x308] sm:$0xff] %v1612_v58  ;;  %v1358_v6 = vsel %vm1230_vm3, %v843_v50, 0.0  ;;  %v718_v7 = vsub.f32 %v462_v56, %v590_v57  ;;  %v975_v9 = vadd.s32 944, %v2591_v8  ;;  %v1492_v55 = vld [vmem:[#allocation2 + $0xf8] sm:$0xff]  ;;  %v1493_v59 = vld [vmem:[#allocation2 + $0x68] sm:$0xff] }
 0x177   : > { %vm1231_vm4 = vcmp.lt.s32.totalorder %v1103_v62, 2344  ;;  %1741 = vst [vmem:[#allocation2 + $0x370] sm:$0xff] %v1613_v1  ;;  %v1614_v12 = vadd.f32 %v1486_v60, %v1358_v6  ;;  %v1104_v14 = vadd.s32 %v2587_v5, %v974_v4  ;;  %v719_v15 = vsub.f32 %v463_v63, %v591_v0 }
 0x178   : > { %v1359_v13 = vsel %vm1231_vm4, %v844_v61, 0.0  ;;  %v846_v20 = vmul.f32 %v718_v7, %v718_v7  ;;  %v1105_v21 = vadd.s32 %v2587_v5, %v975_v9  ;;  %v976_v22 = vadd.s32 952, %v2591_v8  ;;  %v1494_v7 = vld [vmem:[#allocation2] sm:$0xff] }
 0x179   : > { %v1615_v18 = vadd.f32 %v1487_v2, %v1359_v13  ;;  %1742 = vst [vmem:[#allocation2 + $0xc8] sm:$0xff] %v1614_v12  ;;  %vm1232_vm5 = vcmp.lt.s32.totalorder %v1104_v14, 2344  ;;  %v847_v24 = vmul.f32 %v719_v15, %v719_v15  ;;  %v720_v25 = vsub.f32 %v464_v10, %v592_v11  ;;  %v470_v2 = vld [vmem:[%s2443_s26 + $0x3f0] sm:$0xff]  ;;  %v471_v11 = vld [vmem:[%s2443_s26 + $0x3f8] sm:$0xff] }
 0x17a   : > { %v977_v26 = vadd.s32 960, %v2591_v8  ;;  %v1360_v27 = vsel %vm1232_vm5, %v845_v3, 0.0  ;;  %vm1233_vm6 = vcmp.lt.s32.totalorder %v1105_v21, 2344  ;;  %v1106_v28 = vadd.s32 %v2587_v5, %v976_v22  ;;  %v598_v3 = vld [vmem:[%s2449_s7 + $0x3f0] sm:$0xff]  ;;  %v599_v12 = vld [vmem:[%s2449_s7 + $0x3f8] sm:$0xff] }
 0x17b   : > { %1743 = vst [vmem:[#allocation2 + $0x278] sm:$0xff] %v1615_v18  ;;  %v721_v29 = vsub.f32 %v465_v16, %v593_v17  ;;  %v1616_v32 = vadd.f32 %v1488_v19, %v1360_v27  ;;  %v1361_v33 = vsel %vm1233_vm6, %v846_v20, 0.0  ;;  %v848_v35 = vmul.f32 %v720_v25, %v720_v25  ;;  %v1495_v14 = vld [vmem:[#allocation2 + $0x298] sm:$0xff]  ;;  %v1496_v25 = vld [vmem:[#allocation2 + $0x270] sm:$0xff] }
 0x17c   : > { %v1107_v36 = vadd.s32 %v2587_v5, %v977_v26  ;;  %v1617_v39 = vadd.f32 %v1489_v23, %v1361_v33  ;;  %vm1234_vm7 = vcmp.lt.s32.totalorder %v1106_v28, 2344  ;;  %v978_v42 = vadd.s32 968, %v2591_v8 }
 0x17d   : > { %v849_v41 = vmul.f32 %v721_v29, %v721_v29  ;;  %1744 = vst [vmem:[#allocation2 + $0x360] sm:$0xff] %v1616_v32  ;;  %v1362_v43 = vsel %vm1234_vm7, %v847_v24, 0.0  ;;  %v722_v44 = vsub.f32 %v466_v30, %v594_v31  ;;  %v979_v45 = vadd.s32 976, %v2591_v8  ;;  %v1497_v29 = vld [vmem:[#allocation2 + $0x310] sm:$0xff] }
 0x17e   : > { %vm1235_vm8 = vcmp.lt.s32.totalorder %v1107_v36, 2344  ;;  %1745 = vst [vmem:[#allocation2 + $0x228] sm:$0xff] %v1617_v39  ;;  %v1618_v48 = vadd.f32 %v1490_v34, %v1362_v43  ;;  %v1108_v50 = vadd.s32 %v2587_v5, %v978_v42  ;;  %v723_v51 = vsub.f32 %v467_v37, %v595_v38 }
 0x17f   : > { %v1363_v49 = vsel %vm1235_vm8, %v848_v35, 0.0  ;;  %v850_v56 = vmul.f32 %v722_v44, %v722_v44  ;;  %v1109_v57 = vadd.s32 %v2587_v5, %v979_v45  ;;  %v980_v58 = vadd.s32 984, %v2591_v8  ;;  %v1498_v35 = vld [vmem:[#allocation2 + $0x190] sm:$0xff] }
 0x180   : > { %v1619_v54 = vadd.f32 %v1491_v40, %v1363_v49  ;;  %1746 = vst [vmem:[#allocation2 + $0x348] sm:$0xff] %v1618_v48  ;;  %vm1236_vm9 = vcmp.lt.s32.totalorder %v1108_v50, 2344  ;;  %v851_v60 = vmul.f32 %v723_v51, %v723_v51  ;;  %v724_v61 = vsub.f32 %v468_v46, %v596_v47 }
 0x181   : > { %v981_v62 = vadd.s32 992, %v2591_v8  ;;  %v1364_v63 = vsel %vm1236_vm9, %v849_v41, 0.0  ;;  %vm1237_vm10 = vcmp.lt.s32.totalorder %v1109_v57, 2344  ;;  %v1110_v0 = vadd.s32 %v2587_v5, %v980_v58 }
 0x182   : > { %1747 = vst [vmem:[#allocation2 + $0x148] sm:$0xff] %v1619_v54  ;;  %v725_v1 = vsub.f32 %v469_v52, %v597_v53  ;;  %v1620_v4 = vadd.f32 %v1492_v55, %v1364_v63  ;;  %v1365_v6 = vsel %vm1237_vm10, %v850_v56, 0.0  ;;  %v852_v9 = vmul.f32 %v724_v61, %v724_v61 }
 0x183   : > { %v1111_v10 = vadd.s32 %v2587_v5, %v981_v62  ;;  %v1621_v13 = vadd.f32 %v1493_v59, %v1365_v6  ;;  %vm1238_vm11 = vcmp.lt.s32.totalorder %v1110_v0, 2344  ;;  %v982_v16 = vadd.s32 1000, %v2591_v8 }
 0x184   : > { %v853_v15 = vmul.f32 %v725_v1, %v725_v1  ;;  %1748 = vst [vmem:[#allocation2 + $0xf8] sm:$0xff] %v1620_v4  ;;  %v1366_v17 = vsel %vm1238_vm11, %v851_v60, 0.0  ;;  %v726_v18 = vsub.f32 %v470_v2, %v598_v3  ;;  %v983_v19 = vadd.s32 1008, %v2591_v8 }
 0x185   : > { %vm1239_vm12 = vcmp.lt.s32.totalorder %v1111_v10, 2344  ;;  %1749 = vst [vmem:[#allocation2 + $0x68] sm:$0xff] %v1621_v13  ;;  %v1622_v20 = vadd.f32 %v1494_v7, %v1366_v17  ;;  %v1112_v22 = vadd.s32 %v2587_v5, %v982_v16  ;;  %v727_v23 = vsub.f32 %v471_v11, %v599_v12 }
 0x186   : > { %v1367_v21 = vsel %vm1239_vm12, %v852_v9, 0.0  ;;  %v854_v26 = vmul.f32 %v726_v18, %v726_v18  ;;  %v1113_v27 = vadd.s32 %v2587_v5, %v983_v19  ;;  %v984_v28 = vadd.s32 1016, %v2591_v8 }
 0x187   : > { %v1623_v24 = vadd.f32 %v1495_v14, %v1367_v21  ;;  %1750 = vst [vmem:[#allocation2] sm:$0xff] %v1622_v20  ;;  %vm1240_vm13 = vcmp.lt.s32.totalorder %v1112_v22, 2344  ;;  %v855_v30 = vmul.f32 %v727_v23, %v727_v23 }
 0x188   : > { %v1368_v31 = vsel %vm1240_vm13, %v853_v15, 0.0  ;;  %vm1241_vm14 = vcmp.lt.s32.totalorder %v1113_v27, 2344  ;;  %v1114_v32 = vadd.s32 %v2587_v5, %v984_v28 }
 0x189   : > { %1751 = vst [vmem:[#allocation2 + $0x298] sm:$0xff] %v1623_v24  ;;  %v1624_v33 = vadd.f32 %v1496_v25, %v1368_v31  ;;  %v1369_v34 = vsel %vm1241_vm14, %v854_v26, 0.0 }
 0x18a   : > { %v1625_v36 = vadd.f32 %v1497_v29, %v1369_v34  ;;  %vm1242_vm15 = vcmp.lt.s32.totalorder %v1114_v32, 2344  ;;  %1758 = sbr.rel (%p2126_p6) target bundleno = 856 (0x358), region = 44 }
 0x18b   : > { %1752 = vst [vmem:[#allocation2 + $0x270] sm:$0xff] %v1624_v33  ;;  %v1370_v37 = vsel %vm1242_vm15, %v855_v30, 0.0 }
 0x18c   : > { %1753 = vst [vmem:[#allocation2 + $0x310] sm:$0xff] %v1625_v36  ;;  %v1626_v38 = vadd.f32 %v1498_v35, %v1370_v37 }
 0x18e   : > { %1754 = vst [vmem:[#allocation2 + $0x190] sm:$0xff] %v1626_v38 }
 0x18f   : > { %v1759_v8 = vld [vmem:[#allocation2 + $0x2b0] sm:$0xff]  ;;  %v1761_v40 = vld [vmem:[#allocation2 + $0xd8] sm:$0xff]  ;;  %v1764_v45 = vld [vmem:[#allocation2 + $0x368] sm:$0xff] }
 0x190   : > { %v1760_v39 = vld [vmem:[#allocation2 + $0x3b0] sm:$0xff]  ;;  %v1762_v42 = vld [vmem:[#allocation2 + $0x18] sm:$0xff]  ;;  %v1766_v49 = vld [vmem:[#allocation2 + $0x48] sm:$0xff] }
 0x191   : > { %v1887_v41 = vadd.f32 %v1760_v39, %v1759_v8  ;;  %v1763_v5 = vld [vmem:[#allocation2 + $0x50] sm:$0xff]  ;;  %v1767_v51 = vld [vmem:[#allocation2 + $0x380] sm:$0xff]  ;;  %v1769_v55 = vld [vmem:[#allocation2 + $0x118] sm:$0xff] }
 0x192   : > { %v1765_v47 = vld [vmem:[#allocation2 + $0x330] sm:$0xff]  ;;  %v1770_v57 = vld [vmem:[#allocation2 + $0x98] sm:$0xff]  ;;  %v1771_v59 = vld [vmem:[#allocation2 + $0x320] sm:$0xff] }
 0x193   : > { %v1888_v43 = vadd.f32 %v1887_v41, %v1761_v40  ;;  %v1768_v53 = vld [vmem:[#allocation2 + $0x110] sm:$0xff]  ;;  %v1773_v63 = vld [vmem:[#allocation2 + $0x108] sm:$0xff]  ;;  %v1774_v1 = vld [vmem:[#allocation2 + $0x60] sm:$0xff] }
 0x194   : > { %v1772_v61 = vld [vmem:[#allocation2 + $0x150] sm:$0xff]  ;;  %v1775_v3 = vld [vmem:[#allocation2 + $0x2e0] sm:$0xff]  ;;  %v1776_v6 = vld [vmem:[#allocation2 + $0x388] sm:$0xff] }
 0x195   : > { %v1889_v44 = vadd.f32 %v1888_v43, %v1762_v42  ;;  %v1777_v9 = vld [vmem:[#allocation2 + $0x338] sm:$0xff]  ;;  %v1778_v11 = vld [vmem:[#allocation2 + $0x340] sm:$0xff]  ;;  %v1780_v15 = vld [vmem:[#allocation2 + $0x1a8] sm:$0xff] }
 0x196   : > { %v1779_v13 = vld [vmem:[#allocation2 + $0x80] sm:$0xff]  ;;  %v1781_v17 = vld [vmem:[#allocation2 + $0x1b8] sm:$0xff]  ;;  %v1782_v19 = vld [vmem:[#allocation2 + $0x168] sm:$0xff] }
 0x197   : > { %v1890_v46 = vadd.f32 %v1889_v44, %v1763_v5  ;;  %v1783_v21 = vld [vmem:[#allocation2 + $0x3e8] sm:$0xff]  ;;  %v1784_v23 = vld [vmem:[#allocation2 + $0x2f8] sm:$0xff]  ;;  %v1785_v25 = vld [vmem:[#allocation2 + $0x290] sm:$0xff] }
 0x198   : > { %v1786_v27 = vld [vmem:[#allocation2 + $0x28] sm:$0xff]  ;;  %v1787_v29 = vld [vmem:[#allocation2 + $0x138] sm:$0xff]  ;;  %v1788_v31 = vld [vmem:[#allocation2 + $0xc0] sm:$0xff] }
 0x199   : > { %v1891_v48 = vadd.f32 %v1890_v46, %v1764_v45  ;;  %v1789_v33 = vld [vmem:[#allocation2 + $0x1c0] sm:$0xff]  ;;  %v1793_v40 = vld [vmem:[#allocation2 + $0x158] sm:$0xff] }
 0x19a   : > { %v1790_v35 = vld [vmem:[#allocation2 + $0x280] sm:$0xff]  ;;  %v1795_v5 = vld [vmem:[#allocation2 + $0x218] sm:$0xff] }
 0x19b   : > { %v1892_v50 = vadd.f32 %v1891_v48, %v1765_v47  ;;  %v1791_v37 = vld [vmem:[#allocation2 + $0x100] sm:$0xff]  ;;  %v1796_v45 = vld [vmem:[#allocation2 + $0x3f8] sm:$0xff]  ;;  %v1797_v47 = vld [vmem:[#allocation2 + $0x8] sm:$0xff] }
 0x19c   : > { %v1792_v8 = vld [vmem:[#allocation2 + $0x3c0] sm:$0xff] }
 0x19d   : > { %v1893_v52 = vadd.f32 %v1892_v50, %v1766_v49  ;;  %v1794_v42 = vld [vmem:[#allocation2 + $0x3e0] sm:$0xff]  ;;  %v1798_v49 = vld [vmem:[#allocation2 + $0x128] sm:$0xff] }
 0x19f   : > { %v1894_v54 = vadd.f32 %v1893_v52, %v1767_v51  ;;  %v1799_v51 = vld [vmem:[#allocation2 + $0x2a0] sm:$0xff] }
 0x1a1   : > { %v1895_v56 = vadd.f32 %v1894_v54, %v1768_v53  ;;  %v1800_v53 = vld [vmem:[#allocation2 + $0x3f0] sm:$0xff] }
 0x1a3   : > { %v1896_v58 = vadd.f32 %v1895_v56, %v1769_v55  ;;  %v1801_v55 = vld [vmem:[#allocation2 + $0xa0] sm:$0xff] }
 0x1a5   : > { %v1897_v60 = vadd.f32 %v1896_v58, %v1770_v57  ;;  %v1802_v57 = vld [vmem:[#allocation2 + $0x2c0] sm:$0xff] }
 0x1a7   : > { %v1898_v62 = vadd.f32 %v1897_v60, %v1771_v59  ;;  %v1803_v59 = vld [vmem:[#allocation2 + $0xb0] sm:$0xff] }
 0x1a9   : > { %v1899_v0 = vadd.f32 %v1898_v62, %v1772_v61  ;;  %v1804_v61 = vld [vmem:[#allocation2 + $0x1e0] sm:$0xff] }
 0x1ab   : > { %v1900_v2 = vadd.f32 %v1899_v0, %v1773_v63  ;;  %v1805_v63 = vld [vmem:[#allocation2 + $0x1f0] sm:$0xff] }
 0x1ad   : > { %v1901_v4 = vadd.f32 %v1900_v2, %v1774_v1  ;;  %v1806_v1 = vld [vmem:[#allocation2 + $0x10] sm:$0xff] }
 0x1af   : > { %v1902_v7 = vadd.f32 %v1901_v4, %v1775_v3  ;;  %v1807_v3 = vld [vmem:[#allocation2 + $0x230] sm:$0xff] }
 0x1b1   : > { %v1903_v10 = vadd.f32 %v1902_v7, %v1776_v6  ;;  %v1808_v6 = vld [vmem:[#allocation2 + $0x240] sm:$0xff] }
 0x1b3   : > { %v1904_v12 = vadd.f32 %v1903_v10, %v1777_v9  ;;  %v1809_v9 = vld [vmem:[#allocation2 + $0x90] sm:$0xff] }
 0x1b5   : > { %v1905_v14 = vadd.f32 %v1904_v12, %v1778_v11  ;;  %v1810_v11 = vld [vmem:[#allocation2 + $0x3a0] sm:$0xff] }
 0x1b7   : > { %v1906_v16 = vadd.f32 %v1905_v14, %v1779_v13  ;;  %v1811_v13 = vld [vmem:[#allocation2 + $0x208] sm:$0xff] }
 0x1b9   : > { %v1907_v18 = vadd.f32 %v1906_v16, %v1780_v15  ;;  %v1812_v15 = vld [vmem:[#allocation2 + $0xd0] sm:$0xff] }
 0x1bb   : > { %v1908_v20 = vadd.f32 %v1907_v18, %v1781_v17  ;;  %v1813_v17 = vld [vmem:[#allocation2 + $0x88] sm:$0xff] }
 0x1bd   : > { %v1909_v22 = vadd.f32 %v1908_v20, %v1782_v19  ;;  %v1814_v19 = vld [vmem:[#allocation2 + $0x2f0] sm:$0xff] }
 0x1bf   : > { %v1910_v24 = vadd.f32 %v1909_v22, %v1783_v21  ;;  %v1815_v21 = vld [vmem:[#allocation2 + $0x358] sm:$0xff] }
 0x1c1   : > { %v1911_v26 = vadd.f32 %v1910_v24, %v1784_v23  ;;  %v1816_v23 = vld [vmem:[#allocation2 + $0x268] sm:$0xff] }
 0x1c3   : > { %v1912_v28 = vadd.f32 %v1911_v26, %v1785_v25  ;;  %v1817_v25 = vld [vmem:[#allocation2 + $0x350] sm:$0xff] }
 0x1c5   : > { %v1913_v30 = vadd.f32 %v1912_v28, %v1786_v27  ;;  %v1818_v27 = vld [vmem:[#allocation2 + $0x188] sm:$0xff] }
 0x1c7   : > { %v1914_v32 = vadd.f32 %v1913_v30, %v1787_v29  ;;  %v1819_v29 = vld [vmem:[#allocation2 + $0x1d8] sm:$0xff] }
 0x1c9   : > { %v1915_v34 = vadd.f32 %v1914_v32, %v1788_v31  ;;  %v1820_v31 = vld [vmem:[#allocation2 + $0x30] sm:$0xff] }
 0x1cb   : > { %v1916_v36 = vadd.f32 %v1915_v34, %v1789_v33  ;;  %v1821_v33 = vld [vmem:[#allocation2 + $0x140] sm:$0xff] }
 0x1cd   : > { %v1917_v38 = vadd.f32 %v1916_v36, %v1790_v35  ;;  %v1822_v35 = vld [vmem:[#allocation2 + $0x2a8] sm:$0xff] }
 0x1cf   : > { %v1918_v39 = vadd.f32 %v1917_v38, %v1791_v37  ;;  %v1823_v37 = vld [vmem:[#allocation2 + $0x130] sm:$0xff] }
 0x1d1   : > { %v1919_v41 = vadd.f32 %v1918_v39, %v1792_v8  ;;  %v1824_v8 = vld [vmem:[#allocation2 + $0x200] sm:$0xff] }
 0x1d3   : > { %v1920_v43 = vadd.f32 %v1919_v41, %v1793_v40  ;;  %v1825_v40 = vld [vmem:[#allocation2 + $0x318] sm:$0xff] }
 0x1d5   : > { %v1921_v44 = vadd.f32 %v1920_v43, %v1794_v42  ;;  %v1826_v42 = vld [vmem:[#allocation2 + $0x220] sm:$0xff] }
 0x1d7   : > { %v1922_v46 = vadd.f32 %v1921_v44, %v1795_v5  ;;  %v1827_v5 = vld [vmem:[#allocation2 + $0x70] sm:$0xff] }
 0x1d9   : > { %v1923_v48 = vadd.f32 %v1922_v46, %v1796_v45  ;;  %v1828_v45 = vld [vmem:[#allocation2 + $0x300] sm:$0xff] }
 0x1db   : > { %v1924_v50 = vadd.f32 %v1923_v48, %v1797_v47  ;;  %v1829_v47 = vld [vmem:[#allocation2 + $0xe0] sm:$0xff] }
 0x1dd   : > { %v1925_v52 = vadd.f32 %v1924_v50, %v1798_v49  ;;  %v1830_v49 = vld [vmem:[#allocation2 + $0x178] sm:$0xff] }
 0x1df   : > { %v1926_v54 = vadd.f32 %v1925_v52, %v1799_v51  ;;  %v1831_v51 = vld [vmem:[#allocation2 + $0x328] sm:$0xff] }
 0x1e1   : > { %v1927_v56 = vadd.f32 %v1926_v54, %v1800_v53  ;;  %v1832_v53 = vld [vmem:[#allocation2 + $0x260] sm:$0xff] }
 0x1e3   : > { %v1928_v58 = vadd.f32 %v1927_v56, %v1801_v55  ;;  %v1833_v55 = vld [vmem:[#allocation2 + $0x3b8] sm:$0xff] }
 0x1e5   : > { %v1929_v60 = vadd.f32 %v1928_v58, %v1802_v57  ;;  %v1834_v57 = vld [vmem:[#allocation2 + $0x2b8] sm:$0xff] }
 0x1e7   : > { %v1930_v62 = vadd.f32 %v1929_v60, %v1803_v59  ;;  %v1835_v59 = vld [vmem:[#allocation2 + $0x248] sm:$0xff] }
 0x1e9   : > { %v1931_v0 = vadd.f32 %v1930_v62, %v1804_v61  ;;  %v1836_v61 = vld [vmem:[#allocation2 + $0x40] sm:$0xff] }
 0x1eb   : > { %v1932_v2 = vadd.f32 %v1931_v0, %v1805_v63  ;;  %v1837_v63 = vld [vmem:[#allocation2 + $0x20] sm:$0xff] }
 0x1ed   : > { %v1933_v4 = vadd.f32 %v1932_v2, %v1806_v1  ;;  %v1838_v1 = vld [vmem:[#allocation2 + $0xe8] sm:$0xff] }
 0x1ef   : > { %v1934_v7 = vadd.f32 %v1933_v4, %v1807_v3  ;;  %v1839_v3 = vld [vmem:[#allocation2 + $0x288] sm:$0xff] }
 0x1f1   : > { %v1935_v10 = vadd.f32 %v1934_v7, %v1808_v6  ;;  %v1840_v6 = vld [vmem:[#allocation2 + $0x3a8] sm:$0xff] }
 0x1f3   : > { %v1936_v12 = vadd.f32 %v1935_v10, %v1809_v9  ;;  %v1841_v9 = vld [vmem:[#allocation2 + $0x3c8] sm:$0xff] }
 0x1f5   : > { %v1937_v14 = vadd.f32 %v1936_v12, %v1810_v11  ;;  %v1842_v11 = vld [vmem:[#allocation2 + $0x160] sm:$0xff] }
 0x1f7   : > { %v1938_v16 = vadd.f32 %v1937_v14, %v1811_v13  ;;  %v1843_v13 = vld [vmem:[#allocation2 + $0x2c8] sm:$0xff] }
 0x1f9   : > { %v1939_v18 = vadd.f32 %v1938_v16, %v1812_v15  ;;  %v1844_v15 = vld [vmem:[#allocation2 + $0x210] sm:$0xff] }
 0x1fb   : > { %v1940_v20 = vadd.f32 %v1939_v18, %v1813_v17  ;;  %v1845_v17 = vld [vmem:[#allocation2 + $0x3d8] sm:$0xff] }
 0x1fd   : > { %v1941_v22 = vadd.f32 %v1940_v20, %v1814_v19  ;;  %v1846_v19 = vld [vmem:[#allocation2 + $0x1e8] sm:$0xff] }
 0x1ff   : > { %v1942_v24 = vadd.f32 %v1941_v22, %v1815_v21  ;;  %v1847_v21 = vld [vmem:[#allocation2 + $0x1b0] sm:$0xff] }
 0x201   : > { %v1943_v26 = vadd.f32 %v1942_v24, %v1816_v23  ;;  %v1848_v23 = vld [vmem:[#allocation2 + $0x1c8] sm:$0xff] }
 0x203   : > { %v1944_v28 = vadd.f32 %v1943_v26, %v1817_v25  ;;  %v1849_v25 = vld [vmem:[#allocation2 + $0x2d0] sm:$0xff] }
 0x205   : > { %v1945_v30 = vadd.f32 %v1944_v28, %v1818_v27  ;;  %v1850_v27 = vld [vmem:[#allocation2 + $0x1d0] sm:$0xff] }
 0x207   : > { %v1946_v32 = vadd.f32 %v1945_v30, %v1819_v29  ;;  %v1851_v29 = vld [vmem:[#allocation2 + $0x58] sm:$0xff] }
 0x209   : > { %v1947_v34 = vadd.f32 %v1946_v32, %v1820_v31  ;;  %v1852_v31 = vld [vmem:[#allocation2 + $0x120] sm:$0xff] }
 0x20b   : > { %v1948_v36 = vadd.f32 %v1947_v34, %v1821_v33  ;;  %v1853_v33 = vld [vmem:[#allocation2 + $0x198] sm:$0xff] }
 0x20d   : > { %v1949_v38 = vadd.f32 %v1948_v36, %v1822_v35  ;;  %v1854_v35 = vld [vmem:[#allocation2 + $0x2e8] sm:$0xff] }
 0x20f   : > { %v1950_v39 = vadd.f32 %v1949_v38, %v1823_v37  ;;  %v1855_v37 = vld [vmem:[#allocation2 + $0x1f8] sm:$0xff] }
 0x211   : > { %v1951_v41 = vadd.f32 %v1950_v39, %v1824_v8  ;;  %v1856_v8 = vld [vmem:[#allocation2 + $0x238] sm:$0xff] }
 0x213   : > { %v1952_v43 = vadd.f32 %v1951_v41, %v1825_v40  ;;  %v1857_v40 = vld [vmem:[#allocation2 + $0x398] sm:$0xff] }
 0x215   : > { %v1953_v44 = vadd.f32 %v1952_v43, %v1826_v42  ;;  %v1858_v42 = vld [vmem:[#allocation2 + $0x390] sm:$0xff] }
 0x217   : > { %v1954_v46 = vadd.f32 %v1953_v44, %v1827_v5  ;;  %v1859_v5 = vld [vmem:[#allocation2 + $0x1a0] sm:$0xff] }
 0x219   : > { %v1955_v48 = vadd.f32 %v1954_v46, %v1828_v45  ;;  %v1860_v45 = vld [vmem:[#allocation2 + $0xa8] sm:$0xff] }
 0x21b   : > { %v1956_v50 = vadd.f32 %v1955_v48, %v1829_v47  ;;  %v1861_v47 = vld [vmem:[#allocation2 + $0x258] sm:$0xff] }
 0x21d   : > { %v1957_v52 = vadd.f32 %v1956_v50, %v1830_v49  ;;  %v1862_v49 = vld [vmem:[#allocation2 + $0x2d8] sm:$0xff] }
 0x21f   : > { %v1958_v54 = vadd.f32 %v1957_v52, %v1831_v51  ;;  %v1863_v51 = vld [vmem:[#allocation2 + $0xf0] sm:$0xff] }
 0x221   : > { %v1959_v56 = vadd.f32 %v1958_v54, %v1832_v53  ;;  %v1864_v53 = vld [vmem:[#allocation2 + $0x180] sm:$0xff] }
 0x223   : > { %v1960_v58 = vadd.f32 %v1959_v56, %v1833_v55  ;;  %v1865_v55 = vld [vmem:[#allocation2 + $0x170] sm:$0xff] }
 0x225   : > { %v1961_v60 = vadd.f32 %v1960_v58, %v1834_v57  ;;  %v1866_v57 = vld [vmem:[#allocation2 + $0x3d0] sm:$0xff] }
 0x227   : > { %v1962_v62 = vadd.f32 %v1961_v60, %v1835_v59  ;;  %v1867_v59 = vld [vmem:[#allocation2 + $0x250] sm:$0xff] }
 0x229   : > { %v1963_v0 = vadd.f32 %v1962_v62, %v1836_v61  ;;  %v1868_v61 = vld [vmem:[#allocation2 + $0x378] sm:$0xff] }
 0x22b   : > { %v1964_v2 = vadd.f32 %v1963_v0, %v1837_v63  ;;  %v1869_v63 = vld [vmem:[#allocation2 + $0xb8] sm:$0xff] }
 0x22d   : > { %v1965_v4 = vadd.f32 %v1964_v2, %v1838_v1  ;;  %v1870_v1 = vld [vmem:[#allocation2 + $0x38] sm:$0xff] }
 0x22f   : > { %v1966_v7 = vadd.f32 %v1965_v4, %v1839_v3  ;;  %v1871_v3 = vld [vmem:[#allocation2 + $0x78] sm:$0xff] }
 0x231   : > { %v1967_v10 = vadd.f32 %v1966_v7, %v1840_v6  ;;  %v1872_v6 = vld [vmem:[#allocation2 + $0x308] sm:$0xff] }
 0x233   : > { %v1968_v12 = vadd.f32 %v1967_v10, %v1841_v9  ;;  %v1873_v9 = vld [vmem:[#allocation2 + $0x370] sm:$0xff] }
 0x235   : > { %v1969_v14 = vadd.f32 %v1968_v12, %v1842_v11  ;;  %v1874_v11 = vld [vmem:[#allocation2 + $0xc8] sm:$0xff] }
 0x237   : > { %v1970_v16 = vadd.f32 %v1969_v14, %v1843_v13  ;;  %v1875_v13 = vld [vmem:[#allocation2 + $0x278] sm:$0xff] }
 0x239   : > { %v1971_v18 = vadd.f32 %v1970_v16, %v1844_v15  ;;  %v1876_v15 = vld [vmem:[#allocation2 + $0x360] sm:$0xff] }
 0x23b   : > { %v1972_v20 = vadd.f32 %v1971_v18, %v1845_v17  ;;  %v1877_v17 = vld [vmem:[#allocation2 + $0x228] sm:$0xff] }
 0x23d   : > { %v1973_v22 = vadd.f32 %v1972_v20, %v1846_v19  ;;  %v1878_v19 = vld [vmem:[#allocation2 + $0x348] sm:$0xff] }
 0x23f   : > { %v1974_v24 = vadd.f32 %v1973_v22, %v1847_v21  ;;  %v1879_v21 = vld [vmem:[#allocation2 + $0x148] sm:$0xff] }
 0x241   : > { %v1975_v26 = vadd.f32 %v1974_v24, %v1848_v23  ;;  %v1880_v23 = vld [vmem:[#allocation2 + $0xf8] sm:$0xff] }
 0x243   : > { %v1976_v28 = vadd.f32 %v1975_v26, %v1849_v25  ;;  %v1881_v25 = vld [vmem:[#allocation2 + $0x68] sm:$0xff] }
 0x245   : > { %v1977_v30 = vadd.f32 %v1976_v28, %v1850_v27  ;;  %v1882_v27 = vld [vmem:[#allocation2] sm:$0xff] }
 0x247   : > { %v1978_v32 = vadd.f32 %v1977_v30, %v1851_v29  ;;  %v1883_v29 = vld [vmem:[#allocation2 + $0x298] sm:$0xff] }
 0x249   : > { %v1979_v34 = vadd.f32 %v1978_v32, %v1852_v31  ;;  %v1884_v31 = vld [vmem:[#allocation2 + $0x270] sm:$0xff] }
 0x24b   : > { %v1980_v36 = vadd.f32 %v1979_v34, %v1853_v33  ;;  %v1885_v33 = vld [vmem:[#allocation2 + $0x310] sm:$0xff] }
 0x24d   : > { %v1981_v38 = vadd.f32 %v1980_v36, %v1854_v35  ;;  %v1886_v35 = vld [vmem:[#allocation2 + $0x190] sm:$0xff] }
 0x24f   : > { %v1982_v39 = vadd.f32 %v1981_v38, %v1855_v37 }
 0x251   : > { %v1983_v41 = vadd.f32 %v1982_v39, %v1856_v8 }
 0x253   : > { %v1984_v43 = vadd.f32 %v1983_v41, %v1857_v40 }
 0x255   : > { %v1985_v44 = vadd.f32 %v1984_v43, %v1858_v42 }
 0x257   : > { %v1986_v46 = vadd.f32 %v1985_v44, %v1859_v5 }
 0x259   : > { %v1987_v48 = vadd.f32 %v1986_v46, %v1860_v45 }
 0x25b   : > { %v1988_v50 = vadd.f32 %v1987_v48, %v1861_v47 }
 0x25d   : > { %v1989_v52 = vadd.f32 %v1988_v50, %v1862_v49 }
 0x25f   : > { %v1990_v54 = vadd.f32 %v1989_v52, %v1863_v51 }
 0x261   : > { %v1991_v56 = vadd.f32 %v1990_v54, %v1864_v53 }
 0x263   : > { %v1992_v58 = vadd.f32 %v1991_v56, %v1865_v55 }
 0x265   : > { %v1993_v60 = vadd.f32 %v1992_v58, %v1866_v57 }
 0x267   : > { %v1994_v62 = vadd.f32 %v1993_v60, %v1867_v59 }
 0x269   : > { %v1995_v0 = vadd.f32 %v1994_v62, %v1868_v61 }
 0x26b   : > { %v1996_v2 = vadd.f32 %v1995_v0, %v1869_v63 }
 0x26d   : > { %v1997_v4 = vadd.f32 %v1996_v2, %v1870_v1 }
 0x26f   : > { %v1998_v7 = vadd.f32 %v1997_v4, %v1871_v3 }
 0x271   : > { %v1999_v10 = vadd.f32 %v1998_v7, %v1872_v6 }
 0x273   : > { %v2000_v12 = vadd.f32 %v1999_v10, %v1873_v9 }
 0x275   : > { %v2001_v14 = vadd.f32 %v2000_v12, %v1874_v11 }
 0x277   : > { %v2002_v16 = vadd.f32 %v2001_v14, %v1875_v13 }
 0x279   : > { %v2003_v18 = vadd.f32 %v2002_v16, %v1876_v15 }
 0x27b   : > { %v2004_v20 = vadd.f32 %v2003_v18, %v1877_v17 }
 0x27d   : > { %v2005_v22 = vadd.f32 %v2004_v20, %v1878_v19 }
 0x27f   : > { %v2006_v24 = vadd.f32 %v2005_v22, %v1879_v21 }
 0x281   : > { %v2007_v26 = vadd.f32 %v2006_v24, %v1880_v23 }
 0x283   : > { %v2008_v28 = vadd.f32 %v2007_v26, %v1881_v25 }
 0x285   : > { %v2009_v30 = vadd.f32 %v2008_v28, %v1882_v27 }
 0x287   : > { %v2010_v32 = vadd.f32 %v2009_v30, %v1883_v29 }
 0x289   : > { %v2011_v34 = vadd.f32 %v2010_v32, %v1884_v31 }
 0x28b   : > { %v2012_v36 = vadd.f32 %v2011_v34, %v1885_v33 }
 0x28d   : > { %v2013_v37 = vadd.f32 %v2012_v36, %v1886_v35 }
 0x28f   : > { %2014 = vadd.xlane.f32.xlu0 %v2013_v37 }
 0x318   : > { %v2015_v38 = vpop.xlane.xlu0 %2014 }
 0x319   : > { %v2016_v8 = vrot.slane %v2015_v38, 4 }
 0x31b   : > { %v2017_v39 = vadd.f32 %v2016_v8, %v2015_v38 }
 0x31d   : > { %v2018_v40 = vrot.slane %v2017_v39, 2 }
 0x31f   : > { %v2019_v41 = vadd.f32 %v2018_v40, %v2017_v39 }
 0x321   : > { %v2020_v42 = vrot.slane %v2019_v41, 1 }
 0x323   : > { %v2021_v43 = vadd.f32 %v2020_v42, %v2019_v41 }
 0x325   : > { %2133 = vpush %v2021_v43 }
 0x356   : > { %s2134_s19 = spop %2133 }
 0x357   : > { %2024 = sst [smem:[#allocation8]] %s2134_s19 }
 0x358 PF: > { %p2141_p5 = scmp.eq.s32.totalorder %s2329_s13, 2  ;;  %s2294_s3 = smov [#allocation8]  }
 0x35a   : > { %2138 = dma.smem_to_hbm (%p2141_p5), %s2294_s3, 16, %s3121_s2, [#allocation5]  }
 0x35b   : > { %2268 = dma.done.wait (%p2141_p5), [#allocation5], 16  }
 0x35c   : > { %2270 = vsyncadd (%p2141_p5), [#allocation5], 4294967280 }
 0x35d   : > { %2038 = sfence }
 0x35e PF: > { %p16_p7 = scmp.ge.s32.totalorder %s2332_s14, 5   ;;  %s3124_s9 = smov %s2277_s10 }
 0x35f   : > { %s3125_s10 = smov %s2281_s11  ;;  %s3126_s11 = smov %s2342_s17 }
 0x360   : > { %s3127_s12 = smov %s2332_s14  ;;  %18 = sbr.rel (!%p16_p7) target bundleno = 6 (0x6), region = 87 }
 0x365   :  { %2044 = vsyncpa [#allocation4], 1 }
 0x366   :  { %2046 = vsyncpa [#allocation4 + $0x1], 1 }
 0x367   :  { %2047 = vsyncpa [#allocation7], 1 }
 0x368   :  { %2049 = vsyncpa [#allocation7 + $0x1], 1 }
 0x369   :  { %2050 = vsyncpa [#allocation5], 1 }
 0x36a   :  { %2052 = vsyncpa [#allocation5 + $0x1], 1 }

</bundles_post_ra>
